<compile_context>
chip_gen: v6e
topology: v6e:2x2x1
jax: 0.10.0
libtpu: 0.0.40
codegen_flags: <defaults>
</compile_context>

<pallas_src>
import jax
import jax.numpy as jnp
from jax import lax
from jax.experimental import pallas as pl
from jax.experimental.pallas import tpu as pltpu


# ---------------- model hyper-parameters (synthetic, deterministic) ----------
B = 2              # batch
C = 32             # channels (attention model dim)
H = 16             # spatial height
W = 16             # spatial width
SEQ = H * W        # flattened (h w) sequence length = 256 (lane-dense, 2 * 128)
NUM_HEADS = 2
DIM_HEAD = 32
INNER = NUM_HEADS * DIM_HEAD   # 64
SCALE = DIM_HEAD ** -0.5

_NT = (((1,), (1,)), ((), ()))     # contract the last dim of both operands


# ---------------- Pallas kernel: fused rearrange + multi-head attention ------
def _attn_kernel(x_ref, wqkv_ref, wo_t_ref, o_ref):
    """One batch element per grid step.

    x_ref:    (1, C, SEQ)    input in 'b c (h w)' layout
    wqkv_ref: (C, 3*INNER)   fused [wq*SCALE | wk | wv]
    wo_t_ref: (C, INNER)     output projection weight, pre-transposed
    o_ref:    (1, C, SEQ)    output in 'b c (h w)' layout
    """
    # 'c s -> s c': one small XLU transpose feeding a standard NN matmul.
    xs = x_ref[0].T.astype(jnp.float32)                               # (SEQ, C)

    # Fused QKV projection (attention scale already folded into q columns).
    qkv = jnp.dot(xs, wqkv_ref[...],
                  preferred_element_type=jnp.float32)                 # (SEQ, 3*INNER)

    y = None                                                          # (C, SEQ) accumulator
    for h in range(NUM_HEADS):
        lo = h * DIM_HEAD
        qh = qkv[:, lo:lo + DIM_HEAD].astype(jnp.bfloat16)                      # (SEQ, D)
        kh = qkv[:, INNER + lo:INNER + lo + DIM_HEAD].astype(jnp.bfloat16)      # (SEQ, D)
        vh = qkv[:, 2 * INNER + lo:2 * INNER + lo + DIM_HEAD].astype(jnp.bfloat16)

        # scores: bf16 operands, f32 accumulation on the MXU (rhs-transposed matmul)
        s = lax.dot_general(qh, kh, _NT,
                            preferred_element_type=jnp.float32)       # (SEQ, SEQ)

        # numerically stable, un-normalized softmax (all f32)
        m = jnp.max(s, axis=-1, keepdims=True)
        p = jnp.exp(s - m)
        denom = jnp.sum(p, axis=-1, keepdims=True)                    # (SEQ, 1)

        # PV matmul in bf16; normalize the small (SEQ, D) output afterwards
        oh = jnp.dot(p.astype(jnp.bfloat16), vh,
                     preferred_element_type=jnp.float32)              # (SEQ, D)
        oh = oh * (1.0 / denom)                                       # exact reciprocal

        # output projection with the exit rearrange folded in:
        # (C, D) x (SEQ, D) contracted on d -> (C, SEQ), lane-dense result tile
        yh = lax.dot_general(wo_t_ref[:, lo:lo + DIM_HEAD], oh, _NT,
                             preferred_element_type=jnp.float32)      # (C, SEQ)
        y = yh if y is None else y + yh

    o_ref[0] = y.astype(o_ref.dtype)


def _attention_pallas(x_bcs, wqkv, wo_t):
    """x_bcs: (B, C, SEQ) -> (B, C, SEQ); one batch element per grid step."""
    b, c, s = x_bcs.shape
    return pl.pallas_call(
        _attn_kernel,
        out_shape=jax.ShapeDtypeStruct((b, c, s), x_bcs.dtype),
        grid=(b,),
        in_specs=[
            pl.BlockSpec((1, c, s), lambda i: (i, 0, 0)),
            pl.BlockSpec(wqkv.shape, lambda i: (0, 0)),
            pl.BlockSpec(wo_t.shape, lambda i: (0, 0)),
        ],
        out_specs=pl.BlockSpec((1, c, s), lambda i: (i, 0, 0)),
        compiler_params=pltpu.CompilerParams(
            dimension_semantics=("parallel",),   # batch shards across TCs on v7x
        ),
    )(x_bcs, wqkv, wo_t)


# ---------------- weight preparation (one-time, out of the per-call path) ----
def prepare_attention_weights(wq, wk, wv, wo):
    wqkv = jnp.concatenate([wq * SCALE, wk, wv], axis=1)   # (C, 3*INNER), scale folded
    wo_t = wo.T                                            # (C, INNER): folds exit rearrange
    return wqkv, wo_t


# ---------------- EinopsToAndFrom wrapper (glue in plain JAX) -----------------
# TODO(synk): the generic string-driven einops rearrange of the original module is
# specialized here to the 'b c h w' <-> 'b (h w) c' + Attention instantiation.
@jax.jit
def einops_to_and_from_forward(x_nchw, wqkv, wo_t):
    b, c, h, w = x_nchw.shape
    # 'b c h w -> b c (h w)' is a free row-major view; the '-> b (h w) c' transpose
    # (and its inverse) are folded into the kernel's matmul orientations.
    x_view = x_nchw.reshape(b, c, h * w)
    y_view = _attention_pallas(x_view, wqkv, wo_t)          # (B, C, SEQ)
    return y_view.reshape(b, c, h, w)                       # 'b c (h w) -> b c h w'


# ---------------- pure-JAX reference for verification -------------------------
def _reference_forward(x_nchw, wq, wk, wv, wo):
    b, c, h, w = x_nchw.shape
    xs = jnp.transpose(x_nchw, (0, 2, 3, 1)).reshape(b, h * w, c).astype(jnp.float32)
    q = xs @ wq
    k = xs @ wk
    v = xs @ wv
    q = q.reshape(b, h * w, NUM_HEADS, DIM_HEAD).transpose(0, 2, 1, 3)
    k = k.reshape(b, h * w, NUM_HEADS, DIM_HEAD).transpose(0, 2, 1, 3)
    v = v.reshape(b, h * w, NUM_HEADS, DIM_HEAD).transpose(0, 2, 1, 3)
    scores = jnp.einsum("bhqd,bhkd->bhqk", q, k) * SCALE
    attn = jax.nn.softmax(scores, axis=-1)
    out = jnp.einsum("bhqk,bhkd->bhqd", attn, v)
    out = out.transpose(0, 2, 1, 3).reshape(b, h * w, INNER)
    y = out @ wo
    return y.reshape(b, h, w, c).transpose(0, 3, 1, 2).astype(x_nchw.dtype)


if __name__ == "__main__":
    key = jax.random.PRNGKey(0)
    kx, kq, kk, kv, ko = jax.random.split(key, 5)

    # deterministic synthetic parameters (shapes per the wrapped attention fn)
    x = jax.random.normal(kx, (B, C, H, W), dtype=jnp.float32)
    wq = jax.random.normal(kq, (C, INNER), dtype=jnp.float32) * 0.1
    wk = jax.random.normal(kk, (C, INNER), dtype=jnp.float32) * 0.1
    wv = jax.random.normal(kv, (C, INNER), dtype=jnp.float32) * 0.1
    wo = jax.random.normal(ko, (INNER, C), dtype=jnp.float32) * 0.1

    wqkv, wo_t = prepare_attention_weights(wq, wk, wv, wo)   # hoisted, one time
    y = einops_to_and_from_forward(x, wqkv, wo_t)
    y = jax.block_until_ready(y)

    y_ref = _reference_forward(x, wq, wk, wv, wo)
    assert y.shape == x.shape, (y.shape, x.shape)
    max_err = float(jnp.max(jnp.abs(y - y_ref)))
    # residual error comes only from the bf16 operands of the QK^T / PV matmuls
    assert max_err < 2e-3, f"mismatch vs reference: max abs err = {max_err}"

    print("KERNEL_OK")
</pallas_src>

<mosaic_0001>
module attributes {stable_mosaic.version = 11 : i64} {
  func.func @_attn_kernel(%arg0: i32, %arg1: memref<1x32x256xf32, #tpu.memory_space<vmem>>, %arg2: memref<32x192xf32, #tpu.memory_space<vmem>>, %arg3: memref<32x64xf32, #tpu.memory_space<vmem>>, %arg4: memref<1x32x256xf32, #tpu.memory_space<vmem>>) attributes {dimension_semantics = [#tpu.dimension_semantics<parallel>], iteration_bounds = array<i64: 2>, scalar_prefetch = 0 : i64, scratch_operands = 0 : i64, tpu.core_type = #tpu.core_type<tc>, window_params = [{transform_indices = @transform_0, window_bounds = array<i64: 1, 32, 256>}, {pipeline_mode = #tpu.pipeline_mode<synchronous>, transform_indices = @transform_1, window_bounds = array<i64: 32, 192>}, {pipeline_mode = #tpu.pipeline_mode<synchronous>, transform_indices = @transform_2, window_bounds = array<i64: 32, 64>}, {transform_indices = @transform_3, window_bounds = array<i64: 1, 32, 256>}]} {
    %c0 = arith.constant 0 : index
    %c0_0 = arith.constant 0 : index
    %c0_1 = arith.constant 0 : index
    %0 = vector.load %arg1[%c0, %c0_0, %c0_1] : memref<1x32x256xf32, #tpu.memory_space<vmem>>, vector<1x32x256xf32>
    %1 = vector.shape_cast %0 : vector<1x32x256xf32> to vector<32x256xf32>
    %2 = tpu.transpose %1, [1, 0] : vector<32x256xf32> -> vector<256x32xf32>
    %c0_2 = arith.constant 0 : index
    %c0_3 = arith.constant 0 : index
    %3 = vector.load %arg2[%c0_2, %c0_3] : memref<32x192xf32, #tpu.memory_space<vmem>>, vector<32x192xf32>
    %cst = arith.constant dense<0.000000e+00> : vector<256x192xf32>
    %4 = tpu.matmul %2, %3, %cst {dimension_numbers = #tpu.dot_dimension_numbers<[1], [0], [0], [1], [0, 0, 1, 1], [], []>} : vector<256x32xf32>, vector<32x192xf32>, vector<256x192xf32> -> vector<256x192xf32>
    %5 = vector.extract_strided_slice %4 {offsets = [0, 0], sizes = [256, 32], strides = [1, 1]} : vector<256x192xf32> to vector<256x32xf32>
    %6 = arith.truncf %5 : vector<256x32xf32> to vector<256x32xbf16>
    %7 = vector.extract_strided_slice %4 {offsets = [0, 64], sizes = [256, 32], strides = [1, 1]} : vector<256x192xf32> to vector<256x32xf32>
    %8 = arith.truncf %7 : vector<256x32xf32> to vector<256x32xbf16>
    %9 = vector.extract_strided_slice %4 {offsets = [0, 128], sizes = [256, 32], strides = [1, 1]} : vector<256x192xf32> to vector<256x32xf32>
    %10 = arith.truncf %9 : vector<256x32xf32> to vector<256x32xbf16>
    %cst_4 = arith.constant dense<0.000000e+00> : vector<256x256xf32>
    %11 = tpu.matmul %6, %8, %cst_4 {dimension_numbers = #tpu.dot_dimension_numbers<[1], [1], [0], [0], [0, 0, 1, 0], [], []>} : vector<256x32xbf16>, vector<256x32xbf16>, vector<256x256xf32> -> vector<256x256xf32>
    %cst_5 = arith.constant dense<0xFF800000> : vector<256xf32>
    %12 = vector.multi_reduction <maximumf>, %11, %cst_5 [1] : vector<256x256xf32> to vector<256xf32>
    %13 = vector.shape_cast %12 : vector<256xf32> to vector<256x1xf32>
    %14 = vector.broadcast %13 : vector<256x1xf32> to vector<256x256xf32>
    %15 = arith.subf %11, %14 : vector<256x256xf32>
    %16 = math.exp %15 : vector<256x256xf32>
    %cst_6 = arith.constant dense<0.000000e+00> : vector<256xf32>
    %17 = vector.multi_reduction <add>, %16, %cst_6 [1] : vector<256x256xf32> to vector<256xf32>
    %18 = vector.shape_cast %17 : vector<256xf32> to vector<256x1xf32>
    %19 = arith.truncf %16 : vector<256x256xf32> to vector<256x256xbf16>
    %cst_7 = arith.constant dense<0.000000e+00> : vector<256x32xf32>
    %20 = tpu.matmul %19, %10, %cst_7 {dimension_numbers = #tpu.dot_dimension_numbers<[1], [0], [0], [1], [0, 0, 1, 1], [], []>} : vector<256x256xbf16>, vector<256x32xbf16>, vector<256x32xf32> -> vector<256x32xf32>
    %cst_8 = arith.constant 1.000000e+00 : f32
    %21 = vector.broadcast %cst_8 : f32 to vector<256x1xf32>
    %22 = arith.divf %21, %18 : vector<256x1xf32>
    %23 = vector.broadcast %22 : vector<256x1xf32> to vector<256x32xf32>
    %24 = arith.mulf %20, %23 : vector<256x32xf32>
    %c0_9 = arith.constant 0 : index
    %c0_10 = arith.constant 0 : index
    %25 = vector.load %arg3[%c0_9, %c0_10] : memref<32x64xf32, #tpu.memory_space<vmem>>, vector<32x32xf32>
    %cst_11 = arith.constant dense<0.000000e+00> : vector<32x256xf32>
    %26 = tpu.matmul %25, %24, %cst_11 {dimension_numbers = #tpu.dot_dimension_numbers<[1], [1], [0], [0], [0, 0, 1, 0], [], []>} : vector<32x32xf32>, vector<256x32xf32>, vector<32x256xf32> -> vector<32x256xf32>
    %27 = vector.extract_strided_slice %4 {offsets = [0, 32], sizes = [256, 32], strides = [1, 1]} : vector<256x192xf32> to vector<256x32xf32>
    %28 = arith.truncf %27 : vector<256x32xf32> to vector<256x32xbf16>
    %29 = vector.extract_strided_slice %4 {offsets = [0, 96], sizes = [256, 32], strides = [1, 1]} : vector<256x192xf32> to vector<256x32xf32>
    %30 = arith.truncf %29 : vector<256x32xf32> to vector<256x32xbf16>
    %31 = vector.extract_strided_slice %4 {offsets = [0, 160], sizes = [256, 32], strides = [1, 1]} : vector<256x192xf32> to vector<256x32xf32>
    %32 = arith.truncf %31 : vector<256x32xf32> to vector<256x32xbf16>
    %cst_12 = arith.constant dense<0.000000e+00> : vector<256x256xf32>
    %33 = tpu.matmul %28, %30, %cst_12 {dimension_numbers = #tpu.dot_dimension_numbers<[1], [1], [0], [0], [0, 0, 1, 0], [], []>} : vector<256x32xbf16>, vector<256x32xbf16>, vector<256x256xf32> -> vector<256x256xf32>
    %cst_13 = arith.constant dense<0xFF800000> : vector<256xf32>
    %34 = vector.multi_reduction <maximumf>, %33, %cst_13 [1] : vector<256x256xf32> to vector<256xf32>
    %35 = vector.shape_cast %34 : vector<256xf32> to vector<256x1xf32>
    %36 = vector.broadcast %35 : vector<256x1xf32> to vector<256x256xf32>
    %37 = arith.subf %33, %36 : vector<256x256xf32>
    %38 = math.exp %37 : vector<256x256xf32>
    %cst_14 = arith.constant dense<0.000000e+00> : vector<256xf32>
    %39 = vector.multi_reduction <add>, %38, %cst_14 [1] : vector<256x256xf32> to vector<256xf32>
    %40 = vector.shape_cast %39 : vector<256xf32> to vector<256x1xf32>
    %41 = arith.truncf %38 : vector<256x256xf32> to vector<256x256xbf16>
    %cst_15 = arith.constant dense<0.000000e+00> : vector<256x32xf32>
    %42 = tpu.matmul %41, %32, %cst_15 {dimension_numbers = #tpu.dot_dimension_numbers<[1], [0], [0], [1], [0, 0, 1, 1], [], []>} : vector<256x256xbf16>, vector<256x32xbf16>, vector<256x32xf32> -> vector<256x32xf32>
    %cst_16 = arith.constant 1.000000e+00 : f32
    %43 = vector.broadcast %cst_16 : f32 to vector<256x1xf32>
    %44 = arith.divf %43, %40 : vector<256x1xf32>
    %45 = vector.broadcast %44 : vector<256x1xf32> to vector<256x32xf32>
    %46 = arith.mulf %42, %45 : vector<256x32xf32>
    %c0_17 = arith.constant 0 : index
    %c32 = arith.constant 32 : index
    %47 = vector.load %arg3[%c0_17, %c32] : memref<32x64xf32, #tpu.memory_space<vmem>>, vector<32x32xf32>
    %cst_18 = arith.constant dense<0.000000e+00> : vector<32x256xf32>
    %48 = tpu.matmul %47, %46, %cst_18 {dimension_numbers = #tpu.dot_dimension_numbers<[1], [1], [0], [0], [0, 0, 1, 0], [], []>} : vector<32x32xf32>, vector<256x32xf32>, vector<32x256xf32> -> vector<32x256xf32>
    %49 = arith.addf %26, %48 : vector<32x256xf32>
    %c0_19 = arith.constant 0 : index
    %c0_20 = arith.constant 0 : index
    %c0_21 = arith.constant 0 : index
    %50 = vector.load %arg4[%c0_19, %c0_20, %c0_21] : memref<1x32x256xf32, #tpu.memory_space<vmem>>, vector<1x32x256xf32>
    %51 = vector.shape_cast %50 : vector<1x32x256xf32> to vector<32x256xf32>
    %52 = vector.shape_cast %49 : vector<32x256xf32> to vector<1x32x256xf32>
    tpu.vector_store %arg4[%c0_19, %c0_20, %c0_21], %52 {strides = array<i32>} : memref<1x32x256xf32, #tpu.memory_space<vmem>>, vector<1x32x256xf32>,
    return
  }
  func.func @transform_0(%arg0: i32) -> (i32, i32, i32) {
    %c0_i32 = arith.constant 0 : i32
    %c0_i32_0 = arith.constant 0 : i32
    %c0_i32_1 = arith.constant 0 : i32
    return %arg0, %c0_i32, %c0_i32_0 : i32, i32, i32
  }
  func.func @transform_1(%arg0: i32) -> (i32, i32) {
    %c0_i32 = arith.constant 0 : i32
    %c0_i32_0 = arith.constant 0 : i32
    %c0_i32_1 = arith.constant 0 : i32
    return %c0_i32, %c0_i32_0 : i32, i32
  }
  func.func @transform_2(%arg0: i32) -> (i32, i32) {
    %c0_i32 = arith.constant 0 : i32
    %c0_i32_0 = arith.constant 0 : i32
    %c0_i32_1 = arith.constant 0 : i32
    return %c0_i32, %c0_i32_0 : i32, i32
  }
  func.func @transform_3(%arg0: i32) -> (i32, i32, i32) {
    %c0_i32 = arith.constant 0 : i32
    %c0_i32_0 = arith.constant 0 : i32
    %c0_i32_1 = arith.constant 0 : i32
    return %arg0, %c0_i32, %c0_i32_0 : i32, i32, i32
  }
}

</mosaic_0001>

<bundles_post_ra>
// kernel: einops_to_and_from_forward.1
= control target key start
LH: loop header
LB: loop body
LE: loop exit
PB: predicated region body
PF: predicated region fallthrough
CT: control target
= control target key end

     0   :  { %s4228_s12 = smov 0   ;;  %s6173_s0 = inlined_call_operand.vmem [shape: f32[2,32,256], index: 0, kind: input, shape index: {}]   ;;  %s6174_s1 = inlined_call_operand.vmem [shape: f32[32,192], index: 1, kind: input, shape index: {}]   ;;  %s6175_s2 = inlined_call_operand.vmem [shape: f32[32,64], index: 2, kind: input, shape index: {}]   ;;  %s6176_s3 = inlined_call_operand.vmem [shape: f32[2,32,256], index: 3, kind: output, shape index: {}]  }
   0x1 LB: > { %s3203_s13 = sadd.s32 4294967295, %s4202_s12   ;;  %p3207_p0 = scmp.ge.s32.totalorder %s4202_s12, 1  ;;  %s4202_s12 = sphi %s4228_s12, %s13_s12  }
   0x2   : > { %p137_p1 = scmp.lt.s32.totalorder %s4202_s12, 3 }
   0x4   : > { %p138_p2 = pnand %p3207_p0, %p137_p1 }
   0x6   : > { %141 = sbr.rel (%p138_p2) target bundleno = 1835 (0x72b), region = 32 }
   0xb   : > { %p161_p3 = scmp.lt.s32.totalorder %s3203_s13, 1  ;;  %v251_v0 = vld [vmem:[%s6174_s1 + $0x38] sm:$0xff]  ;;  %v250_v1 = vld [vmem:[%s6174_s1 + $0x30] sm:$0xff]  ;;  %v249_v2 = vld [vmem:[%s6174_s1 + $0x28] sm:$0xff]  ;;  %v4204_v4 = vmov 0.0   ;;  %vm252_vm0 = vcmask 261120  }
   0xc   : > { %373 = vmatprep.subr.mxu0 %v251_v0  ;;  %v248_v3 = vld [vmem:[%s6174_s1 + $0x20] sm:$0xff]  ;;  %413 = vmatprep.mubr.f32.mxu0 %v4204_v4  ;;  %v247_v5 = vld [vmem:[%s6174_s1 + $0x18] sm:$0xff]  ;;  %v246_v6 = vld [vmem:[%s6174_s1 + $0x10] sm:$0xff]  ;;  %s4205_s7 = smov 64   ;;  %s4206_s8 = smov 32  }
   0xd   : > { %s6493_s13 = smov (!%p161_p3, %s3203_s13), 1  ;;  %374 = vmatpush1.msra.mxu0 %v250_v1  ;;  %v245_v7 = vld [vmem:[%s6174_s1 + $0x8] sm:$0xff]  ;;  %v244_v8 = vld [vmem:[%s6174_s1] sm:$0xff]  ;;  %s4207_s9 = smov 96  }
   0xe   : > { %375 = vmatprep.subr.mxu0 %v249_v2  ;;  %s3350_s26 = sshll.u32 %s6493_s13, 6 }
   0xf   : > { %376 = vmatpush1.msra.mxu0 %v248_v3  ;;  %s165_s4 = scalar_lea.vmem %s6173_s0, %s3350_s26  ;;  %s6160_s22 = scalar_lea.vmem %s6176_s3, %s3350_s26 }
  0x10   : > { %377 = vmatprep.subr.mxu0 %v247_v5  ;;  %v172_v9 = vld [vmem:[%s165_s4] sm:$0xff]  ;;  %v173_v10 = vld [vmem:[%s165_s4 + $0x8] sm:$0xff]  ;;  %v174_v11 = vld [vmem:[%s165_s4 + $0x10] sm:$0xff] }
  0x11   : > { %378 = vmatpush1.msra.mxu0 %v246_v6  ;;  %180 = vxpose.xlu0.b32.start [1/4] (short) %v172_v9, 128  ;;  %v175_v12 = vld [vmem:[%s165_s4 + $0x18] sm:$0xff]  ;;  %v176_v13 = vld [vmem:[%s165_s4 + $0x20] sm:$0xff]  ;;  %v177_v14 = vld [vmem:[%s165_s4 + $0x28] sm:$0xff] }
  0x12   : > { %379 = vmatprep.subr.mxu0 %v245_v7  ;;  %212 = vxpose.xlu1.b32.start [1/4] (short) %v173_v10, 128  ;;  %v178_v15 = vld [vmem:[%s165_s4 + $0x30] sm:$0xff]  ;;  %v179_v16 = vld [vmem:[%s165_s4 + $0x38] sm:$0xff] }
  0x13   : > { %380 = vmatpush1.msra.mxu0 %v244_v8 }
  0x15   : > { %181 = vxpose.xlu0.b32.cont [2/4] (short) %v174_v11, 128 }
  0x16   : > { %213 = vxpose.xlu1.b32.cont [2/4] (short) %v175_v12, 128 }
  0x19   : > { %182 = vxpose.xlu0.b32.cont [3/4] (short) %v176_v13, 128 }
  0x1a   : > { %214 = vxpose.xlu1.b32.cont [3/4] (short) %v177_v14, 128 }
  0x1d   : > { %183 = vxpose.xlu0.b32.end [4/4] (short) %v178_v15, 128 }
  0x1e   : > { %215 = vxpose.xlu1.b32.end [4/4] (short) %v179_v16, 128 }
  0x8d   : > { %v196_v17 = vpop.trf.xlu0 }
  0x8e   : > { %3212 = vmatmul.mubr.msk.f32.vlgmr.msra.gmra.mxu0 %vm252_vm0, %v196_v17  ;;  %v228_v26 = vpop.trf.xlu1 }
  0x8f   : > { %419 = vmatprep.mubr.f32.mxu0 %v4204_v4 }
  0x91   : > { %v197_v18 = vpop.trf.xlu0 }
  0x92   : > { %3213 = vmatmul.mubr.msk.f32.gmra.mxu0 %vm252_vm0, %v197_v18  ;;  %v229_v28 = vpop.trf.xlu1 }
  0x93   : > { %425 = vmatprep.mubr.f32.mxu0 %v4204_v4 }
  0x95   : > { %v198_v19 = vpop.trf.xlu0 }
  0x96   : > { %3214 = vmatmul.mubr.msk.f32.gmra.mxu0 %vm252_vm0, %v198_v19  ;;  %v230_v31 = vpop.trf.xlu1 }
  0x97   : > { %431 = vmatprep.mubr.f32.mxu0 %v4204_v4 }
  0x99   : > { %v199_v20 = vpop.trf.xlu0 }
  0x9a   : > { %3215 = vmatmul.mubr.msk.f32.gmra.mxu0 %vm252_vm0, %v199_v20  ;;  %v231_v33 = vpop.trf.xlu1 }
  0x9b   : > { %437 = vmatprep.mubr.f32.mxu0 %v4204_v4 }
  0x9d   : > { %v200_v21 = vpop.trf.xlu0 }
  0x9e   : > { %3216 = vmatmul.mubr.msk.f32.gmra.mxu0 %vm252_vm0, %v200_v21  ;;  %v232_v36 = vpop.trf.xlu1 }
  0x9f   : > { %443 = vmatprep.mubr.f32.mxu0 %v4204_v4 }
  0xa1   : > { %v201_v22 = vpop.trf.xlu0 }
  0xa2   : > { %3217 = vmatmul.mubr.msk.f32.gmra.mxu0 %vm252_vm0, %v201_v22  ;;  %v233_v38 = vpop.trf.xlu1 }
  0xa3   : > { %449 = vmatprep.mubr.f32.mxu0 %v4204_v4 }
  0xa5   : > { %v202_v23 = vpop.trf.xlu0 }
  0xa6   : > { %3218 = vmatmul.mubr.msk.f32.gmra.mxu0 %vm252_vm0, %v202_v23  ;;  %v234_v39 = vpop.trf.xlu1 }
  0xa7   : > { %455 = vmatprep.mubr.f32.mxu0 %v4204_v4 }
  0xa9   : > { %v203_v24 = vpop.trf.xlu0 }
  0xaa   : > { %3219 = vmatmul.mubr.msk.f32.gmra.mxu0 %vm252_vm0, %v203_v24  ;;  %v235_v40 = vpop.trf.xlu1 }
  0xab   : > { %461 = vmatprep.mubr.f32.mxu0 %v4204_v4 }
  0xad   : > { %v204_v25 = vpop.trf.xlu0 }
  0xae   : > { %3220 = vmatmul.mubr.msk.f32.gmra.mxu0 %vm252_vm0, %v204_v25  ;;  %v236_v41 = vpop.trf.xlu1 }
  0xaf   : > { %467 = vmatprep.mubr.f32.mxu0 %v4204_v4 }
  0xb1   : > { %v205_v27 = vpop.trf.xlu0 }
  0xb2   : > { %3221 = vmatmul.mubr.msk.f32.gmra.mxu0 %vm252_vm0, %v205_v27  ;;  %v237_v42 = vpop.trf.xlu1 }
  0xb3   : > { %473 = vmatprep.mubr.f32.mxu0 %v4204_v4 }
  0xb5   : > { %v206_v29 = vpop.trf.xlu0 }
  0xb6   : > { %3222 = vmatmul.mubr.msk.f32.gmra.mxu0 %vm252_vm0, %v206_v29  ;;  %v238_v43 = vpop.trf.xlu1 }
  0xb7   : > { %479 = vmatprep.mubr.f32.mxu0 %v4204_v4 }
  0xb9   : > { %v207_v30 = vpop.trf.xlu0 }
  0xba   : > { %3223 = vmatmul.mubr.msk.f32.gmra.mxu0 %vm252_vm0, %v207_v30  ;;  %v239_v44 = vpop.trf.xlu1 }
  0xbb   : > { %485 = vmatprep.mubr.f32.mxu0 %v4204_v4 }
  0xbd   : > { %v208_v32 = vpop.trf.xlu0 }
  0xbe   : > { %3224 = vmatmul.mubr.msk.f32.gmra.mxu0 %vm252_vm0, %v208_v32  ;;  %v240_v45 = vpop.trf.xlu1 }
  0xbf   : > { %491 = vmatprep.mubr.f32.mxu0 %v4204_v4 }
  0xc1   : > { %v209_v34 = vpop.trf.xlu0 }
  0xc2   : > { %3225 = vmatmul.mubr.msk.f32.gmra.mxu0 %vm252_vm0, %v209_v34  ;;  %v241_v46 = vpop.trf.xlu1 }
  0xc3   : > { %497 = vmatprep.mubr.f32.mxu0 %v4204_v4 }
  0xc5   : > { %v210_v35 = vpop.trf.xlu0 }
  0xc6   : > { %3226 = vmatmul.mubr.msk.f32.gmra.mxu0 %vm252_vm0, %v210_v35  ;;  %v242_v47 = vpop.trf.xlu1 }
  0xc7   : > { %503 = vmatprep.mubr.f32.mxu0 %v4204_v4 }
  0xc9   : > { %v211_v37 = vpop.trf.xlu0 }
  0xca   : > { %3227 = vmatmul.mubr.msk.f32.gmra.mxu0 %vm252_vm0, %v211_v37  ;;  %v243_v48 = vpop.trf.xlu1 }
  0xcb   : > { %509 = vmatprep.mubr.f32.mxu0 %v4204_v4 }
  0xce   : > { %3228 = vmatmul.mubr.msk.f32.gmra.mxu0 %vm252_vm0, %v228_v26 }
  0xcf   : > { %515 = vmatprep.mubr.f32.mxu0 %v4204_v4 }
  0xd2   : > { %3229 = vmatmul.mubr.msk.f32.gmra.mxu0 %vm252_vm0, %v229_v28 }
  0xd3   : > { %521 = vmatprep.mubr.f32.mxu0 %v4204_v4 }
  0xd6   : > { %3230 = vmatmul.mubr.msk.f32.gmra.mxu0 %vm252_vm0, %v230_v31 }
  0xd7   : > { %527 = vmatprep.mubr.f32.mxu0 %v4204_v4 }
  0xda   : > { %3231 = vmatmul.mubr.msk.f32.gmra.mxu0 %vm252_vm0, %v231_v33 }
  0xdb   : > { %533 = vmatprep.mubr.f32.mxu0 %v4204_v4 }
  0xde   : > { %3232 = vmatmul.mubr.msk.f32.gmra.mxu0 %vm252_vm0, %v232_v36 }
  0xdf   : > { %539 = vmatprep.mubr.f32.mxu0 %v4204_v4 }
  0xe2   : > { %3233 = vmatmul.mubr.msk.f32.gmra.mxu0 %vm252_vm0, %v233_v38 }
  0xe3   : > { %545 = vmatprep.mubr.f32.mxu0 %v4204_v4 }
  0xe6   : > { %3234 = vmatmul.mubr.msk.f32.gmra.mxu0 %vm252_vm0, %v234_v39 }
  0xe7   : > { %551 = vmatprep.mubr.f32.mxu0 %v4204_v4 }
  0xea   : > { %3235 = vmatmul.mubr.msk.f32.gmra.mxu0 %vm252_vm0, %v235_v40 }
  0xeb   : > { %557 = vmatprep.mubr.f32.mxu0 %v4204_v4 }
  0xee   : > { %3236 = vmatmul.mubr.msk.f32.gmra.mxu0 %vm252_vm0, %v236_v41 }
  0xef   : > { %563 = vmatprep.mubr.f32.mxu0 %v4204_v4 }
  0xf2   : > { %3237 = vmatmul.mubr.msk.f32.gmra.mxu0 %vm252_vm0, %v237_v42 }
  0xf3   : > { %569 = vmatprep.mubr.f32.mxu0 %v4204_v4 }
  0xf6   : > { %3238 = vmatmul.mubr.msk.f32.gmra.mxu0 %vm252_vm0, %v238_v43 }
  0xf7   : > { %575 = vmatprep.mubr.f32.mxu0 %v4204_v4 }
  0xfa   : > { %3239 = vmatmul.mubr.msk.f32.gmra.mxu0 %vm252_vm0, %v239_v44 }
  0xfb   : > { %581 = vmatprep.mubr.f32.mxu0 %v4204_v4 }
  0xfe   : > { %3240 = vmatmul.mubr.msk.f32.gmra.mxu0 %vm252_vm0, %v240_v45 }
  0xff   : > { %587 = vmatprep.mubr.f32.mxu0 %v4204_v4 }
 0x102   : > { %3241 = vmatmul.mubr.msk.f32.gmra.mxu0 %vm252_vm0, %v241_v46 }
 0x103   : > { %593 = vmatprep.mubr.f32.mxu0 %v4204_v4 }
 0x106   : > { %3242 = vmatmul.mubr.msk.f32.gmra.mxu0 %vm252_vm0, %v242_v47 }
 0x107   : > { %599 = vmatprep.mubr.f32.mxu0 %v4204_v4 }
 0x10a   : > { %3243 = vmatmul.mubr.msk.f32.gmra.mxu0 %vm252_vm0, %v243_v48 }
 0x14e   : > { %v415_v49 = vpop.f32.mrf.mxu0 }
 0x150   : > { %v4332_v50 = vpop.f32.mrf.mxu0 }
 0x152   : > { %v421_v51 = vpop.f32.mrf.mxu0 }
 0x153   : > { %v4334_v52 = vpack.c.bf16 %v421_v51, %v415_v49 }
 0x154   : > { %v4336_v53 = vpop.f32.mrf.mxu0 }
 0x155   : > { %3368 = vmatprep.mubr.msk.bf16.mxu1 %vm252_vm0, %v4334_v52 }
 0x156   : > { %v427_v54 = vpop.f32.mrf.mxu0 }
 0x158   : > { %v4340_v55 = vpop.f32.mrf.mxu0 }
 0x15a   : > { %v433_v56 = vpop.f32.mrf.mxu0 }
 0x15b   : > { %v4342_v57 = vpack.c.bf16 %v433_v56, %v427_v54 }
 0x15c   : > { %v4344_v58 = vpop.f32.mrf.mxu0 }
 0x15e   : > { %v439_v59 = vpop.f32.mrf.mxu0 }
 0x160   : > { %v4346_v60 = vpop.f32.mrf.mxu0 }
 0x162   : > { %v445_v61 = vpop.f32.mrf.mxu0 }
 0x163   : > { %v4348_v62 = vpack.c.bf16 %v445_v61, %v439_v59 }
 0x164   : > { %v4350_v63 = vpop.f32.mrf.mxu0 }
 0x166   : > { %v451_v0 = vpop.f32.mrf.mxu0 }
 0x168   : > { %v4352_v1 = vpop.f32.mrf.mxu0 }
 0x16a   : > { %v457_v2 = vpop.f32.mrf.mxu0 }
 0x16b   : > { %v4354_v3 = vpack.c.bf16 %v457_v2, %v451_v0 }
 0x16c   : > { %v4356_v4 = vpop.f32.mrf.mxu0 }
 0x16e   : > { %v463_v5 = vpop.f32.mrf.mxu0 }
 0x170   : > { %v4358_v6 = vpop.f32.mrf.mxu0 }
 0x172   : > { %v469_v7 = vpop.f32.mrf.mxu0 }
 0x173   : > { %v4360_v8 = vpack.c.bf16 %v469_v7, %v463_v5 }
 0x174   : > { %v4362_v9 = vpop.f32.mrf.mxu0 }
 0x176   : > { %v475_v10 = vpop.f32.mrf.mxu0 }
 0x178   : > { %v4364_v11 = vpop.f32.mrf.mxu0 }
 0x17a   : > { %v481_v12 = vpop.f32.mrf.mxu0 }
 0x17b   : > { %v4366_v13 = vpack.c.bf16 %v481_v12, %v475_v10 }
 0x17c   : > { %v4368_v14 = vpop.f32.mrf.mxu0 }
 0x17e   : > { %v487_v15 = vpop.f32.mrf.mxu0 }
 0x180   : > { %v4370_v16 = vpop.f32.mrf.mxu0 }
 0x182   : > { %v493_v17 = vpop.f32.mrf.mxu0 }
 0x183   : > { %v4372_v18 = vpack.c.bf16 %v493_v17, %v487_v15 }
 0x184   : > { %v495_v19 = vpop.f32.mrf.mxu0 }
 0x186   : > { %v499_v20 = vpop.f32.mrf.mxu0 }
 0x188   : > { %v501_v21 = vpop.f32.mrf.mxu0 }
 0x18a   : > { %v505_v22 = vpop.f32.mrf.mxu0 }
 0x18b   : > { %v4374_v23 = vpack.c.bf16 %v505_v22, %v499_v20 }
 0x18c   : > { %v507_v24 = vpop.f32.mrf.mxu0 }
 0x18d   : > { %668 = vrot.lane.b32.xlu0 %v4374_v23, %s4205_s7  ;;  %v4416_v22 = vpack.c.bf16 %v507_v24, %v501_v21 }
 0x18e   : > { %v511_v25 = vpop.f32.mrf.mxu0 }
 0x190   : > { %v4378_v26 = vpop.f32.mrf.mxu0 }
 0x192   : > { %v517_v27 = vpop.f32.mrf.mxu0 }
 0x194   : > { %v4380_v28 = vpop.f32.mrf.mxu0 }
 0x196   : > { %v523_v29 = vpop.f32.mrf.mxu0 }
 0x198   : > { %v4382_v30 = vpop.f32.mrf.mxu0 }
 0x19a   : > { %v529_v31 = vpop.f32.mrf.mxu0 }
 0x19b   : > { %v4406_v12 = vpack.c.bf16 %v529_v31, %v523_v29  ;;  %v628_v29 = vpack.c.bf16 %v495_v19, %v4370_v16  ;;  %v626_v16 = vpack.c.bf16 %v4362_v9, %v4358_v6  ;;  %v624_v6 = vpack.c.bf16 %v4350_v63, %v4346_v60 }
 0x19c   : > { %v4384_v32 = vpop.f32.mrf.mxu0  ;;  %v4485_v60 = vpack.c.bf16 %v4380_v28, %v4378_v26  ;;  %v4494_v63 = vpack.c.bf16 %v4336_v53, %v4332_v50 }
 0x19e   : > { %v535_v33 = vpop.f32.mrf.mxu0 }
 0x1a0   : > { %v4386_v34 = vpop.f32.mrf.mxu0 }
 0x1a2   : > { %v541_v35 = vpop.f32.mrf.mxu0 }
 0x1a3   : > { %v4402_v5 = vpack.c.bf16 %v541_v35, %v535_v33  ;;  %v4418_v33 = vpack.c.bf16 %v517_v27, %v511_v25  ;;  %v4438_v25 = vpack.c.bf16 %v4368_v14, %v4364_v11  ;;  %v4456_v11 = vpack.c.bf16 %v4356_v4, %v4352_v1 }
 0x1a4   : > { %v4388_v36 = vpop.f32.mrf.mxu0  ;;  %v4472_v1 = vpack.c.bf16 %v4384_v32, %v4382_v30  ;;  %v4480_v4 = vpack.c.bf16 %v4344_v58, %v4340_v55 }
 0x1a5   : > { %v4460_v14 = vpack.c.bf16 %v4388_v36, %v4386_v34 }
 0x1a6   : > { %v547_v37 = vpop.f32.mrf.mxu0 }
 0x1a8   : > { %v549_v38 = vpop.f32.mrf.mxu0 }
 0x1aa   : > { %v553_v39 = vpop.f32.mrf.mxu0 }
 0x1ab   : > { %v4398_v61 = vpack.c.bf16 %v553_v39, %v547_v37 }
 0x1ac   : > { %v555_v40 = vpop.f32.mrf.mxu0 }
 0x1ad   : > { %v633_v19 = vpack.c.bf16 %v555_v40, %v549_v38 }
 0x1ae   : > { %v559_v41 = vpop.f32.mrf.mxu0 }
 0x1b0   : > { %v561_v42 = vpop.f32.mrf.mxu0 }
 0x1b2   : > { %v565_v43 = vpop.f32.mrf.mxu0 }
 0x1b3   : > { %v4394_v54 = vpack.c.bf16 %v565_v43, %v559_v41 }
 0x1b4   : > { %v567_v44 = vpop.f32.mrf.mxu0 }
 0x1b5   : > { %v4440_v27 = vpack.c.bf16 %v567_v44, %v561_v42 }
 0x1b6   : > { %v571_v45 = vpop.f32.mrf.mxu0 }
 0x1b8   : > { %v573_v46 = vpop.f32.mrf.mxu0 }
 0x1ba   : > { %v577_v47 = vpop.f32.mrf.mxu0 }
 0x1bb   : > { %v4390_v48 = vpack.c.bf16 %v577_v47, %v571_v45 }
 0x1bc   : > { %v579_v49 = vpop.f32.mrf.mxu0 }
 0x1bd   : > { %680 = vrot.lane.b32.xlu0 %v4390_v48, %s4205_s7  ;;  %v635_v24 = vpack.c.bf16 %v579_v49, %v573_v46 }
 0x1be   : > { %v583_v51 = vpop.f32.mrf.mxu0 }
 0x1c0   : > { %v585_v56 = vpop.f32.mrf.mxu0 }
 0x1c1   : > { %678 = vrot.lane.b32.xlu0 %v4394_v54, %s4205_s7 }
 0x1c2   : > { %v589_v59 = vpop.f32.mrf.mxu0 }
 0x1c3   : > { %v4430_v21 = vpack.c.bf16 %v589_v59, %v583_v51 }
 0x1c4   : > { %v591_v0 = vpop.f32.mrf.mxu0 }
 0x1c5   : > { %676 = vrot.lane.b32.xlu0 %v4398_v61, %s4205_s7  ;;  %v4421_v35 = vpack.c.bf16 %v591_v0, %v585_v56 }
 0x1c6   : > { %v595_v2 = vpop.f32.mrf.mxu0 }
 0x1c8   : > { %v597_v7 = vpop.f32.mrf.mxu0 }
 0x1c9   : > { %674 = vrot.lane.b32.xlu0 %v4402_v5, %s4205_s7 }
 0x1ca   : > { %v601_v10 = vpop.f32.mrf.mxu0 }
 0x1cb   : > { %v4408_v15 = vpack.c.bf16 %v601_v10, %v595_v2 }
 0x1cc   : > { %v603_v17 = vpop.f32.mrf.mxu0 }
 0x1cd   : > { %v4410_v20 = vpack.c.bf16 %v603_v17, %v597_v7  ;;  %672 = vrot.lane.b32.xlu0 %v4406_v12, %s4205_s7  ;;  %684 = vrot.lane.b32.xlu1 %v4408_v15, %s4205_s7 }
 0x1cf   : > { %3400 = vmatprep.subr.bf16.mxu0 %v4410_v20 }
 0x1d0   : > { %3401 = vmatpush3.bf16.msra.mxu0 %v4416_v22 }
 0x1d1   : > { %670 = vrot.lane.b32.xlu0 %v4418_v33, %s4205_s7  ;;  %666 = vrot.lane.b32.xlu1 %v4372_v18, %s4205_s7 }
 0x1d2   : > { %3402 = vmatprep.subr.bf16.mxu0 %v4421_v35 }
 0x1d4   : > { %3403 = vmatpush3.bf16.msra.mxu0 %v628_v29 }
 0x1d5   : > { %1714 = vrot.lane.b32.xlu0 %v4408_v15, %s4206_s8  ;;  %682 = vrot.lane.b32.xlu1 %v4430_v21, %s4205_s7 }
 0x1d6   : > { %3404 = vmatprep.subr.bf16.mxu0 %v635_v24 }
 0x1d8   : > { %3405 = vmatpush3.bf16.msra.mxu0 %v4438_v25 }
 0x1d9   : > { %1712 = vrot.lane.b32.xlu0 %v4430_v21, %s4206_s8  ;;  %664 = vrot.lane.b32.xlu1 %v4366_v13, %s4205_s7 }
 0x1da   : > { %3406 = vmatprep.subr.bf16.mxu0 %v4440_v27 }
 0x1dc   : > { %3407 = vmatpush3.bf16.msra.mxu0 %v626_v16 }
 0x1dd   : > { %1710 = vrot.lane.b32.xlu0 %v4390_v48, %s4206_s8  ;;  %662 = vrot.lane.b32.xlu1 %v4360_v8, %s4205_s7 }
 0x1de   : > { %3408 = vmatprep.subr.bf16.mxu0 %v633_v19 }
 0x1e0   : > { %3409 = vmatpush3.bf16.msra.mxu0 %v4456_v11 }
 0x1e1   : > { %1708 = vrot.lane.b32.xlu0 %v4394_v54, %s4206_s8  ;;  %660 = vrot.lane.b32.xlu1 %v4354_v3, %s4205_s7 }
 0x1e2   : > { %3410 = vmatprep.subr.bf16.mxu0 %v4460_v14 }
 0x1e4   : > { %3411 = vmatpush3.bf16.msra.mxu0 %v624_v6 }
 0x1e5   : > { %1706 = vrot.lane.b32.xlu0 %v4398_v61, %s4206_s8  ;;  %658 = vrot.lane.b32.xlu1 %v4348_v62, %s4205_s7 }
 0x1e6   : > { %3412 = vmatprep.subr.bf16.mxu0 %v4472_v1 }
 0x1e8   : > { %3413 = vmatpush3.bf16.msra.mxu0 %v4480_v4 }
 0x1e9   : > { %1704 = vrot.lane.b32.xlu0 %v4402_v5, %s4206_s8  ;;  %656 = vrot.lane.b32.xlu1 %v4342_v57, %s4205_s7 }
 0x1ea   : > { %3414 = vmatprep.subr.bf16.mxu0 %v4485_v60 }
 0x1ec   : > { %3415 = vmatpush3.bf16.msra.mxu0 %v4494_v63 }
 0x1ed   : > { %1702 = vrot.lane.b32.xlu0 %v4406_v12, %s4206_s8  ;;  %654 = vrot.lane.b32.xlu1 %v4334_v52, %s4205_s7 }
 0x1f1   : > { %1700 = vrot.lane.b32.xlu0 %v4418_v33, %s4206_s8  ;;  %1698 = vrot.lane.b32.xlu1 %v4374_v23, %s4206_s8 }
 0x1f5   : > { %1654 = vrot.lane.b32.xlu0 %v4342_v57, %s4207_s9  ;;  %1696 = vrot.lane.b32.xlu1 %v4372_v18, %s4206_s8 }
 0x1f9   : > { %1658 = vrot.lane.b32.xlu0 %v4354_v3, %s4207_s9  ;;  %1694 = vrot.lane.b32.xlu1 %v4366_v13, %s4206_s8 }
 0x1fd   : > { %1662 = vrot.lane.b32.xlu0 %v4366_v13, %s4207_s9  ;;  %1692 = vrot.lane.b32.xlu1 %v4360_v8, %s4206_s8 }
 0x1ff   : > { %v669_v50 = vpop.permute.xlu0 %668 }
 0x200   : > { %v756_v30 = vsel %vm252_vm0, %v669_v50, 0 }
 0x201   : > { %1666 = vrot.lane.b32.xlu0 %v4374_v23, %s4207_s9  ;;  %1690 = vrot.lane.b32.xlu1 %v4354_v3, %s4206_s8 }
 0x205   : > { %1670 = vrot.lane.b32.xlu0 %v4406_v12, %s4207_s9  ;;  %1688 = vrot.lane.b32.xlu1 %v4348_v62, %s4206_s8 }
 0x209   : > { %1674 = vrot.lane.b32.xlu0 %v4398_v61, %s4207_s9  ;;  %1686 = vrot.lane.b32.xlu1 %v4342_v57, %s4206_s8 }
 0x20d   : > { %1678 = vrot.lane.b32.xlu0 %v4390_v48, %s4207_s9  ;;  %1684 = vrot.lane.b32.xlu1 %v4334_v52, %s4206_s8 }
 0x211   : > { %2449 = vrot.lane.b32.xlu0 %v628_v29, %s4207_s9  ;;  %1652 = vrot.lane.b32.xlu1 %v4334_v52, %s4207_s9 }
 0x215   : > { %2463 = vrot.lane.b32.xlu0 %v635_v24, %s4207_s9  ;;  %1656 = vrot.lane.b32.xlu1 %v4348_v62, %s4207_s9 }
 0x219   : > { %2445 = vrot.lane.b32.xlu0 %v626_v16, %s4207_s9  ;;  %1660 = vrot.lane.b32.xlu1 %v4360_v8, %s4207_s9 }
 0x21d   : > { %2459 = vrot.lane.b32.xlu0 %v633_v19, %s4207_s9  ;;  %1664 = vrot.lane.b32.xlu1 %v4372_v18, %s4207_s9 }
 0x221   : > { %2441 = vrot.lane.b32.xlu0 %v624_v6, %s4207_s9  ;;  %1668 = vrot.lane.b32.xlu1 %v4418_v33, %s4207_s9 }
 0x225   : > { %1682 = vrot.lane.b32.xlu0 %v4408_v15, %s4207_s9  ;;  %1672 = vrot.lane.b32.xlu1 %v4402_v5, %s4207_s9 }
 0x229   : > { %1676 = vrot.lane.b32.xlu1 %v4394_v54, %s4207_s9  ;;  %2467 = vrot.lane.b32.xlu0 %v4410_v20, %s4207_s9 }
 0x22d   : > { %1680 = vrot.lane.b32.xlu1 %v4430_v21, %s4207_s9 }
 0x22f   : > { %v681_v53 = vpop.permute.xlu0 %680 }
 0x231   : > { %2451 = vrot.lane.b32.xlu1 %v4416_v22, %s4207_s9 }
 0x233   : > { %v679_v55 = vpop.permute.xlu0 %678 }
 0x235   : > { %2465 = vrot.lane.b32.xlu1 %v4421_v35, %s4207_s9 }
 0x237   : > { %v677_v58 = vpop.permute.xlu0 %676 }
 0x239   : > { %2447 = vrot.lane.b32.xlu1 %v4438_v25, %s4207_s9 }
 0x23b   : > { %v675_v9 = vpop.permute.xlu0 %674 }
 0x23d   : > { %2461 = vrot.lane.b32.xlu1 %v4440_v27, %s4207_s9 }
 0x23f   : > { %v673_v26 = vpop.permute.xlu0 %672  ;;  %v685_v28 = vpop.permute.xlu1 %684 }
 0x240   : > { %3784 = vmatprep.subr.msk.bf16.mxu1 %vm252_vm0, %v685_v28 }
 0x241   : > { %2443 = vrot.lane.b32.xlu1 %v4456_v11, %s4207_s9  ;;  %3353 = vmatpush3.bf16.xpose.msra.mxu1 %v756_v30 }
 0x243   : > { %v671_v31 = vpop.permute.xlu0 %670  ;;  %v667_v32 = vpop.permute.xlu1 %666 }
 0x244   : > { %v753_v37 = vsel %vm252_vm0, %v667_v32, 0 }
 0x245   : > { %2457 = vrot.lane.b32.xlu1 %v4460_v14, %s4207_s9 }
 0x247   : > { %v1715_v34 = vpop.permute.xlu0 %1714  ;;  %v683_v36 = vpop.permute.xlu1 %682 }
 0x248   : > { %3785 = vmatprep.subr.msk.bf16.mxu1 %vm252_vm0, %v683_v36 }
 0x249   : > { %3355 = vmatpush3.bf16.xpose.msra.mxu1 %v753_v37 }
 0x24a   : > { %3786 = vmatprep.subr.msk.bf16.mxu1 %vm252_vm0, %v681_v53 }
 0x24b   : > { %v1713_v38 = vpop.permute.xlu0 %1712  ;;  %v665_v39 = vpop.permute.xlu1 %664 }
 0x24c   : > { %v750_v41 = vsel %vm252_vm0, %v665_v39, 0 }
 0x24f   : > { %v1711_v40 = vpop.permute.xlu0 %1710  ;;  %v663_v43 = vpop.permute.xlu1 %662 }
 0x250   : > { %v747_v45 = vsel %vm252_vm0, %v663_v43, 0 }
 0x251   : > { %3357 = vmatpush3.bf16.xpose.msra.mxu1 %v750_v41 }
 0x252   : > { %3787 = vmatprep.subr.msk.bf16.mxu1 %vm252_vm0, %v679_v55 }
 0x253   : > { %v1709_v42 = vpop.permute.xlu0 %1708  ;;  %v661_v47 = vpop.permute.xlu1 %660 }
 0x254   : > { %v744_v51 = vsel %vm252_vm0, %v661_v47, 0 }
 0x257   : > { %v1707_v44 = vpop.permute.xlu0 %1706  ;;  %v659_v59 = vpop.permute.xlu1 %658 }
 0x258   : > { %v741_v2 = vsel %vm252_vm0, %v659_v59, 0 }
 0x259   : > { %3359 = vmatpush3.bf16.xpose.msra.mxu1 %v747_v45 }
 0x25a   : > { %3788 = vmatprep.subr.msk.bf16.mxu1 %vm252_vm0, %v677_v58 }
 0x25b   : > { %v4580_v46 = vpop.permute.xlu0 %1704  ;;  %v657_v10 = vpop.permute.xlu1 %656 }
 0x25c   : > { %v738_v20 = vsel %vm252_vm0, %v657_v10, 0 }
 0x25f   : > { %v4582_v49 = vpop.permute.xlu0 %1702  ;;  %v655_v35 = vpop.permute.xlu1 %654 }
 0x260   : > { %v735_v24 = vsel %vm252_vm0, %v655_v35, 0 }
 0x261   : > { %3361 = vmatpush3.bf16.xpose.msra.mxu1 %v744_v51 }
 0x262   : > { %3789 = vmatprep.subr.msk.bf16.mxu1 %vm252_vm0, %v675_v9 }
 0x263   : > { %v4586_v56 = vpop.permute.xlu0 %1700  ;;  %v1699_v27 = vpop.permute.xlu1 %1698 }
 0x264   : > { %v1786_v19 = vsel %vm252_vm0, %v1699_v27, 0 }
 0x267   : > { %v4588_v0 = vpop.permute.xlu0 %1654  ;;  %v1697_v14 = vpop.permute.xlu1 %1696 }
 0x268   : > { %v1783_v50 = vsel %vm252_vm0, %v1697_v14, 0 }
 0x269   : > { %3363 = vmatpush3.bf16.xpose.msra.mxu1 %v741_v2 }
 0x26a   : > { %3790 = vmatprep.subr.msk.bf16.mxu1 %vm252_vm0, %v673_v26 }
 0x26b   : > { %v4592_v7 = vpop.permute.xlu0 %1658  ;;  %v1695_v53 = vpop.permute.xlu1 %1694 }
 0x26c   : > { %v1780_v58 = vsel %vm252_vm0, %v1695_v53, 0 }
 0x26f   : > { %v4594_v17 = vpop.permute.xlu0 %1662  ;;  %v1693_v9 = vpop.permute.xlu1 %1692 }
 0x270   : > { %v1777_v28 = vsel %vm252_vm0, %v1693_v9, 0 }
 0x271   : > { %3365 = vmatpush3.bf16.xpose.msra.mxu1 %v738_v20 }
 0x272   : > { %3791 = vmatprep.subr.msk.bf16.mxu1 %vm252_vm0, %v671_v31 }
 0x273   : > { %v4598_v22 = vpop.permute.xlu0 %1666  ;;  %v1691_v30 = vpop.permute.xlu1 %1690 }
 0x274   : > { %v1774_v31 = vsel %vm252_vm0, %v1691_v30, 0 }
 0x277   : > { %v4600_v29 = vpop.permute.xlu0 %1670 }
 0x279   : > { %3367 = vmatpush3.bf16.xpose.msra.mxu1 %v735_v24 }
 0x27a   : > { %3792 = vmatprep.subr.msk.bf16.mxu1 %vm252_vm0, %v1715_v34 }
 0x27b   : > { %v4604_v25 = vpop.permute.xlu0 %1674 }
 0x27f   : > { %v4606_v16 = vpop.permute.xlu0 %1678 }
 0x280   : > { %3369 = vmatmul.mubr.msk.bf16.vlgmr.msra.gmra.mxu1 %vm252_vm0, %v4334_v52 }
 0x281   : > { %3370 = vmatprep.mubr.msk.bf16.mxu1 %vm252_vm0, %v4342_v57  ;;  %3513 = vmatpush3.bf16.xpose.msra.mxu1 %v1786_v19 }
 0x282   : > { %3793 = vmatprep.subr.msk.bf16.mxu1 %vm252_vm0, %v1713_v38 }
 0x283   : > { %v4614_v11 = vpop.permute.xlu0 %2449 }
 0x287   : > { %v4616_v6 = vpop.permute.xlu0 %2463 }
 0x288   : > { %3371 = vmatmul.mubr.msk.bf16.gmra.mxu1 %vm252_vm0, %v4342_v57 }
 0x289   : > { %3372 = vmatprep.mubr.msk.bf16.mxu1 %vm252_vm0, %v4348_v62  ;;  %3515 = vmatpush3.bf16.xpose.msra.mxu1 %v1783_v50 }
 0x28a   : > { %3794 = vmatprep.subr.msk.bf16.mxu1 %vm252_vm0, %v1711_v40 }
 0x28b   : > { %v4624_v52 = vpop.permute.xlu0 %2445 }
 0x28f   : > { %v4626_v55 = vpop.permute.xlu0 %2459 }
 0x290   : > { %3373 = vmatmul.mubr.msk.bf16.gmra.mxu1 %vm252_vm0, %v4348_v62 }
 0x291   : > { %3374 = vmatprep.mubr.msk.bf16.mxu1 %vm252_vm0, %v4354_v3  ;;  %3517 = vmatpush3.bf16.xpose.msra.mxu1 %v1780_v58 }
 0x292   : > { %3795 = vmatprep.subr.msk.bf16.mxu1 %vm252_vm0, %v1709_v42 }
 0x293   : > { %v4634_v57 = vpop.permute.xlu0 %2441 }
 0x294   : > { %6246 = vst [vmem:[#allocation2_spill] sm:$0xff] %v4634_v57 }
 0x297   : > { %v4636_v26 = vpop.permute.xlu0 %1682 }
 0x298   : > { %3375 = vmatmul.mubr.msk.bf16.gmra.mxu1 %vm252_vm0, %v4354_v3  ;;  %v1689_v3 = vpop.permute.xlu1 %1688 }
 0x299   : > { %3376 = vmatprep.mubr.msk.bf16.mxu1 %vm252_vm0, %v4360_v8  ;;  %3519 = vmatpush3.bf16.xpose.msra.mxu1 %v1777_v28  ;;  %v1771_v32 = vsel %vm252_vm0, %v1689_v3, 0 }
 0x29a   : > { %3796 = vmatprep.subr.msk.bf16.mxu1 %vm252_vm0, %v1707_v44 }
 0x29b   : > { %v2468_v62 = vpop.permute.xlu0 %2467 }
 0x29c   : > { %3560 = vmatprep.subr.bf16.mxu0 %v2468_v62 }
 0x2a0   : > { %3377 = vmatmul.mubr.msk.bf16.gmra.mxu1 %vm252_vm0, %v4360_v8  ;;  %v1687_v8 = vpop.permute.xlu1 %1686 }
 0x2a1   : > { %3378 = vmatprep.mubr.msk.bf16.mxu1 %vm252_vm0, %v4366_v13  ;;  %3521 = vmatpush3.bf16.xpose.msra.mxu1 %v1774_v31  ;;  %v1768_v34 = vsel %vm252_vm0, %v1687_v8, 0 }
 0x2a2   : > { %3797 = vmatprep.subr.msk.bf16.mxu1 %vm252_vm0, %v4580_v46 }
 0x2a8   : > { %3379 = vmatmul.mubr.msk.bf16.gmra.mxu1 %vm252_vm0, %v4366_v13  ;;  %v1685_v13 = vpop.permute.xlu1 %1684 }
 0x2a9   : > { %3380 = vmatprep.mubr.msk.bf16.mxu1 %vm252_vm0, %v4372_v18  ;;  %3523 = vmatpush3.bf16.xpose.msra.mxu1 %v1771_v32  ;;  %v1765_v36 = vsel %vm252_vm0, %v1685_v13, 0 }
 0x2aa   : > { %3798 = vmatprep.subr.msk.bf16.mxu1 %vm252_vm0, %v4582_v49 }
 0x2b0   : > { %3381 = vmatmul.mubr.msk.bf16.gmra.mxu1 %vm252_vm0, %v4372_v18  ;;  %v1653_v18 = vpop.permute.xlu1 %1652 }
 0x2b1   : > { %3382 = vmatprep.mubr.msk.bf16.mxu1 %vm252_vm0, %v4374_v23  ;;  %3525 = vmatpush3.bf16.xpose.msra.mxu1 %v1768_v34 }
 0x2b2   : > { %3799 = vmatprep.subr.msk.bf16.mxu1 %vm252_vm0, %v4586_v56 }
 0x2b8   : > { %3383 = vmatmul.mubr.msk.bf16.gmra.mxu1 %vm252_vm0, %v4374_v23  ;;  %v1657_v23 = vpop.permute.xlu1 %1656 }
 0x2b9   : > { %3384 = vmatprep.mubr.msk.bf16.mxu1 %vm252_vm0, %v4418_v33  ;;  %3527 = vmatpush3.bf16.xpose.msra.mxu1 %v1765_v36 }
 0x2c0   : > { %3385 = vmatmul.mubr.msk.bf16.gmra.mxu1 %vm252_vm0, %v4418_v33 }
 0x2c1   : > { %3386 = vmatprep.mubr.msk.bf16.mxu1 %vm252_vm0, %v4406_v12 }
 0x2c8   : > { %3387 = vmatmul.mubr.msk.bf16.gmra.mxu1 %vm252_vm0, %v4406_v12 }
 0x2c9   : > { %3388 = vmatprep.mubr.msk.bf16.mxu1 %vm252_vm0, %v4402_v5 }
 0x2d0   : > { %3389 = vmatmul.mubr.msk.bf16.gmra.mxu1 %vm252_vm0, %v4402_v5 }
 0x2d1   : > { %3390 = vmatprep.mubr.msk.bf16.mxu1 %vm252_vm0, %v4398_v61 }
 0x2d8   : > { %3391 = vmatmul.mubr.msk.bf16.gmra.mxu1 %vm252_vm0, %v4398_v61 }
 0x2d9   : > { %3392 = vmatprep.mubr.msk.bf16.mxu1 %vm252_vm0, %v4394_v54 }
 0x2e0   : > { %3393 = vmatmul.mubr.msk.bf16.gmra.mxu1 %vm252_vm0, %v4394_v54 }
 0x2e1   : > { %3394 = vmatprep.mubr.msk.bf16.mxu1 %vm252_vm0, %v4390_v48 }
 0x2e8   : > { %3395 = vmatmul.mubr.msk.bf16.gmra.mxu1 %vm252_vm0, %v4390_v48  ;;  %v1661_v48 = vpop.permute.xlu1 %1660 }
 0x2e9   : > { %3396 = vmatprep.mubr.msk.bf16.mxu1 %vm252_vm0, %v4430_v21 }
 0x2ec   : > { %v1665_v54 = vpop.permute.xlu1 %1664 }
 0x2f0   : > { %3397 = vmatmul.mubr.msk.bf16.gmra.mxu1 %vm252_vm0, %v4430_v21  ;;  %v1669_v61 = vpop.permute.xlu1 %1668 }
 0x2f1   : > { %3398 = vmatprep.mubr.msk.bf16.mxu1 %vm252_vm0, %v4408_v15 }
 0x2f4   : > { %v1673_v38 = vpop.permute.xlu1 %1672 }
 0x2f8   : > { %3399 = vmatmul.mubr.msk.bf16.gmra.mxu1 %vm252_vm0, %v4408_v15  ;;  %v1677_v59 = vpop.permute.xlu1 %1676 }
 0x2f9   : > { %3528 = vmatprep.mubr.msk.bf16.mxu1 %vm252_vm0, %v1653_v18 }
 0x2fc   : > { %v1681_v19 = vpop.permute.xlu1 %1680 }
 0x300   : > { %3529 = vmatmul.mubr.msk.bf16.vlgmr.msra.gmra.mxu1 %vm252_vm0, %v1653_v18 }
 0x301   : > { %3530 = vmatprep.mubr.msk.bf16.mxu1 %vm252_vm0, %v4588_v0 }
 0x308   : > { %3531 = vmatmul.mubr.msk.bf16.gmra.mxu1 %vm252_vm0, %v4588_v0 }
 0x309   : > { %3532 = vmatprep.mubr.msk.bf16.mxu1 %vm252_vm0, %v1657_v23 }
 0x310   : > { %3533 = vmatmul.mubr.msk.bf16.gmra.mxu1 %vm252_vm0, %v1657_v23 }
 0x311   : > { %3534 = vmatprep.mubr.msk.bf16.mxu1 %vm252_vm0, %v4592_v7 }
 0x318   : > { %3535 = vmatmul.mubr.msk.bf16.gmra.mxu1 %vm252_vm0, %v4592_v7 }
 0x319   : > { %3536 = vmatprep.mubr.msk.bf16.mxu1 %vm252_vm0, %v1661_v48 }
 0x320   : > { %3537 = vmatmul.mubr.msk.bf16.gmra.mxu1 %vm252_vm0, %v1661_v48 }
 0x321   : > { %3538 = vmatprep.mubr.msk.bf16.mxu1 %vm252_vm0, %v4594_v17 }
 0x328   : > { %3539 = vmatmul.mubr.msk.bf16.gmra.mxu1 %vm252_vm0, %v4594_v17 }
 0x329   : > { %3540 = vmatprep.mubr.msk.bf16.mxu1 %vm252_vm0, %v1665_v54 }
 0x330   : > { %3541 = vmatmul.mubr.msk.bf16.gmra.mxu1 %vm252_vm0, %v1665_v54 }
 0x331   : > { %3542 = vmatprep.mubr.msk.bf16.mxu1 %vm252_vm0, %v4598_v22 }
 0x338   : > { %3543 = vmatmul.mubr.msk.bf16.gmra.mxu1 %vm252_vm0, %v4598_v22 }
 0x339   : > { %3544 = vmatprep.mubr.msk.bf16.mxu1 %vm252_vm0, %v1669_v61 }
 0x340   : > { %v4725_v5 = vpop.f32.mrf.mxu1  ;;  %3545 = vmatmul.mubr.msk.bf16.gmra.mxu1 %vm252_vm0, %v1669_v61 }
 0x341   : > { %3546 = vmatprep.mubr.msk.bf16.mxu1 %vm252_vm0, %v4600_v29 }
 0x342   : > { %v4730_v12 = vpop.f32.mrf.mxu1 }
 0x343   : > { %v975_v15 = vmax.f32 %v4725_v5, %v4730_v12 }
 0x344   : > { %v4734_v33 = vpop.f32.mrf.mxu1 }
 0x345   : > { %976 = vmax.xlane.f32.xlu1 %v975_v15 }
 0x346   : > { %v4736_v21 = vpop.f32.mrf.mxu1 }
 0x347   : > { %v978_v37 = vmax.f32 %v4734_v33, %v4736_v21 }
 0x348   : > { %v4740_v39 = vpop.f32.mrf.mxu1  ;;  %3547 = vmatmul.mubr.msk.bf16.gmra.mxu1 %vm252_vm0, %v4600_v29 }
 0x349   : > { %3548 = vmatprep.mubr.msk.bf16.mxu1 %vm252_vm0, %v1673_v38  ;;  %979 = vmax.xlane.f32.xlu0 %v978_v37 }
 0x34a   : > { %v4745_v40 = vpop.f32.mrf.mxu1 }
 0x34b   : > { %v981_v41 = vmax.f32 %v4740_v39, %v4745_v40 }
 0x34c   : > { %v4749_v42 = vpop.f32.mrf.mxu1 }
 0x34d   : > { %982 = vmax.xlane.f32.xlu0 %v981_v41 }
 0x34e   : > { %v4751_v43 = vpop.f32.mrf.mxu1 }
 0x34f   : > { %v984_v44 = vmax.f32 %v4749_v42, %v4751_v43 }
 0x350   : > { %v4755_v45 = vpop.f32.mrf.mxu1  ;;  %3549 = vmatmul.mubr.msk.bf16.gmra.mxu1 %vm252_vm0, %v1673_v38 }
 0x351   : > { %985 = vmax.xlane.f32.xlu1 %v984_v44  ;;  %3550 = vmatprep.mubr.msk.bf16.mxu1 %vm252_vm0, %v4604_v25 }
 0x352   : > { %v4760_v46 = vpop.f32.mrf.mxu1 }
 0x353   : > { %v987_v47 = vmax.f32 %v4755_v45, %v4760_v46 }
 0x354   : > { %v4764_v49 = vpop.f32.mrf.mxu1 }
 0x355   : > { %988 = vmax.xlane.f32.xlu0 %v987_v47 }
 0x356   : > { %v4766_v51 = vpop.f32.mrf.mxu1 }
 0x357   : > { %v990_v56 = vmax.f32 %v4764_v49, %v4766_v51 }
 0x358   : > { %v4770_v0 = vpop.f32.mrf.mxu1  ;;  %3551 = vmatmul.mubr.msk.bf16.gmra.mxu1 %vm252_vm0, %v4604_v25 }
 0x359   : > { %991 = vmax.xlane.f32.xlu1 %v990_v56  ;;  %3552 = vmatprep.mubr.msk.bf16.mxu1 %vm252_vm0, %v1677_v59 }
 0x35a   : > { %v4775_v2 = vpop.f32.mrf.mxu1 }
 0x35b   : > { %v993_v7 = vmax.f32 %v4770_v0, %v4775_v2 }
 0x35c   : > { %v4779_v10 = vpop.f32.mrf.mxu1 }
 0x35d   : > { %994 = vmax.xlane.f32.xlu0 %v993_v7 }
 0x35e   : > { %v4781_v17 = vpop.f32.mrf.mxu1 }
 0x35f   : > { %v996_v20 = vmax.f32 %v4779_v10, %v4781_v17 }
 0x360   : > { %v4785_v22 = vpop.f32.mrf.mxu1  ;;  %3553 = vmatmul.mubr.msk.bf16.gmra.mxu1 %vm252_vm0, %v1677_v59 }
 0x361   : > { %997 = vmax.xlane.f32.xlu1 %v996_v20  ;;  %3554 = vmatprep.mubr.msk.bf16.mxu1 %vm252_vm0, %v4606_v16 }
 0x362   : > { %v4790_v35 = vpop.f32.mrf.mxu1 }
 0x363   : > { %v999_v29 = vmax.f32 %v4785_v22, %v4790_v35 }
 0x364   : > { %v4794_v24 = vpop.f32.mrf.mxu1 }
 0x365   : > { %1000 = vmax.xlane.f32.xlu0 %v999_v29 }
 0x366   : > { %v4796_v25 = vpop.f32.mrf.mxu1 }
 0x367   : > { %v1002_v27 = vmax.f32 %v4794_v24, %v4796_v25 }
 0x368   : > { %v4800_v14 = vpop.f32.mrf.mxu1  ;;  %3555 = vmatmul.mubr.msk.bf16.gmra.mxu1 %vm252_vm0, %v4606_v16 }
 0x369   : > { %1003 = vmax.xlane.f32.xlu1 %v1002_v27  ;;  %3556 = vmatprep.mubr.msk.bf16.mxu1 %vm252_vm0, %v1681_v19 }
 0x36a   : > { %v4805_v50 = vpop.f32.mrf.mxu1 }
 0x36b   : > { %v1005_v53 = vmax.f32 %v4800_v14, %v4805_v50 }
 0x36c   : > { %v4809_v58 = vpop.f32.mrf.mxu1 }
 0x36d   : > { %1006 = vmax.xlane.f32.xlu0 %v1005_v53 }
 0x36e   : > { %v4811_v9 = vpop.f32.mrf.mxu1 }
 0x36f   : > { %v1008_v28 = vmax.f32 %v4809_v58, %v4811_v9 }
 0x370   : > { %v4815_v62 = vpop.f32.mrf.mxu1  ;;  %3557 = vmatmul.mubr.msk.bf16.gmra.mxu1 %vm252_vm0, %v1681_v19 }
 0x371   : > { %6247 = vst [vmem:[#allocation3_spill] sm:$0xff] %v4815_v62  ;;  %1009 = vmax.xlane.f32.xlu1 %v1008_v28  ;;  %3558 = vmatprep.mubr.msk.bf16.mxu1 %vm252_vm0, %v4636_v26 }
 0x372   : > { %v4820_v16 = vpop.f32.mrf.mxu1 }
 0x373   : > { %6248 = vst [vmem:[#allocation4_spill] sm:$0xff] %v4820_v16  ;;  %v1011_v30 = vmax.f32 %v4815_v62, %v4820_v16 }
 0x374   : > { %v4824_v31 = vpop.f32.mrf.mxu1 }
 0x375   : > { %6249 = vst [vmem:[#allocation5_spill] sm:$0xff] %v4824_v31  ;;  %1012 = vmax.xlane.f32.xlu0 %v1011_v30 }
 0x376   : > { %v4826_v3 = vpop.f32.mrf.mxu1 }
 0x377   : > { %6250 = vst [vmem:[#allocation6_spill] sm:$0xff] %v4826_v3  ;;  %v1014_v32 = vmax.f32 %v4824_v31, %v4826_v3 }
 0x378   : > { %v4830_v8 = vpop.f32.mrf.mxu1  ;;  %3559 = vmatmul.mubr.msk.bf16.gmra.mxu1 %vm252_vm0, %v4636_v26 }
 0x379   : > { %6251 = vst [vmem:[#allocation7_spill] sm:$0xff] %v4830_v8  ;;  %1015 = vmax.xlane.f32.xlu1 %v1014_v32  ;;  %v4892_v32 = vpop.permute.xlu1 %2451 }
 0x37a   : > { %v4834_v34 = vpop.f32.mrf.mxu1 }
 0x37b   : > { %6252 = vst [vmem:[#allocation8_spill] sm:$0xff] %v4834_v34  ;;  %v1017_v13 = vmax.f32 %v4830_v8, %v4834_v34 }
 0x37c   : > { %v4838_v36 = vpop.f32.mrf.mxu1 }
 0x37d   : > { %6253 = vst [vmem:[#allocation9_spill] sm:$0xff] %v4838_v36  ;;  %1018 = vmax.xlane.f32.xlu0 %v1017_v13  ;;  %v4902_v34 = vpop.permute.xlu1 %2465 }
 0x37e   : > { %v4840_v18 = vpop.f32.mrf.mxu1 }
 0x37f   : > { %6254 = vst [vmem:[#allocation10_spill] sm:$0xff] %v4840_v18  ;;  %v1020_v23 = vmax.f32 %v4838_v36, %v4840_v18 }
 0x380   : > { %v4844_v48 = vpop.f32.mrf.mxu1 }
 0x381   : > { %6255 = vst [vmem:[#allocation11_spill] sm:$0xff] %v4844_v48  ;;  %1021 = vmax.xlane.f32.xlu1 %v1020_v23 }
 0x382   : > { %v4846_v54 = vpop.f32.mrf.mxu1 }
 0x383   : > { %6256 = vst [vmem:[#allocation12_spill] sm:$0xff] %v4846_v54  ;;  %v1023_v18 = vmax.f32 %v4844_v48, %v4846_v54  ;;  %v4914_v54 = vpop.permute.xlu1 %2447 }
 0x384   : > { %v4848_v26 = vpop.f32.mrf.mxu1 }
 0x386   : > { %v4850_v61 = vpop.f32.mrf.mxu1 }
 0x387   : > { %6257 = vst [vmem:[#allocation13_spill] sm:$0xff] %v4850_v61  ;;  %v1026_v3 = vmax.f32 %v4848_v26, %v4850_v61 }
 0x388   : > { %v4852_v15 = vpop.f32.mrf.mxu1 }
 0x389   : > { %6258 = vst [vmem:[#allocation14_spill] sm:$0xff] %v4852_v15 }
 0x38a   : > { %v4854_v37 = vpop.f32.mrf.mxu1 }
 0x38b   : > { %6259 = vst [vmem:[#allocation15_spill] sm:$0xff] %v4854_v37  ;;  %v1029_v31 = vmax.f32 %v4852_v15, %v4854_v37  ;;  %v4930_v15 = vpop.permute.xlu1 %2461 }
 0x38c   : > { %v4856_v38 = vpop.f32.mrf.mxu1 }
 0x38e   : > { %v4858_v41 = vpop.f32.mrf.mxu1 }
 0x38f   : > { %6260 = vst [vmem:[#allocation16_spill] sm:$0xff] %v4858_v41  ;;  %v1032_v48 = vmax.f32 %v4856_v38, %v4858_v41 }
 0x390   : > { %v4860_v44 = vpop.f32.mrf.mxu1 }
 0x392   : > { %2439 = vrot.lane.b32.xlu1 %v4480_v4, %s4207_s9  ;;  %v4864_v47 = vpop.f32.mrf.mxu1 }
 0x393   : > { %6261 = vst [vmem:[#allocation17_spill] sm:$0xff] %v4864_v47  ;;  %2455 = vrot.lane.b32.xlu0 %v4472_v1, %s4207_s9 }
 0x394   : > { %v4868_v56 = vpop.f32.mrf.mxu1 }
 0x396   : > { %v4870_v59 = vpop.f32.mrf.mxu1 }
 0x397   : > { %6262 = vst [vmem:[#allocation18_spill] sm:$0xff] %v4870_v59 }
 0x398   : > { %v4872_v7 = vpop.f32.mrf.mxu1 }
 0x399   : > { %6263 = vst [vmem:[#allocation19_spill] sm:$0xff] %v4872_v7 }
 0x39a   : > { %v4874_v20 = vpop.f32.mrf.mxu1 }
 0x39b   : > { %6264 = vst [vmem:[#allocation20_spill] sm:$0xff] %v4874_v20 }
 0x39c   : > { %v4876_v29 = vpop.f32.mrf.mxu1 }
 0x39e   : > { %v4878_v27 = vpop.f32.mrf.mxu1 }
 0x39f   : > { %6265 = vst [vmem:[#allocation21_spill] sm:$0xff] %v4878_v27 }
 0x3a0   : > { %v4880_v19 = vpop.f32.mrf.mxu1 }
 0x3a1   : > { %6266 = vst [vmem:[#allocation22_spill] sm:$0xff] %v4880_v19 }
 0x3a2   : > { %v4882_v4 = vpop.f32.mrf.mxu1 }
 0x3a3   : > { %6267 = vst [vmem:[#allocation23_spill] sm:$0xff] %v4882_v4 }
 0x3a4   : > { %v4884_v53 = vpop.f32.mrf.mxu1 }
 0x3a6   : > { %v4886_v28 = vpop.f32.mrf.mxu1 }
 0x3a7   : > { %6268 = vst [vmem:[#allocation24_spill] sm:$0xff] %v4886_v28 }
 0x3a8   : > { %v4888_v1 = vpop.f32.mrf.mxu1 }
 0x3aa   : > { %v4890_v30 = vpop.f32.mrf.mxu1 }
 0x3ab   : > { %6269 = vst [vmem:[#allocation25_spill] sm:$0xff] %v4890_v30 }
 0x3ac   : > { %v4894_v13 = vpop.f32.mrf.mxu1 }
 0x3ad   : > { %6270 = vst [vmem:[#allocation26_spill] sm:$0xff] %v4894_v13 }
 0x3ae   : > { %v4896_v23 = vpop.f32.mrf.mxu1 }
 0x3af   : > { %6271 = vst [vmem:[#allocation27_spill] sm:$0xff] %v4896_v23 }
 0x3b0   : > { %v4900_v36 = vpop.f32.mrf.mxu1 }
 0x3b1   : > { %6272 = vst [vmem:[#allocation28_spill] sm:$0xff] %v4900_v36 }
 0x3b2   : > { %v4904_v8 = vpop.f32.mrf.mxu1  ;;  %1024 = vmax.xlane.f32.xlu0 %v1023_v18  ;;  %v1035_v18 = vmax.f32 %v4860_v44, %v4864_v47 }
 0x3b3   : > { %6273 = vst [vmem:[#allocation29_spill] sm:$0xff] %v4904_v8 }
 0x3b4   : > { %v4910_v16 = vpop.f32.mrf.mxu1 }
 0x3b5   : > { %6274 = vst [vmem:[#allocation30_spill] sm:$0xff] %v4910_v16 }
 0x3b6   : > { %1027 = vmax.xlane.f32.xlu1 %v1026_v3  ;;  %v4912_v62 = vpop.f32.mrf.mxu1  ;;  %1030 = vmax.xlane.f32.xlu0 %v1029_v31  ;;  %v1038_v3 = vmax.f32 %v4868_v56, %v4870_v59  ;;  %v1041_v31 = vmax.f32 %v4872_v7, %v4874_v20  ;;  %v4942_v20 = vpop.permute.xlu1 %2443 }
 0x3b7   : > { %6275 = vst [vmem:[#allocation31_spill] sm:$0xff] %v4912_v62 }
 0x3b8   : > { %v4920_v57 = vpop.f32.mrf.mxu1 }
 0x3b9   : > { %6276 = vst [vmem:[#allocation32_spill] sm:$0xff] %v4920_v57 }
 0x3ba   : > { %1033 = vmax.xlane.f32.xlu1 %v1032_v48  ;;  %v4922_v61 = vpop.f32.mrf.mxu1  ;;  %1036 = vmax.xlane.f32.xlu0 %v1035_v18  ;;  %v1044_v48 = vmax.f32 %v4876_v29, %v4878_v27  ;;  %v1047_v18 = vmax.f32 %v4880_v19, %v4882_v4  ;;  %v4958_v19 = vpop.permute.xlu1 %2457 }
 0x3bb   : > { %6277 = vst [vmem:[#allocation33_spill] sm:$0xff] %v4922_v61 }
 0x3bc   : > { %v4928_v37 = vpop.f32.mrf.mxu1 }
 0x3be   : > { %1039 = vmax.xlane.f32.xlu1 %v1038_v3  ;;  %v4932_v41 = vpop.f32.mrf.mxu1  ;;  %1042 = vmax.xlane.f32.xlu0 %v1041_v31  ;;  %v1050_v3 = vmax.f32 %v4884_v53, %v4886_v28  ;;  %v1053_v31 = vmax.f32 %v4888_v1, %v4890_v30 }
 0x3c0   : > { %v4938_v47 = vpop.f32.mrf.mxu1 }
 0x3c2   : > { %1045 = vmax.xlane.f32.xlu1 %v1044_v48  ;;  %v4940_v59 = vpop.f32.mrf.mxu1  ;;  %1048 = vmax.xlane.f32.xlu0 %v1047_v18  ;;  %v1056_v48 = vmax.f32 %v4894_v13, %v4896_v23  ;;  %v1059_v18 = vmax.f32 %v4900_v36, %v4904_v8 }
 0x3c3   : > { %6278 = vst [vmem:[#allocation34_spill] sm:$0xff] %v4940_v59 }
 0x3c4   : > { %v4948_v7 = vpop.f32.mrf.mxu1 }
 0x3c6   : > { %1051 = vmax.xlane.f32.xlu1 %v1050_v3  ;;  %v4950_v27 = vpop.f32.mrf.mxu1  ;;  %1054 = vmax.xlane.f32.xlu0 %v1053_v31  ;;  %v1062_v3 = vmax.f32 %v4910_v16, %v4912_v62  ;;  %v1065_v31 = vmax.f32 %v4920_v57, %v4922_v61  ;;  %v2005_v62 = vmax.f32 %v4938_v47, %v4940_v59 }
 0x3c8   : > { %v4956_v4 = vpop.f32.mrf.mxu1 }
 0x3ca   : > { %1057 = vmax.xlane.f32.xlu1 %v1056_v48  ;;  %v4960_v28 = vpop.f32.mrf.mxu1  ;;  %1060 = vmax.xlane.f32.xlu0 %v1059_v18  ;;  %v1068_v18 = vmax.f32 %v4928_v37, %v4932_v41 }
 0x3cc   : > { %v4966_v30 = vpop.f32.mrf.mxu1 }
 0x3ce   : > { %1063 = vmax.xlane.f32.xlu1 %v1062_v3  ;;  %v4968_v23 = vpop.f32.mrf.mxu1  ;;  %v977_v8 = vpop.xlane.xlu1 %976  ;;  %1066 = vmax.xlane.f32.xlu0 %v1065_v31 }
 0x3cf   : > { %v1071_v36 = vsub.f32 %v4725_v5, %v977_v8  ;;  %v1072_v48 = vsub.f32 %v4730_v12, %v977_v8  ;;  %v2008_v8 = vmax.f32 %v4948_v7, %v4950_v27  ;;  %v2014_v31 = vmax.f32 %v4966_v30, %v4968_v23 }
 0x3d0   : > { %v4976_v16 = vpop.f32.mrf.mxu1 }
 0x3d1   : > { %v1135_v61 = vmul.f32 1.442695, %v1071_v36  ;;  %v1137_v57 = vmul.f32 1.442695, %v1072_v48 }
 0x3d2   : > { %1069 = vmax.xlane.f32.xlu1 %v1068_v18  ;;  %v4978_v3 = vpop.f32.mrf.mxu1  ;;  %2006 = vmax.xlane.f32.xlu0 %v2005_v62  ;;  %v980_v13 = vpop.xlane.xlu0 %979 }
 0x3d3   : > { %3812 = vpow2.f32 %v1135_v61  ;;  %v1073_v5 = vsub.f32 %v4734_v33, %v980_v13  ;;  %v1074_v12 = vsub.f32 %v4736_v21, %v980_v13 }
 0x3d4   : > { %3814 = vpow2.f32 %v1137_v57  ;;  %v4986_v59 = vpop.f32.mrf.mxu1  ;;  %v2011_v57 = vmax.f32 %v4956_v4, %v4960_v28 }
 0x3d5   : > { %6279 = vst [vmem:[#allocation35_spill] sm:$0xff] %v4986_v59  ;;  %v1139_v36 = vmul.f32 1.442695, %v1073_v5  ;;  %v1141_v48 = vmul.f32 1.442695, %v1074_v12 }
 0x3d6   : > { %2009 = vmax.xlane.f32.xlu1 %v2008_v8  ;;  %v4988_v18 = vpop.f32.mrf.mxu1  ;;  %2015 = vmax.xlane.f32.xlu0 %v2014_v31  ;;  %v983_v62 = vpop.xlane.xlu0 %982 }
 0x3d7   : > { %6280 = vst [vmem:[#allocation36_spill] sm:$0xff] %v4988_v18  ;;  %3816 = vpow2.f32 %v1139_v36  ;;  %v2020_v33 = vmax.f32 %v4986_v59, %v4988_v18  ;;  %v1075_v21 = vsub.f32 %v4740_v39, %v983_v62  ;;  %v1076_v61 = vsub.f32 %v4745_v40, %v983_v62 }
 0x3d8   : > { %3818 = vpow2.f32 %v1141_v48  ;;  %v4996_v13 = vpop.f32.mrf.mxu1  ;;  %v2017_v40 = vmax.f32 %v4976_v16, %v4978_v3 }
 0x3d9   : > { %6281 = vst [vmem:[#allocation37_spill] sm:$0xff] %v4996_v13  ;;  %v1143_v5 = vmul.f32 1.442695, %v1075_v21  ;;  %v1145_v12 = vmul.f32 1.442695, %v1076_v61 }
 0x3da   : > { %2012 = vmax.xlane.f32.xlu1 %v2011_v57  ;;  %v4998_v8 = vpop.f32.mrf.mxu1  ;;  %v986_v31 = vpop.xlane.xlu1 %985  ;;  %2021 = vmax.xlane.f32.xlu0 %v2020_v33 }
 0x3db   : > { %6282 = vst [vmem:[#allocation38_spill] sm:$0xff] %v4998_v8  ;;  %3820 = vpow2.f32 %v1143_v5  ;;  %v1077_v36 = vsub.f32 %v4749_v42, %v986_v31  ;;  %v1078_v39 = vsub.f32 %v4751_v43, %v986_v31  ;;  %v2023_v5 = vmax.f32 %v4996_v13, %v4998_v8 }
 0x3dc   : > { %3822 = vpow2.f32 %v1145_v12  ;;  %v5004_v62 = vpop.f32.mrf.mxu1 }
 0x3dd   : > { %6283 = vst [vmem:[#allocation39_spill] sm:$0xff] %v5004_v62  ;;  %v1147_v48 = vmul.f32 1.442695, %v1077_v36  ;;  %v1149_v59 = vmul.f32 1.442695, %v1078_v39 }
 0x3de   : > { %2018 = vmax.xlane.f32.xlu1 %v2017_v40  ;;  %v5006_v21 = vpop.f32.mrf.mxu1  ;;  %v989_v61 = vpop.xlane.xlu0 %988 }
 0x3df   : > { %6284 = vst [vmem:[#allocation40_spill] sm:$0xff] %v5006_v21  ;;  %3824 = vpow2.f32 %v1147_v48  ;;  %v2026_v33 = vmax.f32 %v5004_v62, %v5006_v21  ;;  %v1079_v42 = vsub.f32 %v4755_v45, %v989_v61  ;;  %v1080_v43 = vsub.f32 %v4760_v46, %v989_v61 }
 0x3e0   : > { %v3813_v57 = vpop.eup %3812  ;;  %3826 = vpow2.f32 %v1149_v59  ;;  %v5014_v12 = vpop.f32.mrf.mxu1 }
 0x3e1   : > { %v3815_v31 = vpop.eup %3814  ;;  %v1151_v36 = vmul.f32 1.442695, %v1079_v42  ;;  %v1153_v39 = vmul.f32 1.442695, %v1080_v43  ;;  %2027 = vmax.xlane.f32.xlu0 %v2026_v33 }
 0x3e2   : > { %2024 = vmax.xlane.f32.xlu1 %v2023_v5  ;;  %v5016_v40 = vpop.f32.mrf.mxu1  ;;  %v992_v48 = vpop.xlane.xlu1 %991  ;;  %v5018_v18 = vadd.f32 %v3815_v31, %v3813_v57 }
 0x3e3   : > { %3828 = vpow2.f32 %v1151_v36  ;;  %v1081_v45 = vsub.f32 %v4764_v49, %v992_v48  ;;  %v1082_v46 = vsub.f32 %v4766_v51, %v992_v48 }
 0x3e4   : > { %6285 = vst [vmem:[#allocation41_spill] sm:$0xff] %v5018_v18  ;;  %v3817_v61 = vpop.eup %3816  ;;  %3830 = vpow2.f32 %v1153_v39  ;;  %v5022_v59 = vpop.f32.mrf.mxu1 }
 0x3e5   : > { %v3819_v8 = vpop.eup %3818  ;;  %v1155_v13 = vmul.f32 1.442695, %v1081_v45  ;;  %v1157_v42 = vmul.f32 1.442695, %v1082_v46  ;;  %v1359_v43 = vpack.c.bf16 %v3817_v61, %v3813_v57 }
 0x3e6   : > { %v5024_v33 = vpop.f32.mrf.mxu1  ;;  %v995_v5 = vpop.xlane.xlu0 %994  ;;  %v1360_v21 = vpack.c.bf16 %v3819_v8, %v3815_v31  ;;  %v5026_v62 = vadd.f32 %v3819_v8, %v3817_v61 }
 0x3e7   : > { %3832 = vpow2.f32 %v1155_v13  ;;  %v1083_v36 = vsub.f32 %v4770_v0, %v995_v5  ;;  %v1084_v49 = vsub.f32 %v4775_v2, %v995_v5 }
 0x3e8   : > { %6286 = vst [vmem:[#allocation42_spill] sm:$0xff] %v5026_v62  ;;  %v3821_v51 = vpop.eup %3820  ;;  %3834 = vpow2.f32 %v1157_v42  ;;  %1423 = vmatprep.mubr.bf16.mxu0 %v1360_v21  ;;  %v5030_v39 = vpop.f32.mrf.mxu1 }
 0x3e9   : > { %v3823_v48 = vpop.eup %3822  ;;  %v1159_v45 = vmul.f32 1.442695, %v1083_v36  ;;  %v1161_v46 = vmul.f32 1.442695, %v1084_v49  ;;  %1424 = vmatmul.mubr.bf16.vlgmr.msra.gmra.mxu0 %v1359_v43 }
 0x3ea   : > { %3561 = vmatpush3.bf16.msra.mxu0 %v4892_v32  ;;  %v5033_v57 = vpop.f32.mrf.mxu1  ;;  %v998_v8 = vpop.xlane.xlu1 %997  ;;  %v5035_v31 = vadd.f32 %v3823_v48, %v3821_v51 }
 0x3eb   : > { %3836 = vpow2.f32 %v1159_v45  ;;  %3562 = vmatprep.subr.bf16.mxu0 %v4902_v34  ;;  %v1085_v0 = vsub.f32 %v4779_v10, %v998_v8  ;;  %v1086_v2 = vsub.f32 %v4781_v17, %v998_v8 }
 0x3ec   : > { %6287 = vst [vmem:[#allocation43_spill] sm:$0xff] %v5035_v31  ;;  %v3825_v13 = vpop.eup %3824  ;;  %3838 = vpow2.f32 %v1161_v46  ;;  %v5040_v21 = vpop.f32.mrf.mxu1 }
 0x3ed   : > { %v3827_v61 = vpop.eup %3826  ;;  %v1163_v42 = vmul.f32 1.442695, %v1085_v0  ;;  %v1165_v43 = vmul.f32 1.442695, %v1086_v2  ;;  %v1361_v32 = vpack.c.bf16 %v3825_v13, %v3821_v51 }
 0x3ee   : > { %3563 = vmatpush3.bf16.msra.mxu0 %v4614_v11  ;;  %v5043_v5 = vpop.f32.mrf.mxu1  ;;  %v1001_v36 = vpop.xlane.xlu0 %1000  ;;  %v1362_v49 = vpack.c.bf16 %v3827_v61, %v3823_v48  ;;  %v5045_v45 = vadd.f32 %v3827_v61, %v3825_v13 }
 0x3ef   : > { %3840 = vpow2.f32 %v1163_v42  ;;  %3564 = vmatprep.subr.bf16.mxu0 %v4616_v6  ;;  %v1087_v10 = vsub.f32 %v4785_v22, %v1001_v36  ;;  %v1088_v17 = vsub.f32 %v4790_v35, %v1001_v36 }
 0x3f0   : > { %6288 = vst [vmem:[#allocation44_spill] sm:$0xff] %v5045_v45  ;;  %v3829_v34 = vpop.eup %3828  ;;  %3842 = vpow2.f32 %v1165_v43  ;;  %1431 = vmatprep.mubr.bf16.mxu0 %v1362_v49  ;;  %v5050_v46 = vpop.f32.mrf.mxu1 }
 0x3f1   : > { %v3831_v51 = vpop.eup %3830  ;;  %v1167_v11 = vmul.f32 1.442695, %v1087_v10  ;;  %v1169_v8 = vmul.f32 1.442695, %v1088_v17  ;;  %1432 = vmatmul.mubr.bf16.gmra.mxu0 %v1361_v32 }
 0x3f2   : > { %3565 = vmatpush3.bf16.msra.mxu0 %v4914_v54  ;;  %v5053_v48 = vpop.f32.mrf.mxu1  ;;  %v1004_v0 = vpop.xlane.xlu1 %1003  ;;  %v5055_v2 = vadd.f32 %v3831_v51, %v3829_v34 }
 0x3f3   : > { %3844 = vpow2.f32 %v1167_v11  ;;  %3566 = vmatprep.subr.bf16.mxu0 %v4930_v15  ;;  %v1089_v6 = vsub.f32 %v4794_v24, %v1004_v0  ;;  %v1090_v22 = vsub.f32 %v4796_v25, %v1004_v0  ;;  %2453 = vrot.lane.b32.xlu1 %v4485_v60, %s4207_s9 }
 0x3f4   : > { %6289 = vst [vmem:[#allocation45_spill] sm:$0xff] %v5055_v2  ;;  %v3833_v35 = vpop.eup %3832  ;;  %3846 = vpow2.f32 %v1169_v8  ;;  %v5062_v13 = vpop.f32.mrf.mxu1 }
 0x3f5   : > { %v3835_v54 = vpop.eup %3834  ;;  %v1171_v61 = vmul.f32 1.442695, %v1089_v6  ;;  %v1173_v42 = vmul.f32 1.442695, %v1090_v22  ;;  %v1363_v43 = vpack.c.bf16 %v3833_v35, %v3829_v34 }
 0x3f6   : > { %3567 = vmatpush3.bf16.msra.mxu0 %v4624_v52  ;;  %v5065_v32 = vpop.f32.mrf.mxu1  ;;  %v1007_v15 = vpop.xlane.xlu0 %1006  ;;  %v1364_v36 = vpack.c.bf16 %v3835_v54, %v3831_v51  ;;  %v5067_v24 = vadd.f32 %v3835_v54, %v3833_v35  ;;  %v6292_v35 = vld [vmem:[#allocation2_spill] sm:$0xff] }
 0x3f7   : > { %3848 = vpow2.f32 %v1171_v61  ;;  %3568 = vmatprep.subr.bf16.mxu0 %v4626_v55  ;;  %v1091_v60 = vsub.f32 %v4800_v14, %v1007_v15  ;;  %v1092_v25 = vsub.f32 %v4805_v50, %v1007_v15  ;;  %2437 = vrot.lane.b32.xlu0 %v4494_v63, %s4207_s9 }
 0x3f8   : > { %6290 = vst [vmem:[#allocation46_spill] sm:$0xff] %v5067_v24  ;;  %v3837_v49 = vpop.eup %3836  ;;  %3850 = vpow2.f32 %v1173_v42  ;;  %1439 = vmatprep.mubr.bf16.mxu0 %v1364_v36  ;;  %v5074_v52 = vpop.f32.mrf.mxu1 }
 0x3f9   : > { %v3839_v10 = vpop.eup %3838  ;;  %v1175_v17 = vmul.f32 1.442695, %v1091_v60  ;;  %v1177_v34 = vmul.f32 1.442695, %v1092_v25  ;;  %1440 = vmatmul.mubr.bf16.gmra.mxu0 %v1363_v43 }
 0x3fa   : > { %3569 = vmatpush3.bf16.msra.mxu0 %v4942_v20  ;;  %v5077_v51 = vpop.f32.mrf.mxu1  ;;  %v1010_v55 = vpop.xlane.xlu1 %1009  ;;  %v5079_v14 = vadd.f32 %v3839_v10, %v3837_v49 }
 0x3fb   : > { %3852 = vpow2.f32 %v1175_v17  ;;  %3570 = vmatprep.subr.bf16.mxu0 %v4958_v19  ;;  %v1093_v63 = vsub.f32 %v4809_v58, %v1010_v55  ;;  %v1094_v50 = vsub.f32 %v4811_v9, %v1010_v55  ;;  %v6294_v58 = vld [vmem:[#allocation3_spill] sm:$0xff]  ;;  %v6295_v9 = vld [vmem:[#allocation4_spill] sm:$0xff] }
 0x3fc   : > { %6291 = vst [vmem:[#allocation47_spill] sm:$0xff] %v5079_v14  ;;  %v3841_v11 = vpop.eup %3840  ;;  %3854 = vpow2.f32 %v1177_v34  ;;  %v5084_v8 = vpop.f32.mrf.mxu1 }
 0x3fd   : > { %v3843_v0 = vpop.eup %3842  ;;  %v1179_v6 = vmul.f32 1.442695, %v1093_v63  ;;  %v1181_v22 = vmul.f32 1.442695, %v1094_v50  ;;  %v1365_v20 = vpack.c.bf16 %v3841_v11, %v3837_v49  ;;  %v6297_v63 = vld [vmem:[#allocation5_spill] sm:$0xff] }
 0x3fe   : > { %3571 = vmatpush3.bf16.msra.mxu0 %v6292_v35  ;;  %v5087_v54 = vpop.f32.mrf.mxu1  ;;  %v1013_v61 = vpop.xlane.xlu0 %1012  ;;  %v1366_v42 = vpack.c.bf16 %v3843_v0, %v3839_v10  ;;  %v5089_v43 = vadd.f32 %v3843_v0, %v3841_v11  ;;  %v6298_v11 = vld [vmem:[#allocation6_spill] sm:$0xff] }
 0x3ff   : > { %3856 = vpow2.f32 %v1179_v6  ;;  %v1095_v19 = vsub.f32 %v6294_v58, %v1013_v61  ;;  %v1096_v15 = vsub.f32 %v6295_v9, %v1013_v61 }
 0x400   : > { %6293 = vst [vmem:[#allocation2_spill] sm:$0xff] %v5089_v43  ;;  %v3845_v36 = vpop.eup %3844  ;;  %3858 = vpow2.f32 %v1181_v22  ;;  %1447 = vmatprep.mubr.bf16.mxu0 %v1366_v42  ;;  %v5093_v60 = vpop.f32.mrf.mxu1 }
 0x401   : > { %v3847_v25 = vpop.eup %3846  ;;  %v1183_v49 = vmul.f32 1.442695, %v1095_v19  ;;  %v1185_v17 = vmul.f32 1.442695, %v1096_v15  ;;  %1448 = vmatmul.mubr.bf16.gmra.mxu0 %v1365_v20 }
 0x402   : > { %v5095_v34 = vpop.f32.mrf.mxu1  ;;  %v1016_v55 = vpop.xlane.xlu1 %1015  ;;  %v5097_v10 = vadd.f32 %v3847_v25, %v3845_v36 }
 0x403   : > { %3860 = vpow2.f32 %v1183_v49  ;;  %v1097_v50 = vsub.f32 %v6297_v63, %v1016_v55  ;;  %v1098_v0 = vsub.f32 %v6298_v11, %v1016_v55  ;;  %v6300_v49 = vld [vmem:[#allocation7_spill] sm:$0xff]  ;;  %v6301_v63 = vld [vmem:[#allocation8_spill] sm:$0xff] }
 0x404   : > { %6296 = vst [vmem:[#allocation3_spill] sm:$0xff] %v5097_v10  ;;  %v3849_v6 = vpop.eup %3848  ;;  %3862 = vpow2.f32 %v1185_v17  ;;  %v5101_v22 = vpop.f32.mrf.mxu1  ;;  %v2038_v10 = vmax.f32 %v5040_v21, %v5043_v5 }
 0x405   : > { %v3851_v35 = vpop.eup %3850  ;;  %v1187_v61 = vmul.f32 1.442695, %v1097_v50  ;;  %v1189_v42 = vmul.f32 1.442695, %v1098_v0  ;;  %v1367_v58 = vpack.c.bf16 %v3849_v6, %v3845_v36 }
 0x406   : > { %v5103_v19 = vpop.f32.mrf.mxu1  ;;  %v1019_v20 = vpop.xlane.xlu0 %1018  ;;  %v1368_v9 = vpack.c.bf16 %v3851_v35, %v3847_v25  ;;  %v5105_v15 = vadd.f32 %v3851_v35, %v3849_v6  ;;  %v6304_v6 = vld [vmem:[#allocation9_spill] sm:$0xff] }
 0x407   : > { %3864 = vpow2.f32 %v1187_v61  ;;  %v1099_v31 = vsub.f32 %v6300_v49, %v1019_v20  ;;  %v1100_v45 = vsub.f32 %v6301_v63, %v1019_v20  ;;  %v6305_v61 = vld [vmem:[#allocation10_spill] sm:$0xff] }
 0x408   : > { %6299 = vst [vmem:[#allocation4_spill] sm:$0xff] %v5105_v15  ;;  %v3853_v55 = vpop.eup %3852  ;;  %3866 = vpow2.f32 %v1189_v42  ;;  %1455 = vmatprep.mubr.bf16.mxu0 %v1368_v9  ;;  %v5109_v17 = vpop.f32.mrf.mxu1 }
 0x409   : > { %6302 = vst [vmem:[#allocation5_spill] sm:$0xff] %v5109_v17  ;;  %v3855_v11 = vpop.eup %3854  ;;  %v1191_v50 = vmul.f32 1.442695, %v1099_v31  ;;  %v1193_v0 = vmul.f32 1.442695, %v1100_v45  ;;  %1456 = vmatmul.mubr.bf16.gmra.mxu0 %v1367_v58 }
 0x40a   : > { %v5111_v36 = vpop.f32.mrf.mxu1  ;;  %v1022_v2 = vpop.xlane.xlu1 %1021  ;;  %v5113_v25 = vadd.f32 %v3855_v11, %v3853_v55 }
 0x40b   : > { %3868 = vpow2.f32 %v1191_v50  ;;  %v1101_v35 = vsub.f32 %v6304_v6, %v1022_v2  ;;  %v1102_v49 = vsub.f32 %v6305_v61, %v1022_v2  ;;  %v2456_v20 = vpop.permute.xlu0 %2455  ;;  %v2032_v61 = vmax.f32 %v5022_v59, %v5024_v33 }
 0x40c   : > { %6303 = vst [vmem:[#allocation6_spill] sm:$0xff] %v5113_v25  ;;  %v3857_v63 = vpop.eup %3856  ;;  %3870 = vpow2.f32 %v1193_v0  ;;  %3572 = vmatprep.subr.bf16.mxu0 %v2456_v20  ;;  %v5117_v42 = vpop.f32.mrf.mxu1 }
 0x40d   : > { %6306 = vst [vmem:[#allocation7_spill] sm:$0xff] %v5117_v42  ;;  %v3859_v9 = vpop.eup %3858  ;;  %v1195_v31 = vmul.f32 1.442695, %v1101_v35  ;;  %v1197_v45 = vmul.f32 1.442695, %v1102_v49  ;;  %v1369_v58 = vpack.c.bf16 %v3857_v63, %v3853_v55 }
 0x40e   : > { %v5119_v24 = vpop.f32.mrf.mxu1  ;;  %v2440_v18 = vpop.permute.xlu1 %2439  ;;  %v1370_v62 = vpack.c.bf16 %v3859_v9, %v3855_v11  ;;  %v5121_v14 = vadd.f32 %v3859_v9, %v3857_v63 }
 0x40f   : > { %6307 = vst [vmem:[#allocation8_spill] sm:$0xff] %v5119_v24  ;;  %3872 = vpow2.f32 %v1195_v31  ;;  %3573 = vmatpush3.bf16.msra.mxu0 %v2440_v18  ;;  %v2029_v18 = vmax.f32 %v5014_v12, %v5016_v40 }
 0x410   : > { %6308 = vst [vmem:[#allocation9_spill] sm:$0xff] %v5121_v14  ;;  %v3861_v50 = vpop.eup %3860  ;;  %3874 = vpow2.f32 %v1197_v45  ;;  %1463 = vmatprep.mubr.bf16.mxu0 %v1370_v62  ;;  %v5123_v2 = vpop.f32.mrf.mxu1  ;;  %v2035_v45 = vmax.f32 %v5030_v39, %v5033_v57 }
 0x411   : > { %6309 = vst [vmem:[#allocation10_spill] sm:$0xff] %v5123_v2  ;;  %v3863_v0 = vpop.eup %3862  ;;  %1464 = vmatmul.mubr.bf16.gmra.mxu0 %v1369_v58 }
 0x412   : > { %v5125_v6 = vpop.f32.mrf.mxu1  ;;  %v5127_v35 = vadd.f32 %v3863_v0, %v3861_v50 }
 0x413   : > { %6310 = vst [vmem:[#allocation48_spill] sm:$0xff] %v5125_v6 }
 0x414   : > { %6311 = vst [vmem:[#allocation49_spill] sm:$0xff] %v5127_v35  ;;  %v3865_v55 = vpop.eup %3864  ;;  %v5131_v11 = vpop.f32.mrf.mxu1  ;;  %v2050_v35 = vmax.f32 %v5084_v8, %v5087_v54 }
 0x415   : > { %6312 = vst [vmem:[#allocation50_spill] sm:$0xff] %v5131_v11  ;;  %v3867_v49 = vpop.eup %3866  ;;  %v1371_v20 = vpack.c.bf16 %v3865_v55, %v3861_v50 }
 0x416   : > { %v5135_v62 = vpop.f32.mrf.mxu1  ;;  %2033 = vmax.xlane.f32.xlu0 %v2032_v61  ;;  %v1372_v63 = vpack.c.bf16 %v3867_v49, %v3863_v0  ;;  %v5137_v9 = vadd.f32 %v3867_v49, %v3865_v55  ;;  %v2041_v55 = vmax.f32 %v5050_v46, %v5053_v48 }
 0x417   : > { %6313 = vst [vmem:[#allocation51_spill] sm:$0xff] %v5135_v62  ;;  %2030 = vmax.xlane.f32.xlu1 %v2029_v18 }
 0x418   : > { %6314 = vst [vmem:[#allocation52_spill] sm:$0xff] %v5137_v9  ;;  %v3869_v31 = vpop.eup %3868  ;;  %1471 = vmatprep.mubr.bf16.mxu0 %v1372_v63  ;;  %v5141_v58 = vpop.f32.mrf.mxu1  ;;  %v2044_v63 = vmax.f32 %v5062_v13, %v5065_v32 }
 0x419   : > { %v3871_v43 = vpop.eup %3870  ;;  %1472 = vmatmul.mubr.bf16.gmra.mxu0 %v1371_v20 }
 0x41a   : > { %v5145_v50 = vpop.f32.mrf.mxu1  ;;  %2036 = vmax.xlane.f32.xlu0 %v2035_v45  ;;  %v5147_v61 = vadd.f32 %v3871_v43, %v3869_v31 }
 0x41b   : > { %2039 = vmax.xlane.f32.xlu1 %v2038_v10  ;;  %v2047_v10 = vmax.f32 %v5074_v52, %v5077_v51 }
 0x41c   : > { %6315 = vst [vmem:[#allocation53_spill] sm:$0xff] %v5147_v61  ;;  %v3873_v0 = vpop.eup %3872  ;;  %v5151_v49 = vpop.f32.mrf.mxu1  ;;  %v2071_v61 = vmax.f32 %v5141_v58, %v5145_v50 }
 0x41d   : > { %v3875_v18 = vpop.eup %3874  ;;  %v1373_v15 = vpack.c.bf16 %v3873_v0, %v3869_v31 }
 0x41e   : > { %v5155_v25 = vpop.f32.mrf.mxu1  ;;  %2042 = vmax.xlane.f32.xlu0 %v2041_v55  ;;  %v1374_v20 = vpack.c.bf16 %v3875_v18, %v3871_v43  ;;  %v5157_v14 = vadd.f32 %v3875_v18, %v3873_v0  ;;  %v2053_v43 = vmax.f32 %v5093_v60, %v5095_v34  ;;  %v2056_v0 = vmax.f32 %v5101_v22, %v5103_v19 }
 0x41f   : > { %2045 = vmax.xlane.f32.xlu1 %v2044_v63  ;;  %v2059_v18 = vmax.f32 %v5109_v17, %v5111_v36 }
 0x420   : > { %6316 = vst [vmem:[#allocation54_spill] sm:$0xff] %v5157_v14  ;;  %1479 = vmatprep.mubr.bf16.mxu0 %v1374_v20  ;;  %v5161_v45 = vpop.f32.mrf.mxu1  ;;  %v2065_v20 = vmax.f32 %v5123_v2, %v5125_v6 }
 0x421   : > { %6317 = vst [vmem:[#allocation55_spill] sm:$0xff] %v5161_v45  ;;  %1480 = vmatmul.mubr.bf16.gmra.mxu0 %v1373_v15 }
 0x422   : > { %v5165_v9 = vpop.f32.mrf.mxu1  ;;  %2048 = vmax.xlane.f32.xlu0 %v2047_v10 }
 0x423   : > { %6318 = vst [vmem:[#allocation56_spill] sm:$0xff] %v5165_v9  ;;  %2051 = vmax.xlane.f32.xlu1 %v2050_v35  ;;  %v2062_v35 = vmax.f32 %v5117_v42, %v5119_v24  ;;  %v2077_v2 = vmax.f32 %v5161_v45, %v5165_v9 }
 0x424   : > { %v5169_v31 = vpop.f32.mrf.mxu1 }
 0x425   : > { %6319 = vst [vmem:[#allocation57_spill] sm:$0xff] %v5169_v31 }
 0x426   : > { %v5173_v55 = vpop.f32.mrf.mxu1  ;;  %2054 = vmax.xlane.f32.xlu0 %v2053_v43  ;;  %v2068_v43 = vmax.f32 %v5131_v11, %v5135_v62 }
 0x427   : > { %6320 = vst [vmem:[#allocation58_spill] sm:$0xff] %v5173_v55  ;;  %2057 = vmax.xlane.f32.xlu1 %v2056_v0 }
 0x428   : > { %v5177_v15 = vpop.f32.mrf.mxu1 }
 0x429   : > { %6321 = vst [vmem:[#allocation59_spill] sm:$0xff] %v5177_v15 }
 0x42a   : > { %v5181_v63 = vpop.f32.mrf.mxu1  ;;  %2060 = vmax.xlane.f32.xlu0 %v2059_v18  ;;  %v2074_v18 = vmax.f32 %v5151_v49, %v5155_v25 }
 0x42b   : > { %6322 = vst [vmem:[#allocation60_spill] sm:$0xff] %v5181_v63  ;;  %2063 = vmax.xlane.f32.xlu1 %v2062_v35  ;;  %v2083_v62 = vmax.f32 %v5177_v15, %v5181_v63 }
 0x42c   : > { %v5185_v10 = vpop.f32.mrf.mxu1 }
 0x42d   : > { %6323 = vst [vmem:[#allocation61_spill] sm:$0xff] %v5185_v10 }
 0x42e   : > { %v5189_v0 = vpop.f32.mrf.mxu1  ;;  %2066 = vmax.xlane.f32.xlu0 %v2065_v20  ;;  %v2080_v20 = vmax.f32 %v5169_v31, %v5173_v55  ;;  %v6330_v31 = vld [vmem:[#allocation11_spill] sm:$0xff] }
 0x42f   : > { %6324 = vst [vmem:[#allocation62_spill] sm:$0xff] %v5189_v0  ;;  %2069 = vmax.xlane.f32.xlu1 %v2068_v43 }
 0x430   : > { %v5193_v14 = vpop.f32.mrf.mxu1 }
 0x431   : > { %6325 = vst [vmem:[#allocation63_spill] sm:$0xff] %v5193_v14 }
 0x432   : > { %v5197_v35 = vpop.f32.mrf.mxu1  ;;  %2072 = vmax.xlane.f32.xlu0 %v2071_v61  ;;  %v2086_v61 = vmax.f32 %v5185_v10, %v5189_v0 }
 0x433   : > { %6326 = vst [vmem:[#allocation64_spill] sm:$0xff] %v5197_v35  ;;  %2075 = vmax.xlane.f32.xlu1 %v2074_v18  ;;  %v2089_v55 = vmax.f32 %v5193_v14, %v5197_v35  ;;  %v6334_v14 = vld [vmem:[#allocation14_spill] sm:$0xff] }
 0x434   : > { %v5201_v11 = vpop.f32.mrf.mxu1 }
 0x435   : > { %6327 = vst [vmem:[#allocation65_spill] sm:$0xff] %v5201_v11 }
 0x436   : > { %v5205_v43 = vpop.f32.mrf.mxu1  ;;  %2078 = vmax.xlane.f32.xlu0 %v2077_v2  ;;  %v6331_v2 = vld [vmem:[#allocation12_spill] sm:$0xff] }
 0x437   : > { %6328 = vst [vmem:[#allocation66_spill] sm:$0xff] %v5205_v43  ;;  %2081 = vmax.xlane.f32.xlu1 %v2080_v20  ;;  %v2092_v63 = vmax.f32 %v5201_v11, %v5205_v43 }
 0x438   : > { %v5209_v6 = vpop.f32.mrf.mxu1 }
 0x43a   : > { %v5213_v18 = vpop.f32.mrf.mxu1  ;;  %2084 = vmax.xlane.f32.xlu0 %v2083_v62 }
 0x43b   : > { %6329 = vst [vmem:[#allocation67_spill] sm:$0xff] %v5213_v18  ;;  %2087 = vmax.xlane.f32.xlu1 %v2086_v61  ;;  %v1025_v42 = vpop.xlane.xlu0 %1024  ;;  %v2095_v62 = vmax.f32 %v5209_v6, %v5213_v18 }
 0x43c   : > { %v1103_v17 = vsub.f32 %v6330_v31, %v1025_v42  ;;  %v1104_v20 = vsub.f32 %v6331_v2, %v1025_v42  ;;  %v5219_v9 = vpop.f32.mrf.mxu1  ;;  %v6333_v42 = vld [vmem:[#allocation13_spill] sm:$0xff] }
 0x43e   : > { %v1199_v15 = vmul.f32 1.442695, %v1103_v17  ;;  %v1201_v45 = vmul.f32 1.442695, %v1104_v20  ;;  %v5223_v0 = vpop.f32.mrf.mxu1  ;;  %2090 = vmax.xlane.f32.xlu0 %v2089_v55  ;;  %v6335_v20 = vld [vmem:[#allocation15_spill] sm:$0xff] }
 0x43f   : > { %6332 = vst [vmem:[#allocation11_spill] sm:$0xff] %v5223_v0  ;;  %2093 = vmax.xlane.f32.xlu1 %v2092_v63  ;;  %v1028_v61 = vpop.xlane.xlu1 %1027  ;;  %v1031_v35 = vpop.xlane.xlu0 %1030  ;;  %v2098_v17 = vmax.f32 %v5219_v9, %v5223_v0 }
 0x440   : > { %3876 = vpow2.f32 %v1199_v15  ;;  %v1105_v31 = vsub.f32 %v4848_v26, %v1028_v61  ;;  %v1106_v2 = vsub.f32 %v6333_v42, %v1028_v61  ;;  %v1107_v10 = vsub.f32 %v6334_v14, %v1031_v35  ;;  %v6336_v61 = vld [vmem:[#allocation16_spill] sm:$0xff] }
 0x441   : > { %3878 = vpow2.f32 %v1201_v45  ;;  %v1108_v43 = vsub.f32 %v6335_v20, %v1031_v35  ;;  %v6337_v45 = vld [vmem:[#allocation17_spill] sm:$0xff]  ;;  %v6338_v20 = vld [vmem:[#allocation18_spill] sm:$0xff] }
 0x442   : > { %v1203_v55 = vmul.f32 1.442695, %v1105_v31  ;;  %v1205_v11 = vmul.f32 1.442695, %v1106_v2  ;;  %v1207_v24 = vmul.f32 1.442695, %v1107_v10  ;;  %2096 = vmax.xlane.f32.xlu0 %v2095_v62 }
 0x443   : > { %v1209_v63 = vmul.f32 1.442695, %v1108_v43  ;;  %2099 = vmax.xlane.f32.xlu1 %v2098_v17  ;;  %v1034_v18 = vpop.xlane.xlu1 %1033  ;;  %v1037_v15 = vpop.xlane.xlu0 %1036 }
 0x444   : > { %3880 = vpow2.f32 %v1203_v55  ;;  %v1109_v26 = vsub.f32 %v4856_v38, %v1034_v18  ;;  %v1110_v42 = vsub.f32 %v6336_v61, %v1034_v18  ;;  %v1111_v14 = vsub.f32 %v4860_v44, %v1037_v15  ;;  %v6339_v55 = vld [vmem:[#allocation19_spill] sm:$0xff]  ;;  %v6340_v44 = vld [vmem:[#allocation20_spill] sm:$0xff] }
 0x445   : > { %3882 = vpow2.f32 %v1205_v11  ;;  %v1112_v0 = vsub.f32 %v6337_v45, %v1037_v15  ;;  %v6342_v45 = vld [vmem:[#allocation22_spill] sm:$0xff] }
 0x446   : > { %3884 = vpow2.f32 %v1207_v24  ;;  %v1211_v35 = vmul.f32 1.442695, %v1109_v26  ;;  %v1213_v31 = vmul.f32 1.442695, %v1110_v42  ;;  %v1215_v2 = vmul.f32 1.442695, %v1111_v14 }
 0x447   : > { %3886 = vpow2.f32 %v1209_v63  ;;  %v1217_v10 = vmul.f32 1.442695, %v1112_v0  ;;  %v1040_v43 = vpop.xlane.xlu1 %1039  ;;  %v1043_v62 = vpop.xlane.xlu0 %1042  ;;  %v6341_v14 = vld [vmem:[#allocation21_spill] sm:$0xff] }
 0x448   : > { %3888 = vpow2.f32 %v1211_v35  ;;  %v1113_v17 = vsub.f32 %v4868_v56, %v1040_v43  ;;  %v1114_v38 = vsub.f32 %v6338_v20, %v1040_v43  ;;  %v1115_v18 = vsub.f32 %v6339_v55, %v1043_v62 }
 0x449   : > { %3890 = vpow2.f32 %v1213_v31  ;;  %v1116_v11 = vsub.f32 %v6340_v44, %v1043_v62  ;;  %v6343_v31 = vld [vmem:[#allocation23_spill] sm:$0xff] }
 0x44a   : > { %3892 = vpow2.f32 %v1215_v2  ;;  %v1219_v15 = vmul.f32 1.442695, %v1113_v17  ;;  %v1221_v24 = vmul.f32 1.442695, %v1114_v38  ;;  %v1223_v26 = vmul.f32 1.442695, %v1115_v18 }
 0x44b   : > { %3894 = vpow2.f32 %v1217_v10  ;;  %v1225_v61 = vmul.f32 1.442695, %v1116_v11  ;;  %v1046_v63 = vpop.xlane.xlu1 %1045  ;;  %v1049_v0 = vpop.xlane.xlu0 %1048  ;;  %v6345_v11 = vld [vmem:[#allocation24_spill] sm:$0xff] }
 0x44c   : > { %3896 = vpow2.f32 %v1219_v15  ;;  %v1117_v42 = vsub.f32 %v4876_v29, %v1046_v63  ;;  %v1118_v56 = vsub.f32 %v6341_v14, %v1046_v63  ;;  %v1119_v35 = vsub.f32 %v6342_v45, %v1049_v0 }
 0x44d   : > { %v3877_v43 = vpop.eup %3876  ;;  %3898 = vpow2.f32 %v1221_v24  ;;  %v1120_v20 = vsub.f32 %v6343_v31, %v1049_v0  ;;  %v6346_v0 = vld [vmem:[#allocation25_spill] sm:$0xff] }
 0x44e   : > { %v3879_v62 = vpop.eup %3878  ;;  %3900 = vpow2.f32 %v1223_v26  ;;  %v1227_v2 = vmul.f32 1.442695, %v1117_v42  ;;  %v1229_v17 = vmul.f32 1.442695, %v1118_v56  ;;  %v1231_v38 = vmul.f32 1.442695, %v1119_v35 }
 0x44f   : > { %3902 = vpow2.f32 %v1225_v61  ;;  %v1233_v10 = vmul.f32 1.442695, %v1120_v20  ;;  %v1052_v55 = vpop.xlane.xlu1 %1051  ;;  %v1055_v18 = vpop.xlane.xlu0 %1054  ;;  %v5245_v44 = vadd.f32 %v3879_v62, %v3877_v43 }
 0x450   : > { %3904 = vpow2.f32 %v1227_v2  ;;  %v1121_v29 = vsub.f32 %v4884_v53, %v1052_v55  ;;  %v1122_v15 = vsub.f32 %v6345_v11, %v1052_v55  ;;  %v1123_v24 = vsub.f32 %v4888_v1, %v1055_v18  ;;  %v6347_v1 = vld [vmem:[#allocation26_spill] sm:$0xff] }
 0x451   : > { %6344 = vst [vmem:[#allocation12_spill] sm:$0xff] %v5245_v44  ;;  %v3881_v63 = vpop.eup %3880  ;;  %3906 = vpow2.f32 %v1229_v17  ;;  %v1124_v26 = vsub.f32 %v6346_v0, %v1055_v18  ;;  %v6348_v17 = vld [vmem:[#allocation27_spill] sm:$0xff]  ;;  %v6349_v18 = vld [vmem:[#allocation28_spill] sm:$0xff] }
 0x452   : > { %v3883_v42 = vpop.eup %3882  ;;  %3908 = vpow2.f32 %v1231_v38  ;;  %v1235_v14 = vmul.f32 1.442695, %v1121_v29  ;;  %v1237_v61 = vmul.f32 1.442695, %v1122_v15  ;;  %v1239_v56 = vmul.f32 1.442695, %v1123_v24 }
 0x453   : > { %v5251_v45 = vpop.eup %3884  ;;  %3910 = vpow2.f32 %v1233_v10  ;;  %v1241_v35 = vmul.f32 1.442695, %v1124_v26  ;;  %v1058_v31 = vpop.xlane.xlu1 %1057  ;;  %v1376_v53 = vpack.c.bf16 %v3883_v42, %v3879_v62  ;;  %v1375_v2 = vpack.c.bf16 %v3881_v63, %v3877_v43  ;;  %v6350_v29 = vld [vmem:[#allocation29_spill] sm:$0xff] }
 0x454   : > { %v1061_v20 = vpop.xlane.xlu0 %1060  ;;  %v3887_v55 = vpop.eup %3886  ;;  %3912 = vpow2.f32 %v1235_v14  ;;  %v1125_v11 = vsub.f32 %v6347_v1, %v1058_v31  ;;  %v1126_v44 = vsub.f32 %v6348_v17, %v1058_v31  ;;  %v5260_v24 = vadd.f32 %v3883_v42, %v3881_v63  ;;  %v6355_v42 = vld [vmem:[#allocation32_spill] sm:$0xff] }
 0x455   : > { %v1127_v0 = vsub.f32 %v6349_v18, %v1061_v20  ;;  %v3889_v38 = vpop.eup %3888  ;;  %3914 = vpow2.f32 %v1237_v61  ;;  %v1128_v15 = vsub.f32 %v6350_v29, %v1061_v20  ;;  %1487 = vmatprep.mubr.bf16.mxu0 %v1376_v53  ;;  %v5258_v10 = vadd.f32 %v3887_v55, %v5251_v45  ;;  %v6353_v53 = vld [vmem:[#allocation30_spill] sm:$0xff] }
 0x456   : > { %6352 = vst [vmem:[#allocation14_spill] sm:$0xff] %v5260_v24  ;;  %v3891_v62 = vpop.eup %3890  ;;  %3916 = vpow2.f32 %v1239_v56  ;;  %v1243_v43 = vmul.f32 1.442695, %v1125_v11  ;;  %v1245_v26 = vmul.f32 1.442695, %v1126_v44  ;;  %1488 = vmatmul.mubr.bf16.gmra.mxu0 %v1375_v2  ;;  %v6356_v44 = vld [vmem:[#allocation33_spill] sm:$0xff] }
 0x457   : > { %6351 = vst [vmem:[#allocation13_spill] sm:$0xff] %v5258_v10  ;;  %v1247_v14 = vmul.f32 1.442695, %v1127_v0  ;;  %v5262_v1 = vpop.eup %3892  ;;  %3918 = vpow2.f32 %v1241_v35  ;;  %v1249_v31 = vmul.f32 1.442695, %v1128_v15  ;;  %v1064_v17 = vpop.xlane.xlu1 %1063  ;;  %v1378_v18 = vpack.c.bf16 %v3891_v62, %v3887_v55  ;;  %v6354_v10 = vld [vmem:[#allocation31_spill] sm:$0xff] }
 0x458   : > { %v1067_v61 = vpop.xlane.xlu0 %1066  ;;  %v3895_v20 = vpop.eup %3894  ;;  %3920 = vpow2.f32 %v1243_v43  ;;  %v1129_v29 = vsub.f32 %v6353_v53, %v1064_v17  ;;  %v1130_v63 = vsub.f32 %v6354_v10, %v1064_v17  ;;  %v5273_v11 = vadd.f32 %v3891_v62, %v3889_v38 }
 0x459   : > { %v1131_v24 = vsub.f32 %v6355_v42, %v1067_v61  ;;  %v5267_v56 = vpop.eup %3896  ;;  %3922 = vpow2.f32 %v1245_v26  ;;  %v1132_v2 = vsub.f32 %v6356_v44, %v1067_v61  ;;  %1495 = vmatprep.mubr.bf16.mxu0 %v1378_v18  ;;  %v5271_v35 = vadd.f32 %v3895_v20, %v5262_v1 }
 0x45a   : > { %6358 = vst [vmem:[#allocation16_spill] sm:$0xff] %v5273_v11  ;;  %v3899_v55 = vpop.eup %3898  ;;  %3924 = vpow2.f32 %v1247_v14  ;;  %v1251_v0 = vmul.f32 1.442695, %v1129_v29  ;;  %v1253_v15 = vmul.f32 1.442695, %v1130_v63  ;;  %v1377_v26 = vpack.c.bf16 %v3889_v38, %v5251_v45 }
 0x45b   : > { %6357 = vst [vmem:[#allocation15_spill] sm:$0xff] %v5271_v35  ;;  %v1255_v43 = vmul.f32 1.442695, %v1131_v24  ;;  %v5275_v53 = vpop.eup %3900  ;;  %3926 = vpow2.f32 %v1249_v31  ;;  %v1257_v10 = vmul.f32 1.442695, %v1132_v2  ;;  %v1070_v17 = vpop.xlane.xlu1 %1069  ;;  %v1380_v61 = vpack.c.bf16 %v3899_v55, %v3895_v20  ;;  %v6359_v24 = vld [vmem:[#allocation34_spill] sm:$0xff] }
 0x45c   : > { %v2007_v42 = vpop.xlane.xlu0 %2006  ;;  %v3903_v18 = vpop.eup %3902  ;;  %3928 = vpow2.f32 %v1251_v0  ;;  %v1133_v44 = vsub.f32 %v4928_v37, %v1070_v17  ;;  %v1134_v62 = vsub.f32 %v4932_v41, %v1070_v17  ;;  %v5288_v2 = vadd.f32 %v3899_v55, %v5267_v56 }
 0x45d   : > { %v2101_v14 = vsub.f32 %v4938_v47, %v2007_v42  ;;  %v5281_v29 = vpop.eup %3904  ;;  %3930 = vpow2.f32 %v1253_v15  ;;  %v2102_v63 = vsub.f32 %v6359_v24, %v2007_v42  ;;  %v5285_v31 = vadd.f32 %v3903_v18, %v5275_v53 }
 0x45e   : > { %6361 = vst [vmem:[#allocation18_spill] sm:$0xff] %v5288_v2  ;;  %v3907_v45 = vpop.eup %3906  ;;  %3932 = vpow2.f32 %v1255_v43  ;;  %v1259_v38 = vmul.f32 1.442695, %v1133_v44  ;;  %v1261_v20 = vmul.f32 1.442695, %v1134_v62  ;;  %1496 = vmatmul.mubr.bf16.gmra.mxu0 %v1377_v26  ;;  %v1381_v11 = vpack.c.bf16 %v5281_v29, %v5275_v53 }
 0x45f   : > { %6360 = vst [vmem:[#allocation17_spill] sm:$0xff] %v5285_v31  ;;  %v2165_v37 = vmul.f32 1.442695, %v2101_v14  ;;  %v5290_v41 = vpop.eup %3908  ;;  %3934 = vpow2.f32 %v1257_v10  ;;  %v2167_v47 = vmul.f32 1.442695, %v2102_v63  ;;  %1503 = vmatprep.mubr.bf16.mxu0 %v1380_v61  ;;  %v2010_v0 = vpop.xlane.xlu1 %2009  ;;  %v5305_v61 = vadd.f32 %v3907_v45, %v5281_v29  ;;  %v6371_v31 = vld [vmem:[#allocation38_spill] sm:$0xff] }
 0x460   : > { %v2016_v15 = vpop.xlane.xlu0 %2015  ;;  %v5292_v17 = vpop.eup %3910  ;;  %3936 = vpow2.f32 %v1259_v38  ;;  %v2103_v42 = vsub.f32 %v4948_v7, %v2010_v0  ;;  %v2104_v55 = vsub.f32 %v4950_v27, %v2010_v0  ;;  %v1379_v0 = vpack.c.bf16 %v5267_v56, %v5262_v1 }
 0x461   : > { %v2107_v43 = vsub.f32 %v4966_v30, %v2016_v15  ;;  %v5297_v44 = vpop.eup %3912  ;;  %3938 = vpow2.f32 %v1261_v20  ;;  %v2108_v26 = vsub.f32 %v4968_v23, %v2016_v15  ;;  %v5302_v10 = vadd.f32 %v5292_v17, %v5290_v41  ;;  %6363 = vst [vmem:[#allocation20_spill] sm:$0xff] %v5305_v61 }
 0x462   : > { %v3915_v62 = vpop.eup %3914  ;;  %3940 = vpow2.f32 %v2165_v37  ;;  %v2169_v14 = vmul.f32 1.442695, %v2103_v42  ;;  %v2171_v7 = vmul.f32 1.442695, %v2104_v55  ;;  %v1382_v37 = vpack.c.bf16 %v3907_v45, %v3903_v18 }
 0x463   : > { %6362 = vst [vmem:[#allocation19_spill] sm:$0xff] %v5302_v10  ;;  %v2177_v24 = vmul.f32 1.442695, %v2107_v43  ;;  %v5307_v27 = vpop.eup %3916  ;;  %3942 = vpow2.f32 %v2167_v47  ;;  %v2179_v30 = vmul.f32 1.442695, %v2108_v26  ;;  %v2013_v63 = vpop.xlane.xlu1 %2012  ;;  %v5322_v47 = vadd.f32 %v3915_v62, %v5297_v44 }
 0x464   : > { %v5309_v38 = vpop.eup %3918  ;;  %3944 = vpow2.f32 %v2169_v14  ;;  %v2105_v23 = vsub.f32 %v4956_v4, %v2013_v63  ;;  %v2106_v20 = vsub.f32 %v4960_v28, %v2013_v63  ;;  %v5326_v28 = vpop.xlane.xlu0 %2021  ;;  %v1384_v10 = vpack.c.bf16 %v3915_v62, %v5292_v17 }
 0x465   : > { %v5315_v15 = vpop.eup %3920  ;;  %3946 = vpow2.f32 %v2171_v7  ;;  %v5319_v42 = vadd.f32 %v5309_v38, %v5307_v27  ;;  %6365 = vst [vmem:[#allocation22_spill] sm:$0xff] %v5322_v47 }
 0x466   : > { %v5324_v55 = vpop.eup %3922  ;;  %3948 = vpow2.f32 %v2177_v24  ;;  %v2173_v4 = vmul.f32 1.442695, %v2105_v23  ;;  %v2175_v43 = vmul.f32 1.442695, %v2106_v20  ;;  %1504 = vmatmul.mubr.bf16.gmra.mxu0 %v1379_v0 }
 0x467   : > { %6364 = vst [vmem:[#allocation21_spill] sm:$0xff] %v5319_v42  ;;  %v5328_v1 = vpop.eup %3924  ;;  %3950 = vpow2.f32 %v2179_v30  ;;  %1511 = vmatprep.mubr.bf16.mxu0 %v1382_v37  ;;  %v2019_v56 = vpop.xlane.xlu1 %2018  ;;  %v5336_v14 = vadd.f32 %v5324_v55, %v5315_v15 }
 0x468   : > { %v5330_v18 = vpop.eup %3926  ;;  %3952 = vpow2.f32 %v2173_v4  ;;  %v2109_v45 = vsub.f32 %v4976_v16, %v2019_v56  ;;  %v2110_v26 = vsub.f32 %v4978_v3, %v2019_v56  ;;  %v6368_v16 = vld [vmem:[#allocation39_spill] sm:$0xff]  ;;  %v6369_v3 = vld [vmem:[#allocation40_spill] sm:$0xff] }
 0x469   : > { %6366 = vst [vmem:[#allocation23_spill] sm:$0xff] %v5336_v14  ;;  %v5338_v7 = vpop.eup %3928  ;;  %3954 = vpow2.f32 %v2175_v43  ;;  %v5342_v24 = vadd.f32 %v5330_v18, %v5328_v1  ;;  %v6370_v43 = vld [vmem:[#allocation37_spill] sm:$0xff] }
 0x46a   : > { %v3931_v30 = vpop.eup %3930  ;;  %v2181_v63 = vmul.f32 1.442695, %v2109_v45  ;;  %v2183_v23 = vmul.f32 1.442695, %v2110_v26  ;;  %v2028_v20 = vpop.xlane.xlu0 %2027 }
 0x46b   : > { %6367 = vst [vmem:[#allocation24_spill] sm:$0xff] %v5342_v24  ;;  %v5344_v0 = vpop.eup %3932  ;;  %v2115_v37 = vsub.f32 %v6368_v16, %v2028_v20  ;;  %v2116_v4 = vsub.f32 %v6369_v3, %v2028_v20  ;;  %v2025_v56 = vpop.xlane.xlu1 %2024  ;;  %v5353_v45 = vadd.f32 %v3931_v30, %v5338_v7 }
 0x46c   : > { %v3935_v35 = vpop.eup %3934  ;;  %3956 = vpow2.f32 %v2181_v63  ;;  %v2113_v2 = vsub.f32 %v6370_v43, %v2025_v56  ;;  %v2114_v61 = vsub.f32 %v6371_v31, %v2025_v56 }
 0x46d   : > { %6372 = vst [vmem:[#allocation25_spill] sm:$0xff] %v5353_v45  ;;  %v3937_v26 = vpop.eup %3936  ;;  %3958 = vpow2.f32 %v2183_v23  ;;  %v5357_v16 = vadd.f32 %v3935_v35, %v5344_v0  ;;  %v2193_v29 = vmul.f32 1.442695, %v2115_v37  ;;  %v2195_v56 = vmul.f32 1.442695, %v2116_v4 }
 0x46e   : > { %v3939_v20 = vpop.eup %3938  ;;  %v2189_v3 = vmul.f32 1.442695, %v2113_v2  ;;  %v2191_v47 = vmul.f32 1.442695, %v2114_v61  ;;  %1512 = vmatmul.mubr.bf16.gmra.mxu0 %v1381_v11  ;;  %v2438_v42 = vpop.permute.xlu0 %2437  ;;  %v1386_v4 = vpack.c.bf16 %v5324_v55, %v5309_v38  ;;  %v1387_v45 = vpack.c.bf16 %v5338_v7, %v5328_v1 }
 0x46f   : > { %6373 = vst [vmem:[#allocation26_spill] sm:$0xff] %v5357_v16  ;;  %v3941_v53 = vpop.eup %3940  ;;  %1519 = vmatprep.mubr.bf16.mxu0 %v1384_v10  ;;  %v2454_v63 = vpop.permute.xlu1 %2453  ;;  %v5359_v43 = vadd.f32 %v3939_v20, %v3937_v26  ;;  %v1383_v10 = vpack.c.bf16 %v5297_v44, %v5290_v41  ;;  %v1388_v41 = vpack.c.bf16 %v3931_v30, %v5330_v18 }
 0x470   : > { %v3943_v31 = vpop.eup %3942  ;;  %3574 = vmatprep.subr.bf16.mxu0 %v2454_v63  ;;  %3960 = vpow2.f32 %v2189_v3  ;;  %v1390_v16 = vpack.c.bf16 %v3939_v20, %v3935_v35  ;;  %v1389_v30 = vpack.c.bf16 %v3937_v26, %v5344_v0 }
 0x471   : > { %6374 = vst [vmem:[#allocation27_spill] sm:$0xff] %v5359_v43  ;;  %v3945_v23 = vpop.eup %3944  ;;  %3575 = vmatpush3.bf16.msra.mxu0 %v2438_v42  ;;  %v5361_v17 = vadd.f32 %v3943_v31, %v3941_v53  ;;  %3962 = vpow2.f32 %v2191_v47 }
 0x472   : > { %v3947_v62 = vpop.eup %3946  ;;  %3964 = vpow2.f32 %v2193_v29 }
 0x473   : > { %6375 = vst [vmem:[#allocation28_spill] sm:$0xff] %v5361_v17  ;;  %v3949_v2 = vpop.eup %3948  ;;  %v5363_v11 = vadd.f32 %v3947_v62, %v3945_v23  ;;  %3966 = vpow2.f32 %v2195_v56  ;;  %v1385_v56 = vpack.c.bf16 %v5315_v15, %v5307_v27  ;;  %v6376_v27 = vld [vmem:[#allocation36_spill] sm:$0xff]  ;;  %v2389_v17 = vpack.c.bf16 %v3945_v23, %v3941_v53 }
 0x474   : > { %v3951_v61 = vpop.eup %3950  ;;  %v2112_v15 = vsub.f32 %v6376_v27, %v5326_v28 }
 0x475   : > { %v3953_v37 = vpop.eup %3952  ;;  %v5369_v63 = vadd.f32 %v3951_v61, %v3949_v2 }
 0x476   : > { %v3955_v42 = vpop.eup %3954  ;;  %1520 = vmatmul.mubr.bf16.gmra.mxu0 %v1383_v10  ;;  %v2187_v18 = vmul.f32 1.442695, %v2112_v15  ;;  %v2391_v7 = vpack.c.bf16 %v3949_v2, %v3953_v37 }
 0x477   : > { %1527 = vmatprep.mubr.bf16.mxu0 %v1386_v4  ;;  %v5371_v3 = vadd.f32 %v3955_v42, %v3953_v37  ;;  %v2392_v1 = vpack.c.bf16 %v3951_v61, %v3955_v42 }
 0x478   : > { %3968 = vpow2.f32 %v2187_v18 }
 0x479   : > { %v3957_v47 = vpop.eup %3956 }
 0x47a   : > { %v3959_v29 = vpop.eup %3958 }
 0x47b   : > { %v5373_v14 = vadd.f32 %v3959_v29, %v3957_v47 }
 0x47d   : > { %v5378_v44 = vpop.eup %3960 }
 0x47e   : > { %1528 = vmatmul.mubr.bf16.gmra.mxu0 %v1385_v56  ;;  %v3963_v38 = vpop.eup %3962  ;;  %v2390_v56 = vpack.c.bf16 %v3947_v62, %v3943_v31 }
 0x47f   : > { %1535 = vmatprep.mubr.bf16.mxu0 %v1388_v41  ;;  %v5380_v55 = vpop.eup %3964  ;;  %v2311_v10 = vadd.f32 %v3963_v38, %v5378_v44  ;;  %v6377_v41 = vld [vmem:[#allocation35_spill] sm:$0xff] }
 0x480   : > { %v3967_v4 = vpop.eup %3966  ;;  %v2111_v43 = vsub.f32 %v6377_v41, %v5326_v28 }
 0x481   : > { %2312 = vadd.xlane.f32.xlu1 %v2311_v10  ;;  %v2314_v24 = vadd.f32 %v3967_v4, %v5380_v55  ;;  %v2396_v37 = vpack.c.bf16 %v3967_v4, %v3963_v38 }
 0x482   : > { %v2185_v10 = vmul.f32 1.442695, %v2111_v43 }
 0x484   : > { %3970 = vpow2.f32 %v2185_v10 }
 0x485   : > { %2315 = vadd.xlane.f32.xlu1 %v2314_v24  ;;  %v5391_v35 = vpop.eup %3968 }
 0x486   : > { %1536 = vmatmul.mubr.bf16.gmra.mxu0 %v1387_v45  ;;  %v2394_v24 = vpack.c.bf16 %v5391_v35, %v3959_v29 }
 0x487   : > { %1543 = vmatprep.mubr.bf16.mxu0 %v1390_v16 }
 0x48e   : > { %1544 = vmatmul.mubr.bf16.gmra.mxu0 %v1389_v30 }
 0x48f   : > { %2517 = vmatprep.mubr.bf16.mxu0 %v2390_v56 }
 0x491   : > { %v5398_v31 = vpop.eup %3970 }
 0x496   : > { %2518 = vmatmul.mubr.bf16.vlgmr.msra.gmra.mxu0 %v2389_v17 }
 0x497   : > { %2525 = vmatprep.mubr.bf16.mxu0 %v2392_v1 }
 0x49e   : > { %2526 = vmatmul.mubr.bf16.gmra.mxu0 %v2391_v7 }
 0x49f   : > { %2533 = vmatprep.mubr.bf16.mxu0 %v2394_v24  ;;  %v2034_v0 = vpop.xlane.xlu0 %2033 }
 0x4a0   : > { %v2119_v45 = vsub.f32 %v5022_v59, %v2034_v0  ;;  %v2120_v28 = vsub.f32 %v5024_v33, %v2034_v0  ;;  %v2031_v26 = vpop.xlane.xlu1 %2030  ;;  %v2393_v59 = vpack.c.bf16 %v5398_v31, %v3957_v47 }
 0x4a1   : > { %v2117_v16 = vsub.f32 %v5014_v12, %v2031_v26  ;;  %v2118_v20 = vsub.f32 %v5016_v40, %v2031_v26 }
 0x4a2   : > { %v2201_v53 = vmul.f32 1.442695, %v2119_v45  ;;  %v2203_v43 = vmul.f32 1.442695, %v2120_v28 }
 0x4a3   : > { %v2197_v23 = vmul.f32 1.442695, %v2117_v16  ;;  %v2199_v17 = vmul.f32 1.442695, %v2118_v20  ;;  %v2037_v62 = vpop.xlane.xlu0 %2036 }
 0x4a4   : > { %3972 = vpow2.f32 %v2201_v53  ;;  %v2122_v2 = vsub.f32 %v5033_v57, %v2037_v62  ;;  %v2040_v61 = vpop.xlane.xlu1 %2039  ;;  %v2121_v33 = vsub.f32 %v5030_v39, %v2037_v62 }
 0x4a5   : > { %3974 = vpow2.f32 %v2203_v43  ;;  %v2124_v12 = vsub.f32 %v5043_v5, %v2040_v61  ;;  %v2123_v42 = vsub.f32 %v5040_v21, %v2040_v61 }
 0x4a6   : > { %3976 = vpow2.f32 %v2197_v23  ;;  %v2207_v40 = vmul.f32 1.442695, %v2122_v2  ;;  %2534 = vmatmul.mubr.bf16.gmra.mxu0 %v2393_v59  ;;  %v2205_v18 = vmul.f32 1.442695, %v2121_v33 }
 0x4a7   : > { %3978 = vpow2.f32 %v2199_v17  ;;  %v2211_v29 = vmul.f32 1.442695, %v2124_v12  ;;  %2541 = vmatprep.mubr.bf16.mxu0 %v2396_v37  ;;  %v2043_v27 = vpop.xlane.xlu0 %2042  ;;  %v2209_v30 = vmul.f32 1.442695, %v2123_v42 }
 0x4a8   : > { %v2126_v57 = vsub.f32 %v5053_v48, %v2043_v27  ;;  %v2046_v15 = vpop.xlane.xlu1 %2045  ;;  %3980 = vpow2.f32 %v2207_v40  ;;  %v2125_v21 = vsub.f32 %v5050_v46, %v2043_v27  ;;  %v2395_v48 = vpack.c.bf16 %v5380_v55, %v5378_v44 }
 0x4a9   : > { %v2128_v47 = vsub.f32 %v5065_v32, %v2046_v15  ;;  %v3416_v39 = vpop.f32.mrf.mxu0  ;;  %3982 = vpow2.f32 %v2211_v29  ;;  %v2127_v1 = vsub.f32 %v5062_v13, %v2046_v15 }
 0x4aa   : > { %v2215_v5 = vmul.f32 1.442695, %v2126_v57  ;;  %3984 = vpow2.f32 %v2205_v18  ;;  %v2213_v0 = vmul.f32 1.442695, %v2125_v21 }
 0x4ab   : > { %v3417_v38 = vpop.f32.mrf.mxu0  ;;  %v2049_v4 = vpop.xlane.xlu0 %2048  ;;  %v2219_v56 = vmul.f32 1.442695, %v2128_v47  ;;  %3986 = vpow2.f32 %v2209_v30  ;;  %v2217_v44 = vmul.f32 1.442695, %v2127_v1 }
 0x4ac   : > { %v5408_v41 = vadd.f32 %v3417_v38, %v3416_v39  ;;  %v2052_v10 = vpop.xlane.xlu1 %2051  ;;  %3988 = vpow2.f32 %v2215_v5  ;;  %v2130_v32 = vsub.f32 %v5077_v51, %v2049_v4  ;;  %v2129_v13 = vsub.f32 %v5074_v52, %v2049_v4 }
 0x4ad   : > { %v5413_v7 = vpop.f32.mrf.mxu0  ;;  %3990 = vpow2.f32 %v2219_v56  ;;  %v2132_v45 = vsub.f32 %v5087_v54, %v2052_v10  ;;  %v2131_v20 = vsub.f32 %v5084_v8, %v2052_v10 }
 0x4ae   : > { %6378 = vst [vmem:[#allocation29_spill] sm:$0xff] %v5408_v41  ;;  %6379 = vst [vmem:[#allocation30_spill] sm:$0xff] %v5413_v7  ;;  %2542 = vmatmul.mubr.bf16.gmra.mxu0 %v2395_v48  ;;  %v2223_v43 = vmul.f32 1.442695, %v2130_v32  ;;  %3992 = vpow2.f32 %v2213_v0  ;;  %v2221_v8 = vmul.f32 1.442695, %v2129_v13 }
 0x4af   : > { %v5416_v24 = vpop.f32.mrf.mxu0  ;;  %v2055_v46 = vpop.xlane.xlu0 %2054  ;;  %v2227_v62 = vmul.f32 1.442695, %v2132_v45  ;;  %3994 = vpow2.f32 %v2217_v44  ;;  %v2225_v12 = vmul.f32 1.442695, %v2131_v20 }
 0x4b0   : > { %6380 = vst [vmem:[#allocation31_spill] sm:$0xff] %v5416_v24  ;;  %v2058_v28 = vpop.xlane.xlu1 %2057  ;;  %v2133_v2 = vsub.f32 %v5093_v60, %v2055_v46  ;;  %v2134_v37 = vsub.f32 %v5095_v34, %v2055_v46  ;;  %3996 = vpow2.f32 %v2223_v43 }
 0x4b1   : > { %v3973_v26 = vpop.eup %3972  ;;  %v3422_v55 = vpop.f32.mrf.mxu0  ;;  %v2135_v42 = vsub.f32 %v5101_v22, %v2058_v28  ;;  %v2136_v29 = vsub.f32 %v5103_v19, %v2058_v28  ;;  %3998 = vpow2.f32 %v2227_v62 }
 0x4b2   : > { %v3975_v16 = vpop.eup %3974  ;;  %v2229_v18 = vmul.f32 1.442695, %v2133_v2  ;;  %4000 = vpow2.f32 %v2221_v8  ;;  %v2231_v22 = vmul.f32 1.442695, %v2134_v37  ;;  %v6387_v8 = vld [vmem:[#allocation5_spill] sm:$0xff] }
 0x4b3   : > { %v3977_v53 = vpop.eup %3976  ;;  %v3423_v23 = vpop.f32.mrf.mxu0  ;;  %v2320_v39 = vadd.f32 %v3975_v16, %v3973_v26  ;;  %4002 = vpow2.f32 %v2225_v12  ;;  %v2233_v38 = vmul.f32 1.442695, %v2135_v42  ;;  %v2235_v4 = vmul.f32 1.442695, %v2136_v29 }
 0x4b4   : > { %v5421_v51 = vpop.xlane.xlu0 %2060  ;;  %v3979_v17 = vpop.eup %3978  ;;  %v5424_v54 = vadd.f32 %v3423_v23, %v3422_v55  ;;  %v2397_v27 = vpack.c.bf16 %v3973_v26, %v3977_v53  ;;  %4004 = vpow2.f32 %v2229_v18  ;;  %v6388_v18 = vld [vmem:[#allocation57_spill] sm:$0xff] }
 0x4b5   : > { %v5426_v61 = vpop.xlane.xlu1 %2063  ;;  %v5428_v59 = vpop.f32.mrf.mxu0  ;;  %v2317_v52 = vadd.f32 %v3979_v17, %v3977_v53  ;;  %v2398_v40 = vpack.c.bf16 %v3975_v16, %v3979_v17  ;;  %v2138_v45 = vsub.f32 %v5111_v36, %v5421_v51  ;;  %4006 = vpow2.f32 %v2231_v22  ;;  %v6384_v16 = vld [vmem:[#allocation8_spill] sm:$0xff] }
 0x4b6   : > { %6381 = vst [vmem:[#allocation32_spill] sm:$0xff] %v5424_v54  ;;  %6382 = vst [vmem:[#allocation33_spill] sm:$0xff] %v5428_v59  ;;  %v3981_v33 = vpop.eup %3980  ;;  %v2140_v13 = vsub.f32 %v6384_v16, %v5426_v61  ;;  %4008 = vpow2.f32 %v2235_v4  ;;  %v6386_v17 = vld [vmem:[#allocation56_spill] sm:$0xff]  ;;  %v2137_v12 = vsub.f32 %v6387_v8, %v5421_v51  ;;  %v6390_v51 = vld [vmem:[#allocation7_spill] sm:$0xff] }
 0x4b7   : > { %2318 = vadd.xlane.f32.xlu1 %v2317_v52  ;;  %v5433_v60 = vpop.f32.mrf.mxu0  ;;  %v3983_v15 = vpop.eup %3982  ;;  %2549 = vmatprep.mubr.bf16.mxu0 %v2398_v40  ;;  %v2239_v37 = vmul.f32 1.442695, %v2138_v45  ;;  %v6392_v16 = vld [vmem:[#allocation59_spill] sm:$0xff] }
 0x4b8   : > { %6383 = vst [vmem:[#allocation34_spill] sm:$0xff] %v5433_v60  ;;  %v5435_v57 = vpop.xlane.xlu0 %2066  ;;  %2550 = vmatmul.mubr.bf16.gmra.mxu0 %v2397_v27  ;;  %v2400_v30 = vpack.c.bf16 %v3983_v15, %v3981_v33  ;;  %v3985_v5 = vpop.eup %3984 }
 0x4b9   : > { %v5437_v47 = vpop.xlane.xlu1 %2069  ;;  %v3428_v34 = vpop.f32.mrf.mxu0  ;;  %v2323_v55 = vadd.f32 %v3985_v5, %v3981_v33 }
 0x4ba   : > { %v3987_v19 = vpop.eup %3986  ;;  %2557 = vmatprep.mubr.bf16.mxu0 %v2400_v30  ;;  %v6389_v30 = vld [vmem:[#allocation58_spill] sm:$0xff] }
 0x4bb   : > { %2321 = vadd.xlane.f32.xlu1 %v2320_v39  ;;  %v3429_v21 = vpop.f32.mrf.mxu0  ;;  %v3989_v10 = vpop.eup %3988  ;;  %v2399_v36 = vpack.c.bf16 %v3987_v19, %v3985_v5  ;;  %v2326_v42 = vadd.f32 %v3987_v19, %v3983_v15 }
 0x4bc   : > { %v2073_v56 = vpop.xlane.xlu0 %2072  ;;  %v5439_v48 = vadd.f32 %v3429_v21, %v3428_v34  ;;  %v5443_v0 = vpop.eup %3990 }
 0x4bd   : > { %v2145_v1 = vsub.f32 %v5141_v58, %v2073_v56  ;;  %v2146_v32 = vsub.f32 %v5145_v50, %v2073_v56  ;;  %v2076_v46 = vpop.xlane.xlu1 %2075  ;;  %v5449_v44 = vpop.f32.mrf.mxu0  ;;  %v2402_v2 = vpack.c.bf16 %v5443_v0, %v3989_v10  ;;  %v2139_v56 = vsub.f32 %v6390_v51, %v5426_v61 }
 0x4be   : > { %v2147_v28 = vsub.f32 %v5151_v49, %v2076_v46  ;;  %v2148_v26 = vsub.f32 %v5155_v25, %v2076_v46  ;;  %v6385_v49 = vld [vmem:[#allocation55_spill] sm:$0xff]  ;;  %v3993_v33 = vpop.eup %3992  ;;  %v6391_v46 = vld [vmem:[#allocation48_spill] sm:$0xff] }
 0x4bf   : > { %v2253_v58 = vmul.f32 1.442695, %v2145_v1  ;;  %v2255_v20 = vmul.f32 1.442695, %v2146_v32  ;;  %2324 = vadd.xlane.f32.xlu1 %v2323_v55  ;;  %v5453_v43 = vpop.f32.mrf.mxu0  ;;  %v3995_v29 = vpop.eup %3994  ;;  %v2243_v1 = vmul.f32 1.442695, %v2140_v13  ;;  %v2142_v45 = vsub.f32 %v6391_v46, %v5435_v57 }
 0x4c0   : > { %v2257_v50 = vmul.f32 1.442695, %v2147_v28  ;;  %v2259_v53 = vmul.f32 1.442695, %v2148_v26  ;;  %v2079_v23 = vpop.xlane.xlu0 %2078  ;;  %2558 = vmatmul.mubr.bf16.gmra.mxu0 %v2399_v36  ;;  %v3997_v21 = vpop.eup %3996  ;;  %v2237_v32 = vmul.f32 1.442695, %v2137_v12  ;;  %v2329_v26 = vadd.f32 %v3993_v33, %v3989_v10 }
 0x4c1   : > { %4010 = vpow2.f32 %v2253_v58  ;;  %v2149_v25 = vsub.f32 %v6385_v49, %v2079_v23  ;;  %v2150_v62 = vsub.f32 %v6386_v17, %v2079_v23  ;;  %v2082_v52 = vpop.xlane.xlu1 %2081  ;;  %v3434_v40 = vpop.f32.mrf.mxu0  ;;  %2565 = vmatprep.mubr.bf16.mxu0 %v2402_v2  ;;  %v6393_v13 = vld [vmem:[#allocation60_spill] sm:$0xff]  ;;  %v2401_v36 = vpack.c.bf16 %v3995_v29, %v3993_v33  ;;  %v6395_v33 = vld [vmem:[#allocation61_spill] sm:$0xff] }
 0x4c2   : > { %4012 = vpow2.f32 %v2255_v20  ;;  %v2151_v34 = vsub.f32 %v6388_v18, %v2082_v52  ;;  %v2152_v5 = vsub.f32 %v6389_v30, %v2082_v52  ;;  %v5466_v19 = vpop.eup %3998  ;;  %v2241_v49 = vmul.f32 1.442695, %v2139_v56 }
 0x4c3   : > { %4014 = vpow2.f32 %v2257_v50  ;;  %v2261_v27 = vmul.f32 1.442695, %v2149_v25  ;;  %v2263_v39 = vmul.f32 1.442695, %v2150_v62  ;;  %2327 = vadd.xlane.f32.xlu1 %v2326_v42  ;;  %v3435_v22 = vpop.f32.mrf.mxu0  ;;  %v4001_v58 = vpop.eup %4000  ;;  %v6394_v25 = vld [vmem:[#allocation51_spill] sm:$0xff]  ;;  %v2404_v17 = vpack.c.bf16 %v5466_v19, %v3997_v21 }
 0x4c4   : > { %4016 = vpow2.f32 %v2259_v53  ;;  %v2085_v4 = vpop.xlane.xlu0 %2084  ;;  %v5464_v15 = vadd.f32 %v3435_v22, %v3434_v40  ;;  %v2265_v55 = vmul.f32 1.442695, %v2151_v34  ;;  %v2267_v61 = vmul.f32 1.442695, %v2152_v5  ;;  %v4003_v23 = vpop.eup %4002  ;;  %v6397_v5 = vld [vmem:[#allocation10_spill] sm:$0xff] }
 0x4c5   : > { %4018 = vpow2.f32 %v2233_v38  ;;  %v5470_v28 = vpop.f32.mrf.mxu0  ;;  %v2153_v38 = vsub.f32 %v6392_v16, %v2085_v4  ;;  %v2154_v20 = vsub.f32 %v6393_v13, %v2085_v4  ;;  %v2088_v50 = vpop.xlane.xlu1 %2087  ;;  %v2144_v10 = vsub.f32 %v6394_v25, %v5437_v47  ;;  %v6398_v4 = vld [vmem:[#allocation50_spill] sm:$0xff] }
 0x4c6   : > { %4020 = vpow2.f32 %v2239_v37  ;;  %v5479_v62 = vpop.eup %4004  ;;  %v2247_v2 = vmul.f32 1.442695, %v2142_v45  ;;  %v2332_v8 = vadd.f32 %v3995_v29, %v5443_v0  ;;  %v2155_v37 = vsub.f32 %v6395_v33, %v2088_v50  ;;  %v6399_v45 = vld [vmem:[#allocation63_spill] sm:$0xff] }
 0x4c7   : > { %4022 = vpow2.f32 %v2261_v27  ;;  %2330 = vadd.xlane.f32.xlu1 %v2329_v26  ;;  %v5474_v53 = vpop.f32.mrf.mxu0  ;;  %v2269_v12 = vmul.f32 1.442695, %v2153_v38  ;;  %v4007_v40 = vpop.eup %4006  ;;  %v2271_v42 = vmul.f32 1.442695, %v2154_v20  ;;  %v6396_v27 = vld [vmem:[#allocation62_spill] sm:$0xff]  ;;  %v2141_v0 = vsub.f32 %v6397_v5, %v5435_v57  ;;  %v6400_v38 = vld [vmem:[#allocation64_spill] sm:$0xff] }
 0x4c8   : > { %4024 = vpow2.f32 %v2263_v39  ;;  %2566 = vmatmul.mubr.bf16.gmra.mxu0 %v2401_v36  ;;  %v2156_v18 = vsub.f32 %v6396_v27, %v2088_v50  ;;  %v2091_v34 = vpop.xlane.xlu0 %2090  ;;  %v5488_v30 = vpop.eup %4008  ;;  %v2251_v29 = vmul.f32 1.442695, %v2144_v10  ;;  %v2143_v51 = vsub.f32 %v6398_v4, %v5437_v47 }
 0x4c9   : > { %4026 = vpow2.f32 %v2243_v1  ;;  %v5481_v52 = vpop.f32.mrf.mxu0  ;;  %2573 = vmatprep.mubr.bf16.mxu0 %v2404_v17  ;;  %v2335_v1 = vadd.f32 %v4001_v58, %v3997_v21  ;;  %v2273_v46 = vmul.f32 1.442695, %v2155_v37  ;;  %v2157_v26 = vsub.f32 %v6399_v45, %v2091_v34  ;;  %v2094_v13 = vpop.xlane.xlu1 %2093  ;;  %v6402_v37 = vld [vmem:[#allocation66_spill] sm:$0xff] }
 0x4ca   : > { %4028 = vpow2.f32 %v2237_v32  ;;  %v2275_v57 = vmul.f32 1.442695, %v2156_v18  ;;  %v2245_v50 = vmul.f32 1.442695, %v2141_v0  ;;  %v2249_v25 = vmul.f32 1.442695, %v2143_v51 }
 0x4cb   : > { %4030 = vpow2.f32 %v2265_v55  ;;  %2333 = vadd.xlane.f32.xlu1 %v2332_v8  ;;  %v5486_v39 = vpop.f32.mrf.mxu0  ;;  %v2403_v55 = vpack.c.bf16 %v4003_v23, %v4001_v58  ;;  %v2406_v58 = vpack.c.bf16 %v5488_v30, %v4007_v40  ;;  %v2338_v17 = vadd.f32 %v4003_v23, %v5466_v19 }
 0x4cc   : > { %4032 = vpow2.f32 %v2267_v61  ;;  %v2158_v61 = vsub.f32 %v6400_v38, %v2091_v34  ;;  %v2277_v8 = vmul.f32 1.442695, %v2157_v26  ;;  %v2097_v34 = vpop.xlane.xlu0 %2096  ;;  %v5521_v19 = vadd.f32 %v4007_v40, %v5479_v62 }
 0x4cd   : > { %4034 = vpow2.f32 %v2241_v49  ;;  %v3443_v56 = vpop.f32.mrf.mxu0  ;;  %v2161_v40 = vsub.f32 %v5209_v6, %v2097_v34 }
 0x4ce   : > { %v5492_v22 = vpop.eup %4010  ;;  %4036 = vpow2.f32 %v2247_v2  ;;  %v2279_v18 = vmul.f32 1.442695, %v2158_v61  ;;  %v2100_v61 = vpop.xlane.xlu1 %2099 }
 0x4cf   : > { %v5496_v32 = vpop.eup %4012  ;;  %4038 = vpow2.f32 %v2269_v12  ;;  %2336 = vadd.xlane.f32.xlu1 %v2335_v1  ;;  %v3444_v20 = vpop.f32.mrf.mxu0  ;;  %v6401_v12 = vld [vmem:[#allocation65_spill] sm:$0xff] }
 0x4d0   : > { %v5499_v16 = vpop.eup %4014  ;;  %4040 = vpow2.f32 %v2271_v42  ;;  %v2359_v47 = vadd.f32 %v5496_v32, %v5492_v22  ;;  %v5506_v36 = vadd.f32 %v3444_v20, %v3443_v56  ;;  %2574 = vmatmul.mubr.bf16.gmra.mxu0 %v2403_v55  ;;  %v2159_v33 = vsub.f32 %v6401_v12, %v2094_v13 }
 0x4d1   : > { %v5504_v21 = vpop.eup %4016  ;;  %4042 = vpow2.f32 %v2251_v29  ;;  %v3446_v10 = vpop.f32.mrf.mxu0  ;;  %v2160_v42 = vsub.f32 %v6402_v37, %v2094_v13  ;;  %2581 = vmatprep.mubr.bf16.mxu0 %v2406_v58  ;;  %v2308_v56 = vadd.f32 %v5398_v31, %v5391_v35  ;;  %v2285_v58 = vmul.f32 1.442695, %v2161_v40 }
 0x4d2   : > { %v5509_v49 = vpop.eup %4018  ;;  %2360 = vadd.xlane.f32.xlu0 %v2359_v47  ;;  %4044 = vpow2.f32 %v2273_v46  ;;  %v2362_v0 = vadd.f32 %v5504_v21, %v5499_v16  ;;  %v2281_v46 = vmul.f32 1.442695, %v2159_v33 }
 0x4d3   : > { %v5512_v2 = vpop.eup %4020  ;;  %4046 = vpow2.f32 %v2275_v57  ;;  %2339 = vadd.xlane.f32.xlu1 %v2338_v17  ;;  %v3447_v5 = vpop.f32.mrf.mxu0  ;;  %v2405_v45 = vpack.c.bf16 %v5509_v49, %v5479_v62  ;;  %v2283_v55 = vmul.f32 1.442695, %v2160_v42  ;;  %v6403_v57 = vld [vmem:[#allocation67_spill] sm:$0xff] }
 0x4d4   : > { %v5516_v27 = vpop.eup %4022  ;;  %4048 = vpow2.f32 %v2245_v50  ;;  %v5525_v29 = vadd.f32 %v3447_v5, %v3446_v10  ;;  %v2162_v38 = vsub.f32 %v6403_v57, %v2097_v34 }
 0x4d5   : > { %v5523_v23 = vpop.eup %4024  ;;  %4050 = vpow2.f32 %v2249_v25  ;;  %v3449_v51 = vpop.f32.mrf.mxu0  ;;  %v2163_v25 = vsub.f32 %v5219_v9, %v2100_v61 }
 0x4d6   : > { %v5527_v4 = vpop.eup %4026  ;;  %2363 = vadd.xlane.f32.xlu0 %v2362_v0  ;;  %4052 = vpow2.f32 %v2277_v8  ;;  %v2365_v35 = vadd.f32 %v5523_v23, %v5516_v27  ;;  %v2287_v17 = vmul.f32 1.442695, %v2162_v38  ;;  %v6404_v8 = vld [vmem:[#allocation11_spill] sm:$0xff] }
 0x4d7   : > { %v5531_v1 = vpop.eup %4028  ;;  %4054 = vpow2.f32 %v2279_v18  ;;  %2309 = vadd.xlane.f32.xlu1 %v2308_v56  ;;  %v3450_v13 = vpop.f32.mrf.mxu0  ;;  %v2408_v6 = vpack.c.bf16 %v5527_v4, %v5512_v2  ;;  %v2164_v12 = vsub.f32 %v6404_v8, %v2100_v61  ;;  %v2289_v5 = vmul.f32 1.442695, %v2163_v25 }
 0x4d8   : > { %v5536_v26 = vpop.eup %4030  ;;  %v5543_v20 = vadd.f32 %v3450_v13, %v3449_v51  ;;  %2582 = vmatmul.mubr.bf16.gmra.mxu0 %v2405_v45  ;;  %4056 = vpow2.f32 %v2281_v46 }
 0x4d9   : > { %v5541_v31 = vpop.eup %4032  ;;  %v3452_v47 = vpop.f32.mrf.mxu0  ;;  %2589 = vmatprep.mubr.bf16.mxu0 %v2408_v6  ;;  %4058 = vpow2.f32 %v2283_v55  ;;  %v2291_v51 = vmul.f32 1.442695, %v2164_v12 }
 0x4da   : > { %v5547_v62 = vpop.eup %4034  ;;  %2366 = vadd.xlane.f32.xlu0 %v2365_v35  ;;  %v2368_v37 = vadd.f32 %v5541_v31, %v5536_v26  ;;  %4060 = vpow2.f32 %v2285_v58 }
 0x4db   : > { %v5549_v50 = vpop.eup %4036  ;;  %2306 = vadd.xlane.f32.xlu1 %v5373_v14  ;;  %v3453_v33 = vpop.f32.mrf.mxu0  ;;  %4062 = vpow2.f32 %v2287_v17  ;;  %v2407_v56 = vpack.c.bf16 %v5547_v62, %v5531_v1 }
 0x4dc   : > { %v5552_v10 = vpop.eup %4038  ;;  %v5560_v18 = vadd.f32 %v3453_v33, %v3452_v47  ;;  %4064 = vpow2.f32 %v2289_v5  ;;  %v6405_v5 = vld [vmem:[#allocation28_spill] sm:$0xff] }
 0x4dd   : > { %v5558_v42 = vpop.eup %4040  ;;  %v3455_v9 = vpop.f32.mrf.mxu0  ;;  %4066 = vpow2.f32 %v2291_v51 }
 0x4de   : > { %v4043_v34 = vpop.eup %4042  ;;  %2369 = vadd.xlane.f32.xlu0 %v2368_v37  ;;  %v2371_v46 = vadd.f32 %v5558_v42, %v5552_v10 }
 0x4df   : > { %v5562_v0 = vpop.eup %4044  ;;  %2303 = vadd.xlane.f32.xlu1 %v5369_v63  ;;  %v3456_v14 = vpop.f32.mrf.mxu0  ;;  %v2410_v55 = vpack.c.bf16 %v4043_v34, %v5549_v50 }
 0x4e0   : > { %v4047_v40 = vpop.eup %4046  ;;  %v5569_v45 = vadd.f32 %v3456_v14, %v3455_v9  ;;  %2590 = vmatmul.mubr.bf16.gmra.mxu0 %v2407_v56 }
 0x4e1   : > { %v4049_v57 = vpop.eup %4048  ;;  %v3458_v38 = vpop.f32.mrf.mxu0  ;;  %2597 = vmatprep.mubr.bf16.mxu0 %v2410_v55  ;;  %v2374_v35 = vadd.f32 %v4047_v40, %v5562_v0 }
 0x4e2   : > { %2372 = vadd.xlane.f32.xlu0 %v2371_v46  ;;  %v4051_v61 = vpop.eup %4050  ;;  %v2411_v46 = vpack.c.bf16 %v5499_v16, %v5492_v22  ;;  %v2416_v22 = vpack.c.bf16 %v4047_v40, %v5558_v42  ;;  %v6409_v16 = vld [vmem:[#allocation49_spill] sm:$0xff]  ;;  %v2347_v42 = vadd.f32 %v5531_v1, %v5512_v2  ;;  %v2344_v40 = vadd.f32 %v5509_v49, %v5488_v30  ;;  %v5610_v2 = vld [vmem:[%s6175_s2] sm:$0xff] }
 0x4e3   : > { %v4053_v63 = vpop.eup %4052  ;;  %2300 = vadd.xlane.f32.xlu1 %v5371_v3  ;;  %v3459_v13 = vpop.f32.mrf.mxu0  ;;  %v2409_v8 = vpack.c.bf16 %v4051_v61, %v4049_v57  ;;  %v2412_v3 = vpack.c.bf16 %v5504_v21, %v5496_v32  ;;  %v2414_v32 = vpack.c.bf16 %v5541_v31, %v5523_v23  ;;  %v6407_v21 = vld [vmem:[#allocation53_spill] sm:$0xff]  ;;  %v2353_v23 = vadd.f32 %v4049_v57, %v5549_v50  ;;  %v6412_v50 = vld [vmem:[#allocation4_spill] sm:$0xff]  ;;  %v6415_v1 = vld [vmem:[#allocation26_spill] sm:$0xff] }
 0x4e4   : > { %v4055_v6 = vpop.eup %4054  ;;  %v5574_v47 = vadd.f32 %v3459_v13, %v3458_v38  ;;  %v6410_v31 = vld [vmem:[#allocation9_spill] sm:$0xff]  ;;  %6414 = vst [vmem:[#allocation39_spill] sm:$0xff] %v5610_v2 }
 0x4e5   : > { %v3461_v58 = vpop.f32.mrf.mxu0  ;;  %v4057_v25 = vpop.eup %4056  ;;  %v2377_v12 = vadd.f32 %v4055_v6, %v4053_v63 }
 0x4e6   : > { %2375 = vadd.xlane.f32.xlu0 %v2374_v35  ;;  %v4059_v33 = vpop.eup %4058  ;;  %v6408_v35 = vld [vmem:[#allocation52_spill] sm:$0xff] }
 0x4e7   : > { %2297 = vadd.xlane.f32.xlu1 %v5363_v11  ;;  %v3462_v17 = vpop.f32.mrf.mxu0  ;;  %v4061_v9 = vpop.eup %4060  ;;  %v2380_v51 = vadd.f32 %v4059_v33, %v4057_v25  ;;  %v6406_v11 = vld [vmem:[#allocation54_spill] sm:$0xff] }
 0x4e8   : > { %v5577_v37 = vadd.f32 %v3462_v17, %v3461_v58  ;;  %2598 = vmatmul.mubr.bf16.gmra.mxu0 %v2409_v8  ;;  %v4063_v14 = vpop.eup %4062  ;;  %v2413_v58 = vpack.c.bf16 %v5536_v26, %v5516_v27  ;;  %v2356_v17 = vadd.f32 %v4051_v61, %v4043_v34  ;;  %v2415_v8 = vpack.c.bf16 %v5562_v0, %v5552_v10  ;;  %v6411_v26 = vld [vmem:[#allocation6_spill] sm:$0xff]  ;;  %v6417_v0 = vld [vmem:[#allocation25_spill] sm:$0xff] }
 0x4e9   : > { %2605 = vmatprep.mubr.bf16.mxu0 %v2412_v3  ;;  %v4065_v56 = vpop.eup %4064  ;;  %v2383_v55 = vadd.f32 %v4063_v14, %v4061_v9  ;;  %v2418_v27 = vpack.c.bf16 %v4059_v33, %v4055_v6  ;;  %v2417_v34 = vpack.c.bf16 %v4057_v25, %v4053_v63  ;;  %v6419_v6 = vld [vmem:[#allocation24_spill] sm:$0xff] }
 0x4ea   : > { %2378 = vadd.xlane.f32.xlu0 %v2377_v12  ;;  %v4067_v38 = vpop.eup %4066  ;;  %v2350_v12 = vadd.f32 %v5547_v62, %v5527_v4  ;;  %v2419_v4 = vpack.c.bf16 %v4065_v56, %v4061_v9  ;;  %v6413_v62 = vld [vmem:[#allocation27_spill] sm:$0xff] }
 0x4eb   : > { %2294 = vadd.xlane.f32.xlu1 %v6405_v5  ;;  %v2386_v13 = vadd.f32 %v4067_v38, %v4065_v56  ;;  %v2420_v10 = vpack.c.bf16 %v4067_v38, %v4063_v14  ;;  %v6421_v9 = vld [vmem:[#allocation23_spill] sm:$0xff]  ;;  %v6423_v56 = vld [vmem:[#allocation21_spill] sm:$0xff]  ;;  %v6424_v38 = vld [vmem:[#allocation22_spill] sm:$0xff] }
 0x4ee   : > { %2381 = vadd.xlane.f32.xlu0 %v2380_v51 }
 0x4ef   : > { %1309 = vadd.xlane.f32.xlu1 %v6406_v11 }
 0x4f0   : > { %2606 = vmatmul.mubr.bf16.gmra.mxu0 %v2411_v46 }
 0x4f1   : > { %2613 = vmatprep.mubr.bf16.mxu0 %v2414_v32 }
 0x4f2   : > { %2384 = vadd.xlane.f32.xlu0 %v2383_v55 }
 0x4f3   : > { %1306 = vadd.xlane.f32.xlu1 %v6407_v21 }
 0x4f6   : > { %2387 = vadd.xlane.f32.xlu0 %v2386_v13 }
 0x4f7   : > { %1303 = vadd.xlane.f32.xlu1 %v6408_v35  ;;  %v6425_v35 = vld [vmem:[#allocation19_spill] sm:$0xff] }
 0x4f8   : > { %2614 = vmatmul.mubr.bf16.gmra.mxu0 %v2413_v58 }
 0x4f9   : > { %2621 = vmatprep.mubr.bf16.mxu0 %v2416_v22 }
 0x4fa   : > { %2357 = vadd.xlane.f32.xlu0 %v2356_v17 }
 0x4fb   : > { %1300 = vadd.xlane.f32.xlu1 %v6409_v16  ;;  %v6426_v16 = vld [vmem:[#allocation3_spill] sm:$0xff] }
 0x4fe   : > { %2354 = vadd.xlane.f32.xlu0 %v2353_v23 }
 0x4ff   : > { %1297 = vadd.xlane.f32.xlu1 %v6410_v31 }
 0x500   : > { %2622 = vmatmul.mubr.bf16.gmra.mxu0 %v2415_v8 }
 0x501   : > { %2629 = vmatprep.mubr.bf16.mxu0 %v2418_v27 }
 0x502   : > { %2351 = vadd.xlane.f32.xlu0 %v2350_v12  ;;  %v6427_v12 = vld [vmem:[#allocation20_spill] sm:$0xff] }
 0x503   : > { %1294 = vadd.xlane.f32.xlu1 %v6411_v26 }
 0x506   : > { %2348 = vadd.xlane.f32.xlu0 %v2347_v42 }
 0x507   : > { %1291 = vadd.xlane.f32.xlu1 %v6412_v50 }
 0x508   : > { %2630 = vmatmul.mubr.bf16.gmra.mxu0 %v2417_v34  ;;  %v6428_v34 = vld [vmem:[#allocation2_spill] sm:$0xff] }
 0x509   : > { %2637 = vmatprep.mubr.bf16.mxu0 %v2420_v10 }
 0x50a   : > { %2345 = vadd.xlane.f32.xlu0 %v2344_v40  ;;  %v2313_v27 = vpop.xlane.xlu1 %2312 }
 0x50e   : > { %2342 = vadd.xlane.f32.xlu0 %v5521_v19  ;;  %v5644_v10 = vpop.xlane.xlu1 %2315 }
 0x510   : > { %2638 = vmatmul.mubr.bf16.gmra.mxu0 %v2419_v4  ;;  %v6429_v4 = vld [vmem:[#allocation47_spill] sm:$0xff] }
 0x511   : > { %3744 = vmatprep.mubr.msk.f32.mxu0 %vm252_vm0, %v5610_v2 }
 0x512   : > { %1357 = vadd.xlane.f32.xlu0 %v6413_v62 }
 0x516   : > { %1354 = vadd.xlane.f32.xlu0 %v6415_v1  ;;  %v3464_v30 = vpop.f32.mrf.mxu0 }
 0x518   : > { %2746 = vrot.lane.b32.xlu1 %v5610_v2, %s4207_s9  ;;  %v3465_v49 = vpop.f32.mrf.mxu0 }
 0x519   : > { %v5617_v19 = vadd.f32 %v3465_v49, %v3464_v30  ;;  %v6430_v30 = vld [vmem:[#allocation17_spill] sm:$0xff] }
 0x51a   : > { %1351 = vadd.xlane.f32.xlu0 %v6417_v0  ;;  %v3467_v57 = vpop.f32.mrf.mxu0 }
 0x51b   : > { %6416 = vst [vmem:[#allocation40_spill] sm:$0xff] %v5617_v19 }
 0x51c   : > { %v3468_v61 = vpop.f32.mrf.mxu0 }
 0x51d   : > { %v5620_v63 = vadd.f32 %v3468_v61, %v3467_v57  ;;  %v6431_v57 = vld [vmem:[#allocation42_spill] sm:$0xff] }
 0x51e   : > { %1348 = vadd.xlane.f32.xlu0 %v6419_v6  ;;  %v3470_v25 = vpop.f32.mrf.mxu0 }
 0x51f   : > { %6418 = vst [vmem:[#allocation37_spill] sm:$0xff] %v5620_v63 }
 0x520   : > { %v3471_v33 = vpop.f32.mrf.mxu0 }
 0x521   : > { %v5623_v3 = vadd.f32 %v3471_v33, %v3470_v25  ;;  %v6432_v25 = vld [vmem:[#allocation18_spill] sm:$0xff] }
 0x522   : > { %1345 = vadd.xlane.f32.xlu0 %v6421_v9  ;;  %v3473_v5 = vpop.f32.mrf.mxu0 }
 0x523   : > { %6420 = vst [vmem:[#allocation38_spill] sm:$0xff] %v5623_v3 }
 0x524   : > { %v3474_v51 = vpop.f32.mrf.mxu0 }
 0x525   : > { %v5626_v14 = vadd.f32 %v3474_v51, %v3473_v5  ;;  %v6433_v5 = vld [vmem:[#allocation41_spill] sm:$0xff] }
 0x526   : > { %1342 = vadd.xlane.f32.xlu0 %v6423_v56  ;;  %v3476_v11 = vpop.f32.mrf.mxu0 }
 0x527   : > { %6422 = vst [vmem:[#allocation36_spill] sm:$0xff] %v5626_v14 }
 0x528   : > { %v3477_v46 = vpop.f32.mrf.mxu0 }
 0x529   : > { %v5629_v55 = vadd.f32 %v3477_v46, %v3476_v11  ;;  %v6434_v11 = vld [vmem:[#allocation46_spill] sm:$0xff] }
 0x52a   : > { %1339 = vadd.xlane.f32.xlu0 %v6424_v38  ;;  %v3479_v32 = vpop.f32.mrf.mxu0 }
 0x52c   : > { %v3480_v21 = vpop.f32.mrf.mxu0 }
 0x52d   : > { %v5632_v13 = vadd.f32 %v3480_v21, %v3479_v32 }
 0x52e   : > { %1336 = vadd.xlane.f32.xlu0 %v6425_v35  ;;  %v3482_v58 = vpop.f32.mrf.mxu0  ;;  %v6435_v35 = vld [vmem:[#allocation15_spill] sm:$0xff] }
 0x530   : > { %v3483_v17 = vpop.f32.mrf.mxu0 }
 0x531   : > { %v5635_v22 = vadd.f32 %v3483_v17, %v3482_v58 }
 0x532   : > { %1288 = vadd.xlane.f32.xlu0 %v6426_v16  ;;  %v3485_v23 = vpop.f32.mrf.mxu0 }
 0x534   : > { %v3486_v31 = vpop.f32.mrf.mxu0 }
 0x535   : > { %v5638_v8 = vadd.f32 %v3486_v31, %v3485_v23  ;;  %v6436_v31 = vld [vmem:[#allocation45_spill] sm:$0xff] }
 0x536   : > { %1333 = vadd.xlane.f32.xlu0 %v6427_v12  ;;  %v3488_v26 = vpop.f32.mrf.mxu0 }
 0x538   : > { %v3489_v42 = vpop.f32.mrf.mxu0 }
 0x539   : > { %v5641_v50 = vadd.f32 %v3489_v42, %v3488_v26 }
 0x53a   : > { %1285 = vadd.xlane.f32.xlu0 %v6428_v34  ;;  %v3491_v40 = vpop.f32.mrf.mxu0 }
 0x53c   : > { %1282 = vadd.xlane.f32.xlu1 %v6429_v4  ;;  %v3492_v62 = vpop.f32.mrf.mxu0 }
 0x53d   : > { %v5647_v1 = vadd.f32 %v3492_v62, %v3491_v40  ;;  %v6437_v40 = vld [vmem:[#allocation16_spill] sm:$0xff] }
 0x53e   : > { %1330 = vadd.xlane.f32.xlu0 %v6430_v30  ;;  %v3494_v49 = vpop.f32.mrf.mxu0 }
 0x540   : > { %v5650_v0 = vpop.xlane.xlu1 %2318  ;;  %1267 = vadd.xlane.f32.xlu1 %v6431_v57  ;;  %v3495_v61 = vpop.f32.mrf.mxu0  ;;  %v6438_v57 = vld [vmem:[#allocation44_spill] sm:$0xff] }
 0x541   : > { %v5653_v6 = vadd.f32 %v3495_v61, %v3494_v49 }
 0x542   : > { %1327 = vadd.xlane.f32.xlu0 %v6432_v25  ;;  %v3497_v33 = vpop.f32.mrf.mxu0 }
 0x544   : > { %v5656_v9 = vpop.xlane.xlu1 %2321  ;;  %1264 = vadd.xlane.f32.xlu1 %v6433_v5  ;;  %v3498_v51 = vpop.f32.mrf.mxu0 }
 0x545   : > { %v5659_v56 = vadd.f32 %v3498_v51, %v3497_v33  ;;  %v6439_v51 = vld [vmem:[#allocation13_spill] sm:$0xff] }
 0x546   : > { %1279 = vadd.xlane.f32.xlu0 %v6434_v11  ;;  %v3500_v46 = vpop.f32.mrf.mxu0 }
 0x548   : > { %v5662_v38 = vpop.xlane.xlu1 %2324  ;;  %v3501_v32 = vpop.f32.mrf.mxu0 }
 0x549   : > { %v5664_v21 = vadd.f32 %v3501_v32, %v3500_v46 }
 0x54a   : > { %1324 = vadd.xlane.f32.xlu0 %v6435_v35  ;;  %v3503_v58 = vpop.f32.mrf.mxu0 }
 0x54c   : > { %v5667_v17 = vpop.xlane.xlu1 %2327  ;;  %v3504_v16 = vpop.f32.mrf.mxu0 }
 0x54d   : > { %v5669_v23 = vadd.f32 %v3504_v16, %v3503_v58  ;;  %v6440_v16 = vld [vmem:[#allocation43_spill] sm:$0xff] }
 0x54e   : > { %1276 = vadd.xlane.f32.xlu0 %v6436_v31  ;;  %v3506_v12 = vpop.f32.mrf.mxu0 }
 0x550   : > { %v5672_v26 = vpop.xlane.xlu1 %2330  ;;  %v3507_v42 = vpop.f32.mrf.mxu0 }
 0x551   : > { %v5674_v34 = vadd.f32 %v3507_v42, %v3506_v12 }
 0x552   : > { %1321 = vadd.xlane.f32.xlu0 %v6437_v40  ;;  %v3509_v4 = vpop.f32.mrf.mxu0 }
 0x554   : > { %v5677_v62 = vpop.xlane.xlu1 %2333  ;;  %v3510_v30 = vpop.f32.mrf.mxu0 }
 0x555   : > { %v5679_v49 = vadd.f32 %v3510_v30, %v3509_v4  ;;  %v6441_v30 = vld [vmem:[#allocation14_spill] sm:$0xff] }
 0x556   : > { %1273 = vadd.xlane.f32.xlu0 %v6438_v57  ;;  %v3576_v61 = vpop.f32.mrf.mxu0 }
 0x558   : > { %v5682_v25 = vpop.xlane.xlu1 %2336  ;;  %v3577_v33 = vpop.f32.mrf.mxu0 }
 0x559   : > { %v5684_v5 = vadd.f32 %v3577_v33, %v3576_v61 }
 0x55a   : > { %1318 = vadd.xlane.f32.xlu0 %v6439_v51  ;;  %v3579_v46 = vpop.f32.mrf.mxu0 }
 0x55b   : > { %v5687_v11 = vpop.xlane.xlu0 %2360 }
 0x55c   : > { %v5689_v32 = vpop.xlane.xlu1 %2339  ;;  %v3580_v35 = vpop.f32.mrf.mxu0 }
 0x55d   : > { %v5691_v58 = vadd.f32 %v3580_v35, %v3579_v46  ;;  %v6442_v35 = vld [vmem:[#allocation12_spill] sm:$0xff] }
 0x55e   : > { %1270 = vadd.xlane.f32.xlu0 %v6440_v16  ;;  %v3582_v12 = vpop.f32.mrf.mxu0 }
 0x55f   : > { %v5694_v31 = vpop.xlane.xlu0 %2363 }
 0x560   : > { %v2310_v42 = vpop.xlane.xlu1 %2309  ;;  %v3583_v40 = vpop.f32.mrf.mxu0 }
 0x561   : > { %4068 = vrcp.f32 %v2310_v42  ;;  %v3584_v4 = vadd.f32 %v3583_v40, %v3582_v12 }
 0x562   : > { %1315 = vadd.xlane.f32.xlu0 %v6441_v30  ;;  %v3585_v61 = vpop.f32.mrf.mxu0  ;;  %4070 = vrcp.f32 %v2313_v27  ;;  %v5708_v27 = vld [vmem:[%s6175_s2 + $0x10] sm:$0xff] }
 0x563   : > { %v5697_v57 = vpop.xlane.xlu0 %2366  ;;  %6443 = vst [vmem:[#allocation35_spill] sm:$0xff] %v5708_v27  ;;  %2750 = vrot.lane.b32.xlu1 %v5708_v27, %s4207_s9 }
 0x564   : > { %v2307_v33 = vpop.xlane.xlu1 %2306  ;;  %v3586_v51 = vpop.f32.mrf.mxu0 }
 0x565   : > { %4072 = vrcp.f32 %v2307_v33  ;;  %v3587_v46 = vadd.f32 %v3586_v51, %v3585_v61 }
 0x566   : > { %1312 = vadd.xlane.f32.xlu0 %v6442_v35  ;;  %v3588_v2 = vpop.f32.mrf.mxu0  ;;  %4074 = vrcp.f32 %v5644_v10 }
 0x567   : > { %v5700_v16 = vpop.xlane.xlu0 %2369 }
 0x568   : > { %v2304_v41 = vpop.xlane.xlu1 %2303  ;;  %v3589_v42 = vpop.f32.mrf.mxu0 }
 0x569   : > { %4076 = vrcp.f32 %v2304_v41  ;;  %v3590_v12 = vadd.f32 %v3589_v42, %v3588_v2  ;;  %v5717_v2 = vld [vmem:[%s6175_s2 + $0x18] sm:$0xff] }
 0x56a   : > { %v3591_v30 = vpop.f32.mrf.mxu0  ;;  %6444 = vst [vmem:[#allocation8_spill] sm:$0xff] %v5717_v2  ;;  %2752 = vrot.lane.b32.xlu1 %v5717_v2, %s4207_s9 }
 0x56b   : > { %v5703_v40 = vpop.xlane.xlu0 %2372 }
 0x56c   : > { %v2301_v61 = vpop.xlane.xlu1 %2300  ;;  %v3592_v33 = vpop.f32.mrf.mxu0 }
 0x56d   : > { %4078 = vrcp.f32 %v2301_v61  ;;  %v3593_v51 = vadd.f32 %v3592_v33, %v3591_v30 }
 0x56e   : > { %v4069_v10 = vpop.eup %4068  ;;  %v3594_v41 = vpop.f32.mrf.mxu0  ;;  %4080 = vrcp.f32 %v5650_v0 }
 0x56f   : > { %v5712_v35 = vpop.xlane.xlu0 %2375  ;;  %v5719_v42 = vmul.f32 %v4069_v10, %v3593_v51  ;;  %v4071_v61 = vpop.eup %4070 }
 0x570   : > { %v2298_v27 = vpop.xlane.xlu1 %2297  ;;  %v3595_v19 = vpop.f32.mrf.mxu0 }
 0x571   : > { %6445 = vst [vmem:[#allocation55_spill] sm:$0xff] %v5719_v42  ;;  %4082 = vrcp.f32 %v2298_v27  ;;  %v3596_v30 = vadd.f32 %v3595_v19, %v3594_v41 }
 0x572   : > { %v4073_v33 = vpop.eup %4072  ;;  %v3597_v24 = vpop.f32.mrf.mxu0  ;;  %4084 = vrcp.f32 %v5656_v9  ;;  %v5743_v9 = vld [vmem:[%s6175_s2 + $0x8] sm:$0xff] }
 0x573   : > { %v5724_v63 = vpop.xlane.xlu0 %2378  ;;  %v5726_v7 = vmul.f32 %v4073_v33, %v3590_v12  ;;  %v5728_v54 = vmul.f32 %v4071_v61, %v3596_v30  ;;  %v4075_v2 = vpop.eup %4074  ;;  %6450 = vst [vmem:[#allocation7_spill] sm:$0xff] %v5743_v9 }
 0x574   : > { %v2295_v51 = vpop.xlane.xlu1 %2294  ;;  %v3598_v10 = vpop.f32.mrf.mxu0 }
 0x575   : > { %6446 = vst [vmem:[#allocation56_spill] sm:$0xff] %v5726_v7  ;;  %6447 = vst [vmem:[#allocation5_spill] sm:$0xff] %v5728_v54  ;;  %4086 = vrcp.f32 %v2295_v51  ;;  %v3599_v0 = vadd.f32 %v3598_v10, %v3597_v24 }
 0x576   : > { %v4077_v42 = vpop.eup %4076  ;;  %4088 = vrcp.f32 %v5662_v38 }
 0x577   : > { %v5731_v3 = vpop.xlane.xlu0 %2381  ;;  %v5733_v27 = vmul.f32 %v4075_v2, %v3599_v0  ;;  %v5735_v19 = vmul.f32 %v4077_v42, %v3587_v46  ;;  %4090 = vrcp.f32 %v5667_v17 }
 0x578   : > { %v5738_v12 = vpop.xlane.xlu1 %1309  ;;  %v3600_v41 = vpop.f32.mrf.mxu0  ;;  %4092 = vrcp.f32 %v5672_v26 }
 0x579   : > { %6448 = vst [vmem:[#allocation57_spill] sm:$0xff] %v5733_v27  ;;  %6449 = vst [vmem:[#allocation58_spill] sm:$0xff] %v5735_v19  ;;  %4094 = vrcp.f32 %v5677_v62 }
 0x57a   : > { %v4079_v61 = vpop.eup %4078  ;;  %v3601_v24 = vpop.f32.mrf.mxu0  ;;  %4096 = vrcp.f32 %v5682_v25 }
 0x57b   : > { %v5745_v30 = vpop.xlane.xlu0 %2384  ;;  %v5749_v2 = vmul.f32 %v4079_v61, %v3584_v4  ;;  %v3602_v38 = vadd.f32 %v3601_v24, %v3600_v41  ;;  %v4081_v42 = vpop.eup %4080  ;;  %4098 = vrcp.f32 %v5689_v32 }
 0x57c   : > { %2748 = vrot.lane.b32.xlu0 %v5743_v9, %s4207_s9  ;;  %v5752_v46 = vpop.xlane.xlu1 %1306  ;;  %v3603_v33 = vpop.f32.mrf.mxu0 }
 0x57d   : > { %6451 = vst [vmem:[#allocation48_spill] sm:$0xff] %v5749_v2  ;;  %v5754_v10 = vmul.f32 %v4081_v42, %v3602_v38 }
 0x57e   : > { %v4083_v51 = vpop.eup %4082  ;;  %v3604_v19 = vpop.f32.mrf.mxu0 }
 0x57f   : > { %6452 = vst [vmem:[#allocation59_spill] sm:$0xff] %v5754_v10  ;;  %v5756_v0 = vpop.xlane.xlu0 %2387  ;;  %v5759_v7 = vmul.f32 %v4083_v51, %v5691_v58  ;;  %v3605_v4 = vadd.f32 %v3604_v19, %v3603_v33  ;;  %v4085_v17 = vpop.eup %4084 }
 0x580   : > { %v5762_v61 = vpop.xlane.xlu1 %1303  ;;  %v3606_v41 = vpop.f32.mrf.mxu0 }
 0x581   : > { %6453 = vst [vmem:[#allocation60_spill] sm:$0xff] %v5759_v7  ;;  %v5764_v9 = vmul.f32 %v4085_v17, %v3605_v4 }
 0x582   : > { %v4087_v24 = vpop.eup %4086  ;;  %v3607_v38 = vpop.f32.mrf.mxu0 }
 0x583   : > { %6454 = vst [vmem:[#allocation51_spill] sm:$0xff] %v5764_v9  ;;  %v5766_v2 = vpop.xlane.xlu0 %2357  ;;  %v5769_v42 = vmul.f32 %v4087_v24, %v5684_v5  ;;  %v3608_v58 = vadd.f32 %v3607_v38, %v3606_v41  ;;  %v4089_v26 = vpop.eup %4088 }
 0x584   : > { %v5772_v51 = vpop.xlane.xlu1 %1300  ;;  %v3609_v19 = vpop.f32.mrf.mxu0 }
 0x585   : > { %6455 = vst [vmem:[#allocation61_spill] sm:$0xff] %v5769_v42  ;;  %v5774_v33 = vmul.f32 %v4089_v26, %v3608_v58  ;;  %v4091_v27 = vpop.eup %4090 }
 0x586   : > { %v3610_v54 = vpop.f32.mrf.mxu0  ;;  %v4093_v58 = vpop.eup %4092 }
 0x587   : > { %6456 = vst [vmem:[#allocation62_spill] sm:$0xff] %v5774_v33  ;;  %v2355_v7 = vpop.xlane.xlu0 %2354  ;;  %v3611_v4 = vadd.f32 %v3610_v54, %v3609_v19  ;;  %v4095_v33 = vpop.eup %4094 }
 0x588   : > { %v5777_v17 = vpop.xlane.xlu1 %1297  ;;  %v3612_v10 = vpop.f32.mrf.mxu0 }
 0x589   : > { %v5779_v5 = vmul.f32 %v4091_v27, %v3611_v4 }
 0x58a   : > { %v3613_v62 = vpop.f32.mrf.mxu0 }
 0x58b   : > { %6457 = vst [vmem:[#allocation10_spill] sm:$0xff] %v5779_v5  ;;  %v2352_v24 = vpop.xlane.xlu0 %2351  ;;  %v3614_v41 = vadd.f32 %v3613_v62, %v3612_v10  ;;  %v4097_v62 = vpop.eup %4096 }
 0x58c   : > { %v5782_v38 = vpop.xlane.xlu1 %1294  ;;  %v3615_v26 = vpop.f32.mrf.mxu0 }
 0x58d   : > { %v5784_v42 = vmul.f32 %v4093_v58, %v3614_v41 }
 0x58e   : > { %v3616_v25 = vpop.f32.mrf.mxu0 }
 0x58f   : > { %6458 = vst [vmem:[#allocation50_spill] sm:$0xff] %v5784_v42  ;;  %v2349_v9 = vpop.xlane.xlu0 %2348  ;;  %v3617_v54 = vadd.f32 %v3616_v25, %v3615_v26 }
 0x590   : > { %v5786_v19 = vpop.xlane.xlu1 %1291  ;;  %v3618_v60 = vpop.f32.mrf.mxu0 }
 0x591   : > { %v5788_v27 = vmul.f32 %v4095_v33, %v3617_v54  ;;  %v4099_v33 = vpop.eup %4098 }
 0x592   : > { %v3619_v5 = vpop.f32.mrf.mxu0 }
 0x593   : > { %v2346_v4 = vpop.xlane.xlu0 %2345  ;;  %v3620_v32 = vadd.f32 %v3619_v5, %v3618_v60 }
 0x594   : > { %4100 = vrcp.f32 %v2346_v4  ;;  %v5790_v10 = vpop.permute.xlu1 %2746  ;;  %v3621_v59 = vpop.f32.mrf.mxu0 }
 0x595   : > { %3704 = vmatprep.mubr.msk.f32.mxu1 %vm252_vm0, %v5790_v10  ;;  %v5794_v41 = vmul.f32 %v4097_v62, %v3620_v32 }
 0x596   : > { %v3622_v26 = vpop.f32.mrf.mxu0 }
 0x597   : > { %v2343_v58 = vpop.xlane.xlu0 %2342  ;;  %v3623_v25 = vadd.f32 %v3622_v26, %v3621_v59 }
 0x598   : > { %4102 = vrcp.f32 %v2343_v58  ;;  %v3624_v54 = vpop.f32.mrf.mxu0 }
 0x599   : > { %4104 = vrcp.f32 %v2349_v9  ;;  %v5797_v4 = vmul.f32 %v4099_v33, %v3623_v25 }
 0x59a   : > { %4106 = vrcp.f32 %v5738_v12  ;;  %v3625_v5 = vpop.f32.mrf.mxu0 }
 0x59b   : > { %v1358_v60 = vpop.xlane.xlu0 %1357  ;;  %v3626_v14 = vadd.f32 %v3625_v5, %v3624_v54 }
 0x59c   : > { %4108 = vrcp.f32 %v1358_v60  ;;  %v3627_v42 = vpop.f32.mrf.mxu0 }
 0x59d   : > { %4110 = vrcp.f32 %v2352_v24 }
 0x59e   : > { %4112 = vrcp.f32 %v5752_v46  ;;  %v3628_v62 = vpop.f32.mrf.mxu0 }
 0x59f   : > { %v1355_v32 = vpop.xlane.xlu0 %1354  ;;  %v3629_v59 = vadd.f32 %v3628_v62, %v3627_v42 }
 0x5a0   : > { %4114 = vrcp.f32 %v1355_v32  ;;  %v3630_v9 = vpop.f32.mrf.mxu0 }
 0x5a1   : > { %v4101_v58 = vpop.eup %4100  ;;  %4116 = vrcp.f32 %v2355_v7 }
 0x5a2   : > { %4118 = vrcp.f32 %v5762_v61  ;;  %v5801_v12 = vmul.f32 %v4101_v58, %v3629_v59  ;;  %v3631_v25 = vpop.f32.mrf.mxu0 }
 0x5a3   : > { %v1352_v26 = vpop.xlane.xlu0 %1351  ;;  %v3632_v24 = vadd.f32 %v3631_v25, %v3630_v9 }
 0x5a4   : > { %4120 = vrcp.f32 %v1352_v26  ;;  %v3633_v60 = vpop.f32.mrf.mxu0 }
 0x5a5   : > { %v4103_v33 = vpop.eup %4102  ;;  %4122 = vrcp.f32 %v5766_v2 }
 0x5a6   : > { %v4105_v54 = vpop.eup %4104  ;;  %v5804_v46 = vmul.f32 %v4103_v33, %v3626_v14  ;;  %4124 = vrcp.f32 %v5772_v51  ;;  %v3634_v61 = vpop.f32.mrf.mxu0 }
 0x5a7   : > { %v5807_v7 = vmul.f32 %v4105_v54, %v3632_v24  ;;  %v1349_v42 = vpop.xlane.xlu0 %1348  ;;  %v4107_v5 = vpop.eup %4106  ;;  %v3635_v62 = vadd.f32 %v3634_v61, %v3633_v60 }
 0x5a8   : > { %4126 = vrcp.f32 %v1349_v42  ;;  %v3636_v59 = vpop.f32.mrf.mxu0  ;;  %v5817_v9 = vmul.f32 %v4107_v5, %v5577_v37 }
 0x5a9   : > { %v4109_v32 = vpop.eup %4108  ;;  %4128 = vrcp.f32 %v5687_v11 }
 0x5aa   : > { %v4111_v58 = vpop.eup %4110  ;;  %v5811_v2 = vmul.f32 %v4109_v32, %v5679_v49  ;;  %4130 = vrcp.f32 %v5777_v17  ;;  %v3637_v25 = vpop.f32.mrf.mxu0 }
 0x5ab   : > { %v5814_v14 = vmul.f32 %v4111_v58, %v3635_v62  ;;  %v1346_v51 = vpop.xlane.xlu0 %1345  ;;  %v4113_v26 = vpop.eup %4112  ;;  %v3638_v33 = vadd.f32 %v3637_v25, %v3636_v59 }
 0x5ac   : > { %4132 = vrcp.f32 %v1346_v51  ;;  %3712 = vmatprep.subr.msk.mxu0 %vm252_vm0, %v5811_v2  ;;  %v3639_v17 = vpop.f32.mrf.mxu0  ;;  %v5831_v60 = vmul.f32 %v4113_v26, %v5574_v47 }
 0x5ad   : > { %v4115_v11 = vpop.eup %4114  ;;  %4134 = vrcp.f32 %v5694_v31  ;;  %3713 = vmatpush3.xpose.msk.msra.mxu0 %vm252_vm0, %v5817_v9 }
 0x5ae   : > { %v4117_v49 = vpop.eup %4116  ;;  %v5825_v24 = vmul.f32 %v4115_v11, %v5674_v34  ;;  %4136 = vrcp.f32 %v5782_v38  ;;  %v3640_v5 = vpop.f32.mrf.mxu0 }
 0x5af   : > { %v5828_v37 = vmul.f32 %v4117_v49, %v3638_v33  ;;  %v1343_v54 = vpop.xlane.xlu0 %1342  ;;  %v4119_v42 = vpop.eup %4118  ;;  %v3641_v61 = vadd.f32 %v3640_v5, %v3639_v17 }
 0x5b0   : > { %4138 = vrcp.f32 %v1343_v54  ;;  %3714 = vmatprep.subr.msk.mxu0 %vm252_vm0, %v5825_v24  ;;  %v3642_v32 = vpop.f32.mrf.mxu0  ;;  %v5844_v58 = vmul.f32 %v4119_v42, %v5569_v45 }
 0x5b1   : > { %v4121_v31 = vpop.eup %4120  ;;  %3715 = vmatpush3.xpose.msk.msra.mxu0 %vm252_vm0, %v5831_v60  ;;  %4140 = vrcp.f32 %v5786_v19 }
 0x5b2   : > { %v4123_v34 = vpop.eup %4122  ;;  %v5838_v38 = vmul.f32 %v4121_v31, %v5669_v23  ;;  %v3643_v51 = vpop.f32.mrf.mxu0 }
 0x5b3   : > { %v5841_v47 = vmul.f32 %v4123_v34, %v3641_v61  ;;  %v1340_v62 = vpop.xlane.xlu0 %1339  ;;  %v4125_v59 = vpop.eup %4124  ;;  %v3644_v25 = vadd.f32 %v3643_v51, %v3642_v32 }
 0x5b4   : > { %4142 = vrcp.f32 %v1340_v62  ;;  %3716 = vmatprep.subr.msk.mxu0 %vm252_vm0, %v5838_v38  ;;  %v3645_v11 = vpop.f32.mrf.mxu0  ;;  %v5856_v49 = vmul.f32 %v4125_v59, %v5560_v18 }
 0x5b5   : > { %v4127_v26 = vpop.eup %4126  ;;  %3717 = vmatpush3.xpose.msk.msra.mxu0 %vm252_vm0, %v5844_v58 }
 0x5b6   : > { %v4129_v23 = vpop.eup %4128  ;;  %v5851_v19 = vmul.f32 %v4127_v26, %v5664_v21  ;;  %v3646_v54 = vpop.f32.mrf.mxu0 }
 0x5b7   : > { %v5853_v33 = vmul.f32 %v4129_v23, %v3644_v25  ;;  %v1337_v45 = vpop.xlane.xlu0 %1336  ;;  %v4131_v17 = vpop.eup %4130  ;;  %v3647_v5 = vadd.f32 %v3646_v54, %v3645_v11 }
 0x5b8   : > { %4144 = vrcp.f32 %v1337_v45  ;;  %3718 = vmatprep.subr.msk.mxu0 %vm252_vm0, %v5851_v19  ;;  %v5862_v21 = vpop.f32.mrf.mxu0  ;;  %v5870_v32 = vmul.f32 %v4131_v17, %v5543_v20 }
 0x5b9   : > { %v4133_v42 = vpop.eup %4132  ;;  %3719 = vmatpush3.xpose.msk.msra.mxu0 %vm252_vm0, %v5856_v49 }
 0x5ba   : > { %v4135_v31 = vpop.eup %4134  ;;  %v5865_v61 = vmul.f32 %v4133_v42, %v5659_v56  ;;  %v5872_v59 = vpop.f32.mrf.mxu0 }
 0x5bb   : > { %v5867_v34 = vmul.f32 %v4135_v31, %v3647_v5  ;;  %v1289_v18 = vpop.xlane.xlu0 %1288  ;;  %v4137_v62 = vpop.eup %4136 }
 0x5bc   : > { %4146 = vrcp.f32 %v1289_v18  ;;  %3720 = vmatprep.subr.msk.mxu0 %vm252_vm0, %v5865_v61  ;;  %v5878_v26 = vpop.f32.mrf.mxu0  ;;  %v5884_v20 = vmul.f32 %v4137_v62, %v5525_v29 }
 0x5bd   : > { %v4139_v51 = vpop.eup %4138  ;;  %3721 = vmatpush3.xpose.msk.msra.mxu0 %vm252_vm0, %v5870_v32 }
 0x5be   : > { %v5881_v56 = vmul.f32 %v4139_v51, %v5653_v6  ;;  %v4141_v23 = vpop.eup %4140  ;;  %v5886_v11 = vpop.f32.mrf.mxu0 }
 0x5bf   : > { %v1334_v25 = vpop.xlane.xlu0 %1333  ;;  %v5898_v29 = vmul.f32 %v4141_v23, %v5506_v36  ;;  %v3442_v36 = vadd.f32 %v5486_v39, %v5481_v52 }
 0x5c0   : > { %4148 = vrcp.f32 %v1334_v25  ;;  %3722 = vmatprep.subr.msk.mxu0 %vm252_vm0, %v5881_v56  ;;  %v5892_v17 = vpop.f32.mrf.mxu0 }
 0x5c1   : > { %v4143_v45 = vpop.eup %4142  ;;  %3723 = vmatpush3.xpose.msk.msra.mxu0 %vm252_vm0, %v5884_v20  ;;  %6459 = vst [vmem:[#allocation63_spill] sm:$0xff] %v5898_v29 }
 0x5c2   : > { %v5895_v6 = vmul.f32 %v4143_v45, %v5647_v1  ;;  %v5900_v42 = vpop.f32.mrf.mxu0 }
 0x5c3   : > { %v1286_v54 = vpop.xlane.xlu0 %1285 }
 0x5c4   : > { %4150 = vrcp.f32 %v1286_v54  ;;  %3724 = vmatprep.subr.msk.mxu0 %vm252_vm0, %v5895_v6  ;;  %v5906_v31 = vpop.f32.mrf.mxu0 }
 0x5c5   : > { %v4145_v5 = vpop.eup %4144  ;;  %3725 = vmatpush3.xpose.msk.msra.mxu0 %vm252_vm0, %v5898_v29  ;;  %v1283_v18 = vpop.xlane.xlu1 %1282 }
 0x5c6   : > { %v5909_v1 = vmul.f32 %v4145_v5, %v5641_v50  ;;  %4152 = vrcp.f32 %v1283_v18  ;;  %v5913_v51 = vpop.f32.mrf.mxu0  ;;  %v3439_v18 = vadd.f32 %v5474_v53, %v5470_v28 }
 0x5c7   : > { %v1331_v62 = vpop.xlane.xlu0 %1330 }
 0x5c8   : > { %4154 = vrcp.f32 %v1331_v62  ;;  %3726 = vmatprep.subr.msk.mxu0 %vm252_vm0, %v5909_v1  ;;  %v3660_v23 = vpop.f32.mrf.mxu0 }
 0x5c9   : > { %v4147_v25 = vpop.eup %4146 }
 0x5ca   : > { %v5917_v45 = vmul.f32 %v4147_v25, %v3442_v36  ;;  %v3661_v29 = vpop.f32.mrf.mxu0 }
 0x5cb   : > { %v1328_v54 = vpop.xlane.xlu0 %1327 }
 0x5cc   : > { %4156 = vrcp.f32 %v1328_v54  ;;  %3727 = vmatpush3.xpose.msk.msra.mxu0 %vm252_vm0, %v5917_v45  ;;  %v3663_v52 = vpop.f32.mrf.mxu0 }
 0x5cd   : > { %v4149_v50 = vpop.eup %4148  ;;  %4158 = vrcp.f32 %v5756_v0 }
 0x5ce   : > { %v5923_v39 = vmul.f32 %v4149_v50, %v5638_v8  ;;  %4160 = vrcp.f32 %v5745_v30  ;;  %v3664_v62 = vpop.f32.mrf.mxu0 }
 0x5cf   : > { %v1280_v5 = vpop.xlane.xlu0 %1279 }
 0x5d0   : > { %6460 = vst [vmem:[#allocation64_spill] sm:$0xff] %v5923_v39  ;;  %4162 = vrcp.f32 %v1280_v5  ;;  %3728 = vmatprep.subr.msk.mxu0 %vm252_vm0, %v5923_v39  ;;  %v3666_v25 = vpop.f32.mrf.mxu0 }
 0x5d1   : > { %v4151_v36 = vpop.eup %4150  ;;  %4164 = vrcp.f32 %v5731_v3 }
 0x5d2   : > { %v5930_v54 = vmul.f32 %v4151_v36, %v3439_v18  ;;  %v3667_v50 = vpop.f32.mrf.mxu0 }
 0x5d3   : > { %v1325_v0 = vpop.xlane.xlu0 %1324  ;;  %v4153_v8 = vpop.eup %4152 }
 0x5d4   : > { %6461 = vst [vmem:[#allocation65_spill] sm:$0xff] %v5930_v54  ;;  %4166 = vrcp.f32 %v1325_v0  ;;  %3729 = vmatpush3.xpose.msk.msra.mxu0 %vm252_vm0, %v5930_v54  ;;  %v3669_v28 = vpop.f32.mrf.mxu0  ;;  %v5940_v18 = vmul.f32 %v4153_v8, %v5464_v15  ;;  %v3668_v0 = vadd.f32 %v3667_v50, %v3666_v25  ;;  %v3665_v50 = vadd.f32 %v3664_v62, %v3663_v52 }
 0x5d5   : > { %v4155_v30 = vpop.eup %4154  ;;  %4168 = vrcp.f32 %v5724_v63  ;;  %v3662_v52 = vadd.f32 %v3661_v29, %v3660_v23  ;;  %v3659_v29 = vadd.f32 %v5913_v51, %v5906_v31  ;;  %v3656_v31 = vadd.f32 %v5900_v42, %v5892_v17 }
 0x5d6   : > { %v5936_v53 = vmul.f32 %v4155_v30, %v5635_v22  ;;  %v3670_v36 = vpop.f32.mrf.mxu0  ;;  %v3433_v30 = vadd.f32 %v5453_v43, %v5449_v44  ;;  %v3653_v42 = vadd.f32 %v5886_v11, %v5878_v26  ;;  %v6467_v11 = vld [vmem:[#allocation62_spill] sm:$0xff] }
 0x5d7   : > { %v1277_v5 = vpop.xlane.xlu0 %1276  ;;  %v3671_v39 = vadd.f32 %v3670_v36, %v3669_v28 }
 0x5d8   : > { %4170 = vrcp.f32 %v1277_v5  ;;  %3730 = vmatprep.subr.msk.mxu0 %vm252_vm0, %v5936_v53  ;;  %v1268_v5 = vpop.xlane.xlu1 %1267 }
 0x5d9   : > { %v4157_v3 = vpop.eup %4156  ;;  %3731 = vmatpush3.xpose.msk.msra.mxu0 %vm252_vm0, %v5940_v18  ;;  %4172 = vrcp.f32 %v5712_v35 }
 0x5da   : > { %v4159_v54 = vpop.eup %4158  ;;  %v5947_v22 = vmul.f32 %v4157_v3, %v5632_v13  ;;  %v6462_v3 = vld [vmem:[#allocation50_spill] sm:$0xff] }
 0x5db   : > { %v2741_v63 = vmul.f32 %v4159_v54, %v3671_v39  ;;  %v1322_v15 = vpop.xlane.xlu0 %1321  ;;  %v4161_v8 = vpop.eup %4160 }
 0x5dc   : > { %4174 = vrcp.f32 %v1322_v15  ;;  %3732 = vmatprep.subr.msk.mxu0 %vm252_vm0, %v5947_v22  ;;  %v2740_v28 = vmul.f32 %v4161_v8, %v3668_v0  ;;  %v6465_v15 = vld [vmem:[#allocation34_spill] sm:$0xff] }
 0x5dd   : > { %v4163_v25 = vpop.eup %4162  ;;  %3672 = vmatprep.subr.msk.mxu1 %vm252_vm0, %v2741_v63  ;;  %4176 = vrcp.f32 %v5703_v40  ;;  %v6464_v63 = vld [vmem:[#allocation33_spill] sm:$0xff] }
 0x5de   : > { %3673 = vmatpush3.xpose.msk.msra.mxu1 %vm252_vm0, %v5797_v4  ;;  %v5957_v13 = vmul.f32 %v4163_v25, %v3433_v30  ;;  %v4165_v44 = vpop.eup %4164  ;;  %v3427_v8 = vadd.f32 %v6465_v15, %v6464_v63  ;;  %v1265_v30 = vpop.xlane.xlu1 %1264  ;;  %v6475_v15 = vld [vmem:[#allocation57_spill] sm:$0xff] }
 0x5df   : > { %3674 = vmatprep.subr.msk.mxu1 %vm252_vm0, %v2740_v28  ;;  %v1274_v35 = vpop.xlane.xlu0 %1273  ;;  %v2739_v39 = vmul.f32 %v4165_v44, %v3665_v50  ;;  %v6466_v50 = vld [vmem:[#allocation10_spill] sm:$0xff] }
 0x5e0   : > { %4178 = vrcp.f32 %v1274_v35  ;;  %3733 = vmatpush3.xpose.msk.msra.mxu0 %vm252_vm0, %v5957_v13 }
 0x5e1   : > { %v4167_v43 = vpop.eup %4166  ;;  %4180 = vrcp.f32 %v5700_v16 }
 0x5e2   : > { %3675 = vmatpush3.xpose.msk.msra.mxu1 %vm252_vm0, %v5794_v41  ;;  %v5966_v4 = vmul.f32 %v4167_v43, %v5629_v55  ;;  %v4169_v62 = vpop.eup %4168 }
 0x5e3   : > { %3676 = vmatprep.subr.msk.mxu1 %vm252_vm0, %v2739_v39  ;;  %v1319_v40 = vpop.xlane.xlu0 %1318  ;;  %v2738_v23 = vmul.f32 %v4169_v62, %v3662_v52  ;;  %v3650_v52 = vadd.f32 %v5872_v59, %v5862_v21  ;;  %v6468_v39 = vld [vmem:[#allocation38_spill] sm:$0xff] }
 0x5e4   : > { %4182 = vrcp.f32 %v1319_v40  ;;  %3734 = vmatprep.subr.msk.mxu0 %vm252_vm0, %v5966_v4 }
 0x5e5   : > { %v4171_v54 = vpop.eup %4170  ;;  %4184 = vrcp.f32 %v5697_v57 }
 0x5e6   : > { %3677 = vmatpush3.xpose.msk.msra.mxu1 %vm252_vm0, %v5788_v27  ;;  %v5977_v55 = vmul.f32 %v4171_v54, %v5439_v48  ;;  %v4173_v41 = vpop.eup %4172  ;;  %v6463_v48 = vld [vmem:[#allocation36_spill] sm:$0xff] }
 0x5e7   : > { %3678 = vmatprep.subr.msk.mxu1 %vm252_vm0, %v2738_v23  ;;  %v1271_v16 = vpop.xlane.xlu0 %1270  ;;  %v2737_v51 = vmul.f32 %v4173_v41, %v3659_v29  ;;  %v6469_v23 = vld [vmem:[#allocation51_spill] sm:$0xff]  ;;  %v6471_v41 = vld [vmem:[#allocation30_spill] sm:$0xff] }
 0x5e8   : > { %4186 = vrcp.f32 %v1271_v16  ;;  %3735 = vmatpush3.xpose.msk.msra.mxu0 %vm252_vm0, %v5977_v55 }
 0x5e9   : > { %v4175_v36 = vpop.eup %4174  ;;  %4188 = vrcp.f32 %v1268_v5  ;;  %v6470_v5 = vld [vmem:[#allocation32_spill] sm:$0xff] }
 0x5ea   : > { %3679 = vmatpush3.xpose.msk.msra.mxu1 %vm252_vm0, %v6462_v3  ;;  %v5988_v27 = vmul.f32 %v4175_v36, %v6463_v48  ;;  %v4177_v0 = vpop.eup %4176  ;;  %v6472_v36 = vld [vmem:[#allocation31_spill] sm:$0xff]  ;;  %v6474_v3 = vld [vmem:[#allocation37_spill] sm:$0xff] }
 0x5eb   : > { %3680 = vmatprep.subr.msk.mxu1 %vm252_vm0, %v2737_v51  ;;  %v1316_v57 = vpop.xlane.xlu0 %1315  ;;  %v2736_v25 = vmul.f32 %v4177_v0, %v3656_v31  ;;  %v3421_v31 = vadd.f32 %v6472_v36, %v6471_v41  ;;  %v6473_v51 = vld [vmem:[#allocation59_spill] sm:$0xff] }
 0x5ec   : > { %4190 = vrcp.f32 %v1316_v57  ;;  %3736 = vmatprep.subr.msk.mxu0 %vm252_vm0, %v5988_v27 }
 0x5ed   : > { %v4179_v17 = vpop.eup %4178  ;;  %4192 = vrcp.f32 %v1265_v30 }
 0x5ee   : > { %3681 = vmatpush3.xpose.msk.msra.mxu1 %vm252_vm0, %v6466_v50  ;;  %v5999_v28 = vmul.f32 %v4179_v17, %v3427_v8  ;;  %v4181_v44 = vpop.eup %4180  ;;  %v6476_v8 = vld [vmem:[#allocation40_spill] sm:$0xff]  ;;  %v6477_v17 = vld [vmem:[#allocation29_spill] sm:$0xff]  ;;  %v6480_v50 = vld [vmem:[#allocation55_spill] sm:$0xff] }
 0x5ef   : > { %3682 = vmatprep.subr.msk.mxu1 %vm252_vm0, %v2736_v25  ;;  %v1313_v35 = vpop.xlane.xlu0 %1312  ;;  %v2735_v26 = vmul.f32 %v4181_v44, %v3653_v42  ;;  %v6478_v42 = vld [vmem:[#allocation5_spill] sm:$0xff]  ;;  %v6479_v25 = vld [vmem:[#allocation39_spill] sm:$0xff]  ;;  %v6484_v44 = vld [vmem:[#allocation60_spill] sm:$0xff] }
 0x5f0   : > { %4194 = vrcp.f32 %v1313_v35  ;;  %3737 = vmatpush3.xpose.msk.msra.mxu0 %vm252_vm0, %v5999_v28  ;;  %v6482_v35 = vld [vmem:[#allocation58_spill] sm:$0xff] }
 0x5f1   : > { %v4183_v43 = vpop.eup %4182 }
 0x5f2   : > { %3683 = vmatpush3.xpose.msk.msra.mxu1 %vm252_vm0, %v6467_v11  ;;  %v6009_v40 = vmul.f32 %v4183_v43, %v6468_v39  ;;  %v4185_v62 = vpop.eup %4184 }
 0x5f3   : > { %3684 = vmatprep.subr.msk.mxu1 %vm252_vm0, %v2735_v26  ;;  %v2734_v29 = vmul.f32 %v4185_v62, %v3650_v52 }
 0x5f4   : > { %3738 = vmatprep.subr.msk.mxu0 %vm252_vm0, %v6009_v40 }
 0x5f5   : > { %v4187_v54 = vpop.eup %4186 }
 0x5f6   : > { %3685 = vmatpush3.xpose.msk.msra.mxu1 %vm252_vm0, %v6469_v23  ;;  %v6017_v21 = vmul.f32 %v4187_v54, %v6470_v5  ;;  %v4189_v59 = vpop.eup %4188 }
 0x5f7   : > { %3686 = vmatprep.subr.msk.mxu1 %vm252_vm0, %v2734_v29  ;;  %v6031_v57 = vmul.f32 %v4189_v59, %v3421_v31 }
 0x5f8   : > { %3739 = vmatpush3.xpose.msk.msra.mxu0 %vm252_vm0, %v6017_v21 }
 0x5f9   : > { %v4191_v16 = vpop.eup %4190 }
 0x5fa   : > { %3687 = vmatpush3.xpose.msk.msra.mxu1 %vm252_vm0, %v6473_v51  ;;  %v6027_v48 = vmul.f32 %v4191_v16, %v6474_v3  ;;  %v4193_v0 = vpop.eup %4192 }
 0x5fb   : > { %3688 = vmatprep.subr.msk.mxu1 %vm252_vm0, %v5867_v34  ;;  %v1616_v34 = vmul.f32 %v4193_v0, %v6477_v17 }
 0x5fc   : > { %3740 = vmatprep.subr.msk.mxu0 %vm252_vm0, %v6027_v48 }
 0x5fd   : > { %v4195_v63 = vpop.eup %4194  ;;  %3741 = vmatpush3.xpose.msk.msra.mxu0 %vm252_vm0, %v6031_v57 }
 0x5fe   : > { %3689 = vmatpush3.xpose.msk.msra.mxu1 %vm252_vm0, %v6475_v15  ;;  %v1632_v30 = vmul.f32 %v4195_v63, %v6476_v8 }
 0x5ff   : > { %3690 = vmatprep.subr.msk.mxu1 %vm252_vm0, %v5853_v33  ;;  %v6481_v33 = vld [vmem:[#allocation56_spill] sm:$0xff] }
 0x600   : > { %3742 = vmatprep.subr.msk.mxu0 %vm252_vm0, %v1632_v30 }
 0x601   : > { %3743 = vmatpush3.xpose.msk.msra.mxu0 %vm252_vm0, %v1616_v34 }
 0x602   : > { %3691 = vmatpush3.xpose.msk.msra.mxu1 %vm252_vm0, %v6478_v42 }
 0x603   : > { %3692 = vmatprep.subr.msk.mxu1 %vm252_vm0, %v5841_v47  ;;  %v6483_v47 = vld [vmem:[#allocation48_spill] sm:$0xff] }
 0x604   : > { %3745 = vmatmul.mubr.msk.f32.vlgmr.msra.gmra.mxu0 %vm252_vm0, %v6479_v25 }
 0x606   : > { %3693 = vmatpush3.xpose.msk.msra.mxu1 %vm252_vm0, %v6480_v50 }
 0x607   : > { %3694 = vmatprep.subr.msk.mxu1 %vm252_vm0, %v5828_v37  ;;  %v6485_v37 = vld [vmem:[#allocation61_spill] sm:$0xff] }
 0x60a   : > { %3695 = vmatpush3.xpose.msk.msra.mxu1 %vm252_vm0, %v6481_v33 }
 0x60b   : > { %3696 = vmatprep.subr.msk.mxu1 %vm252_vm0, %v5814_v14  ;;  %v2749_v14 = vpop.permute.xlu0 %2748 }
 0x60e   : > { %3697 = vmatpush3.xpose.msk.msra.mxu1 %vm252_vm0, %v6482_v35 }
 0x60f   : > { %3698 = vmatprep.subr.msk.mxu1 %vm252_vm0, %v5807_v7  ;;  %v2751_v7 = vpop.permute.xlu1 %2750 }
 0x612   : > { %3699 = vmatpush3.xpose.msk.msra.mxu1 %vm252_vm0, %v6483_v47 }
 0x613   : > { %3700 = vmatprep.subr.msk.mxu1 %vm252_vm0, %v5801_v12  ;;  %v6486_v12 = vld [vmem:[#allocation7_spill] sm:$0xff] }
 0x616   : > { %3701 = vmatpush3.xpose.msk.msra.mxu1 %vm252_vm0, %v6484_v44 }
 0x617   : > { %3702 = vmatprep.subr.msk.mxu1 %vm252_vm0, %v5804_v46  ;;  %v6487_v46 = vld [vmem:[#allocation63_spill] sm:$0xff] }
 0x61a   : > { %3703 = vmatpush3.xpose.msk.msra.mxu1 %vm252_vm0, %v6485_v37 }
 0x61b   : > { %3752 = vmatprep.subr.msk.mxu1 %vm252_vm0, %v5811_v2  ;;  %v6488_v2 = vld [vmem:[#allocation64_spill] sm:$0xff] }
 0x61d   : > { %3705 = vmatmul.mubr.msk.f32.vlgmr.msra.gmra.mxu1 %vm252_vm0, %v5790_v10  ;;  %v2753_v10 = vpop.permute.xlu1 %2752 }
 0x61e   : > { %3768 = vmatpush3.xpose.msk.msra.mxu1 %vm252_vm0, %v5817_v9  ;;  %3706 = vmatprep.mubr.msk.f32.mxu1 %vm252_vm0, %v2749_v14  ;;  %v6489_v9 = vld [vmem:[#allocation65_spill] sm:$0xff] }
 0x61f   : > { %3753 = vmatprep.subr.msk.mxu1 %vm252_vm0, %v5825_v24  ;;  %v6490_v24 = vld [vmem:[#allocation35_spill] sm:$0xff] }
 0x621   : > { %3707 = vmatmul.mubr.msk.f32.gmra.mxu1 %vm252_vm0, %v2749_v14 }
 0x622   : > { %3769 = vmatpush3.xpose.msk.msra.mxu1 %vm252_vm0, %v5831_v60  ;;  %3708 = vmatprep.mubr.msk.f32.mxu1 %vm252_vm0, %v2751_v7  ;;  %v6491_v60 = vld [vmem:[#allocation8_spill] sm:$0xff] }
 0x623   : > { %3754 = vmatprep.subr.msk.mxu1 %vm252_vm0, %v5838_v38 }
 0x625   : > { %3709 = vmatmul.mubr.msk.f32.gmra.mxu1 %vm252_vm0, %v2751_v7 }
 0x626   : > { %3770 = vmatpush3.xpose.msk.msra.mxu1 %vm252_vm0, %v5844_v58  ;;  %3710 = vmatprep.mubr.msk.f32.mxu1 %vm252_vm0, %v2753_v10 }
 0x627   : > { %3755 = vmatprep.subr.msk.mxu1 %vm252_vm0, %v5851_v19 }
 0x629   : > { %3711 = vmatmul.mubr.msk.f32.gmra.mxu1 %vm252_vm0, %v2753_v10 }
 0x62a   : > { %3771 = vmatpush3.xpose.msk.msra.mxu1 %vm252_vm0, %v5856_v49  ;;  %3746 = vmatprep.mubr.msk.f32.mxu1 %vm252_vm0, %v6486_v12 }
 0x62b   : > { %3756 = vmatprep.subr.msk.mxu1 %vm252_vm0, %v5865_v61 }
 0x62e   : > { %3772 = vmatpush3.xpose.msk.msra.mxu1 %vm252_vm0, %v5870_v32 }
 0x62f   : > { %3757 = vmatprep.subr.msk.mxu1 %vm252_vm0, %v5881_v56 }
 0x632   : > { %3773 = vmatpush3.xpose.msk.msra.mxu1 %vm252_vm0, %v5884_v20 }
 0x633   : > { %3758 = vmatprep.subr.msk.mxu1 %vm252_vm0, %v5895_v6 }
 0x636   : > { %3774 = vmatpush3.xpose.msk.msra.mxu1 %vm252_vm0, %v6487_v46 }
 0x637   : > { %3759 = vmatprep.subr.msk.mxu1 %vm252_vm0, %v5909_v1 }
 0x63a   : > { %3775 = vmatpush3.xpose.msk.msra.mxu1 %vm252_vm0, %v5917_v45 }
 0x63b   : > { %3760 = vmatprep.subr.msk.mxu1 %vm252_vm0, %v6488_v2 }
 0x63e   : > { %3776 = vmatpush3.xpose.msk.msra.mxu1 %vm252_vm0, %v6489_v9 }
 0x63f   : > { %3761 = vmatprep.subr.msk.mxu1 %vm252_vm0, %v5936_v53 }
 0x642   : > { %3777 = vmatpush3.xpose.msk.msra.mxu1 %vm252_vm0, %v5940_v18 }
 0x643   : > { %3762 = vmatprep.subr.msk.mxu1 %vm252_vm0, %v5947_v22 }
 0x646   : > { %3778 = vmatpush3.xpose.msk.msra.mxu1 %vm252_vm0, %v5957_v13 }
 0x647   : > { %3763 = vmatprep.subr.msk.mxu1 %vm252_vm0, %v5966_v4 }
 0x64a   : > { %3779 = vmatpush3.xpose.msk.msra.mxu1 %vm252_vm0, %v5977_v55 }
 0x64b   : > { %3764 = vmatprep.subr.msk.mxu1 %vm252_vm0, %v5988_v27 }
 0x64e   : > { %3780 = vmatpush3.xpose.msk.msra.mxu1 %vm252_vm0, %v5999_v28 }
 0x64f   : > { %3765 = vmatprep.subr.msk.mxu1 %vm252_vm0, %v6009_v40 }
 0x652   : > { %3781 = vmatpush3.xpose.msk.msra.mxu1 %vm252_vm0, %v6017_v21 }
 0x653   : > { %3766 = vmatprep.subr.msk.mxu1 %vm252_vm0, %v6027_v48 }
 0x656   : > { %3782 = vmatpush3.xpose.msk.msra.mxu1 %vm252_vm0, %v6031_v57 }
 0x657   : > { %3767 = vmatprep.subr.msk.mxu1 %vm252_vm0, %v1632_v30 }
 0x65a   : > { %3783 = vmatpush3.xpose.msk.msra.mxu1 %vm252_vm0, %v1616_v34 }
 0x65d   : > { %3747 = vmatmul.mubr.msk.f32.vlgmr.msra.gmra.mxu1 %vm252_vm0, %v6486_v12 }
 0x65e   : > { %3748 = vmatprep.mubr.msk.f32.mxu1 %vm252_vm0, %v6490_v24 }
 0x661   : > { %3749 = vmatmul.mubr.msk.f32.gmra.mxu1 %vm252_vm0, %v6490_v24 }
 0x662   : > { %3750 = vmatprep.mubr.msk.f32.mxu1 %vm252_vm0, %v6491_v60 }
 0x665   : > { %3751 = vmatmul.mubr.msk.f32.gmra.mxu1 %vm252_vm0, %v6491_v60 }
 0x6c4   : > { %v3117_v38 = vpop.f32.mrf.mxu0 }
 0x6c6   : > { %v3119_v19 = vpop.f32.mrf.mxu0 }
 0x6dd   : > { %v2924_v58 = vpop.f32.mrf.mxu1 }
 0x6de   : > { %v3118_v49 = vadd.f32 %v3117_v38, %v2924_v58 }
 0x6df   : > { %v2926_v61 = vpop.f32.mrf.mxu1 }
 0x6e0   : > { %3140 = vst [vmem:[%s6160_s22] sm:$0xff] %v3118_v49  ;;  %v3120_v32 = vadd.f32 %v3119_v19, %v2926_v61 }
 0x6e1   : > { %v2930_v56 = vpop.f32.mrf.mxu1 }
 0x6e2   : > { %3141 = vst [vmem:[%s6160_s22 + $0x8] sm:$0xff] %v3120_v32 }
 0x6e3   : > { %v2932_v20 = vpop.f32.mrf.mxu1 }
 0x6e5   : > { %v2936_v6 = vpop.f32.mrf.mxu1 }
 0x6e7   : > { %v2938_v1 = vpop.f32.mrf.mxu1 }
 0x6e9   : > { %v2942_v45 = vpop.f32.mrf.mxu1 }
 0x6eb   : > { %v2944_v53 = vpop.f32.mrf.mxu1 }
 0x71d   : > { %v3123_v18 = vpop.f32.mrf.mxu1 }
 0x71e   : > { %v3124_v22 = vadd.f32 %v3123_v18, %v2930_v56 }
 0x71f   : > { %v3125_v13 = vpop.f32.mrf.mxu1 }
 0x720   : > { %3142 = vst [vmem:[%s6160_s22 + $0x10] sm:$0xff] %v3124_v22  ;;  %v3126_v4 = vadd.f32 %v3125_v13, %v2932_v20 }
 0x721   : > { %v3129_v55 = vpop.f32.mrf.mxu1 }
 0x722   : > { %3143 = vst [vmem:[%s6160_s22 + $0x18] sm:$0xff] %v3126_v4  ;;  %v3130_v27 = vadd.f32 %v3129_v55, %v2936_v6 }
 0x723   : > { %v3131_v28 = vpop.f32.mrf.mxu1 }
 0x724   : > { %3144 = vst [vmem:[%s6160_s22 + $0x20] sm:$0xff] %v3130_v27  ;;  %v3132_v43 = vadd.f32 %v3131_v28, %v2938_v1 }
 0x725   : > { %v3135_v52 = vpop.f32.mrf.mxu1 }
 0x726   : > { %3145 = vst [vmem:[%s6160_s22 + $0x28] sm:$0xff] %v3132_v43  ;;  %v3136_v26 = vadd.f32 %v3135_v52, %v2942_v45 }
 0x727   : > { %v3137_v11 = vpop.f32.mrf.mxu1 }
 0x728   : > { %3146 = vst [vmem:[%s6160_s22 + $0x30] sm:$0xff] %v3136_v26  ;;  %v3138_v39 = vadd.f32 %v3137_v11, %v2944_v53 }
 0x72a   : > { %3147 = vst [vmem:[%s6160_s22 + $0x38] sm:$0xff] %v3138_v39 }
 0x72b PF: > { %s13_s12 = sadd.s32 1, %s4202_s12  }
 0x72c   : > { %p10_p4 = scmp.ge.s32.totalorder %s13_s12, 4  }
 0x72e   :  { %12 = sbr.rel (!%p10_p4) target bundleno = 1 (0x1), region = 62 }

</bundles_post_ra>
